<compile_context>
chip_gen: v6e
topology: v6e:2x2x1
jax: 0.10.0
libtpu: 0.0.40
codegen_flags: <defaults>
</compile_context>

<pallas_src>
import jax
import jax.numpy as jnp
from jax import lax
from jax.experimental import pallas as pl
from jax.experimental.pallas import tpu as pltpu

_EPS = 1e-6
_LANE = 128


def _round_up(x, m):
    return ((x + m - 1) // m) * m


# ----------------------------- Pallas kernel ------------------------------- #
# One fused step per M-tile (rows of the im2col matrix):
#   z         = patches_tile @ W                 (MXU, bf16 in / f32 acc)
#   s         = a_tile / (z + eps*sign(z))       (VPU + EUP reciprocal, f32)
#   c_patches = s @ W^T                          (MXU, trans-B dot_general)
# The weight operand stays resident in VMEM across the whole grid (constant
# index_map), so each grid step only streams the patches / a / c_patches tiles.

def _aconv_fused_kernel(p_ref, a_ref, w_ref, c_ref):
    w = w_ref[...]                                              # (Kp, C_out) bf16, resident
    z = jnp.dot(p_ref[...], w, preferred_element_type=jnp.float32)   # (TM, C_out) f32
    denom = z + _EPS * jnp.where(z >= 0.0, 1.0, -1.0)
    # EUP approximate reciprocal + one Newton step: near-f32 accurate, divide
    # cost moves off the VALU onto the otherwise-idle EUP slot.
    r = pl.reciprocal(denom, approx=True)
    r = r * (2.0 - denom * r)
    s = (a_ref[...].astype(jnp.float32) * r).astype(jnp.bfloat16)
    # c_patches = s @ W^T without materializing W^T (trans-B contraction).
    c = lax.dot_general(s, w, dimension_numbers=(((1,), (1,)), ((), ())),
                        preferred_element_type=jnp.float32)          # (TM, Kp) f32
    c_ref[...] = c.astype(c_ref.dtype)


# ------------------------------ JAX glue ----------------------------------- #

def _im2col_nhwc(x, kh, kw, stride, padding, dilation):
    """x: (N, H, W, C) -> patches (N*Ho*Wo, kh*kw*C), plus Ho, Wo."""
    N, H, W, C = x.shape
    sh, sw = stride
    ph, pw = padding
    dh, dw = dilation
    xp = jnp.pad(x, ((0, 0), (ph, ph), (pw, pw), (0, 0)))
    Hp, Wp = H + 2 * ph, W + 2 * pw
    Ho = (Hp - dh * (kh - 1) - 1) // sh + 1
    Wo = (Wp - dw * (kw - 1) - 1) // sw + 1
    cols = []
    for ki in range(kh):
        for kj in range(kw):
            patch = xp[:,
                       ki * dh: ki * dh + sh * (Ho - 1) + 1: sh,
                       kj * dw: kj * dw + sw * (Wo - 1) + 1: sw,
                       :]                       # (N, Ho, Wo, C)
            cols.append(patch)
    patches = jnp.stack(cols, axis=3)           # (N, Ho, Wo, kh*kw, C)
    return patches.reshape(N * Ho * Wo, kh * kw * C), Ho, Wo


def _col2im_nhwc(cp, H, W, stride, padding, dilation):
    """cp: (N, Ho, Wo, kh, kw, C) bf16 -> fold/scatter-add (f32 acc) to (N, H, W, C)."""
    N, Ho, Wo, kh, kw, C = cp.shape
    sh, sw = stride
    ph, pw = padding
    dh, dw = dilation
    out = jnp.zeros((N, H + 2 * ph, W + 2 * pw, C), jnp.float32)
    for ki in range(kh):
        for kj in range(kw):
            out = out.at[:,
                         ki * dh: ki * dh + sh * (Ho - 1) + 1: sh,
                         kj * dw: kj * dw + sw * (Wo - 1) + 1: sw,
                         :].add(cp[:, :, :, ki, kj, :].astype(jnp.float32))
    return out[:, ph:ph + H, pw:pw + W, :]


def _select_tile_m(M, Kp, c_out, target):
    """Pick the M-tile: multiple of 16 (bf16 sublanes), bounded by a VMEM budget."""
    # bytes per M row streamed through VMEM: bf16 patches in + attention in +
    # c_patches out, each double-buffered by the BlockSpec pipeline.
    per_row = 2 * (Kp * 2) + 2 * (c_out * 2) + 2 * (Kp * 2)
    budget = 40 * 1024 * 1024   # conservative across v5e/v6e (128 MiB) and v7x (64 MiB)
    # TODO(synk): for very large K on v7x, add a K-tiled grid axis with an f32 z
    # accumulator in scratch instead of shrinking TM below MXU-friendly sizes.
    tm = max(16, min(_round_up(target, 16), _round_up(M, 16)))
    while tm > 16 and tm * per_row > budget:
        tm = max(16, (tm // 2 // 16) * 16)
    return tm


def _build_pallas_call(Mp, Kp, c_out, tm, vmem_limit, *, single_buffer_weight):
    w_kwargs = {"pipeline_mode": pl.Buffered(1)} if single_buffer_weight else {}
    return pl.pallas_call(
        _aconv_fused_kernel,
        out_shape=jax.ShapeDtypeStruct((Mp, Kp), jnp.bfloat16),
        grid_spec=pltpu.PrefetchScalarGridSpec(
            num_scalar_prefetch=0,
            grid=(Mp // tm,),
            in_specs=[
                pl.BlockSpec((tm, Kp), lambda i: (i, 0)),              # patches (streamed)
                pl.BlockSpec((tm, c_out), lambda i: (i, 0)),           # attention (streamed)
                pl.BlockSpec((Kp, c_out), lambda i: (0, 0), **w_kwargs),  # W (resident)
            ],
            out_specs=pl.BlockSpec((tm, Kp), lambda i: (i, 0)),        # c_patches (streamed)
        ),
        # TODO(synk): on v7x verify the 'parallel' M axis shards across both
        # TensorCores (xprof); if not, use pltpu.CORE_PARALLEL / explicit split.
        compiler_params=pltpu.CompilerParams(
            dimension_semantics=("parallel",),
            vmem_limit_bytes=vmem_limit),
    )


def aconv_pallas(ff_h, weight, a, stride, padding, dilation, groups, *, tile_m=512):
    # TODO(synk): grouped-conv (groups > 1) attention propagation not implemented.
    assert groups == 1
    N, C_in, H, W = ff_h.shape
    C_out, _, kH, kW = weight.shape

    # NCHW -> NHWC (lane dim = channels). x kept in f32 for the final gate.
    x = jnp.transpose(ff_h, (0, 2, 3, 1)).astype(jnp.float32)
    a_rows = jnp.transpose(a, (0, 2, 3, 1)).reshape(-1, C_out).astype(jnp.bfloat16)

    # TODO(synk): im2col is still XLA glue; building the kH*kW taps in-kernel
    # from an NHWC row slab (+halo) streamed via memory_space=pl.ANY +
    # make_async_copy would cut input HBM traffic by ~kH*kW.
    patches, Ho, Wo = _im2col_nhwc(x.astype(jnp.bfloat16), kH, kW,
                                   stride, padding, dilation)
    M = N * Ho * Wo
    K = kH * kW * C_in
    Kp = _round_up(K, _LANE)

    TM = _select_tile_m(M, Kp, C_out, tile_m)
    Mp = _round_up(M, TM)

    if (Mp, Kp) != (M, K):
        patches = jnp.pad(patches, ((0, Mp - M), (0, Kp - K)))
    if Mp != M:
        a_rows = jnp.pad(a_rows, ((0, Mp - M), (0, 0)))

    # (C_out, C_in, kH, kW) -> (kH, kW, C_in, C_out) -> (K, C_out): matches the
    # (ki, kj, c_in) tap ordering of _im2col_nhwc. Only K is lane-padded; the
    # attention / output-channel axis keeps its true width (no a traffic inflation).
    w_mat = jnp.transpose(weight, (2, 3, 1, 0)).reshape(K, C_out).astype(jnp.bfloat16)
    if Kp != K:
        w_mat = jnp.pad(w_mat, ((0, Kp - K), (0, 0)))

    # VMEM limit derived from actual tile sizes (+ headroom), capped for v7x.
    need = TM * (2 * Kp * 2 + 2 * C_out * 2 + 2 * Kp * 2) + 2 * Kp * C_out * 2
    vmem_limit = int(min(max(2 * need + (4 << 20), 16 << 20), 48 << 20))

    try:
        call = _build_pallas_call(Mp, Kp, C_out, TM, vmem_limit,
                                  single_buffer_weight=True)
        c_patches_p = call(patches, a_rows, w_mat)
    except Exception:
        # Fallback for jax versions without BlockSpec(pipeline_mode=pl.Buffered(1)).
        call = _build_pallas_call(Mp, Kp, C_out, TM, vmem_limit,
                                  single_buffer_weight=False)
        c_patches_p = call(patches, a_rows, w_mat)

    c_patches = c_patches_p[:M, :K].reshape(N, Ho, Wo, kH, kW, C_in)

    # TODO(synk): col2im scatter-add fold and the gate stay in XLA (f32
    # accumulation over bf16 taps); an in-kernel fold needs halo handling
    # across overlapping M-tiles of the input grid.
    c = _col2im_nhwc(c_patches, H, W, stride, padding, dilation)

    out = x * c                      # gate: plain XLA elementwise multiply
    return jnp.transpose(out, (0, 3, 1, 2))


# ------------------------ pure-JAX reference (check) ------------------------ #

def aconv_reference(ff_h, weight, a, stride, padding, dilation, groups):
    ph, pw = padding

    def conv_fn(x):
        return lax.conv_general_dilated(
            x, weight, window_strides=stride,
            padding=[(ph, ph), (pw, pw)],
            rhs_dilation=dilation,
            feature_group_count=groups,
            dimension_numbers=('NCHW', 'OIHW', 'NCHW'))

    z, vjp = jax.vjp(conv_fn, ff_h)
    denom = z + _EPS * jnp.where(z >= 0.0, 1.0, -1.0)
    s = a / denom
    (c,) = vjp(s)
    return ff_h * c


# --------------------------------- main ------------------------------------ #

if __name__ == "__main__":
    key = jax.random.PRNGKey(0)
    k1, k2, k3 = jax.random.split(key, 3)

    N, C_in, H, W = 2, 4, 16, 16
    C_out, kH, kW = 8, 3, 3
    stride, padding, dilation, groups = (1, 1), (1, 1), (1, 1), 1

    # Positive activations / weights (excitation-backprop setting) keep the
    # z-rule denominator well away from zero.
    ff_h = jnp.abs(jax.random.normal(k1, (N, C_in, H, W), jnp.float32)) + 0.1
    weight = jnp.abs(jax.random.normal(k2, (C_out, C_in, kH, kW), jnp.float32)) * 0.1 + 0.05

    Ho = (H + 2 * padding[0] - dilation[0] * (kH - 1) - 1) // stride[0] + 1
    Wo = (W + 2 * padding[1] - dilation[1] * (kW - 1) - 1) // stride[1] + 1
    a = jax.nn.relu(jax.random.normal(k3, (N, C_out, Ho, Wo), jnp.float32))

    out = jax.block_until_ready(
        aconv_pallas(ff_h, weight, a, stride, padding, dilation, groups))
    ref = jax.block_until_ready(
        aconv_reference(ff_h, weight, a, stride, padding, dilation, groups))

    assert out.shape == ff_h.shape, (out.shape, ff_h.shape)
    # bf16 MXU operands (per perf review) -> relaxed tolerance vs the f32 reference.
    err = float(jnp.max(jnp.abs(out - ref) / (1.0 + jnp.abs(ref))))
    assert err < 5e-2, f"mismatch vs reference: {err}"
    print("KERNEL_OK")
</pallas_src>

<mosaic_0001>
module attributes {stable_mosaic.version = 11 : i64} {
  func.func @_aconv_fused_kernel(%arg0: i32, %arg1: memref<512x128xbf16, #tpu.memory_space<vmem>>, %arg2: memref<512x8xbf16, #tpu.memory_space<vmem>>, %arg3: memref<128x8xbf16, #tpu.memory_space<vmem>>, %arg4: memref<512x128xbf16, #tpu.memory_space<vmem>>) attributes {dimension_semantics = [#tpu.dimension_semantics<parallel>], iteration_bounds = array<i64: 1>, scalar_prefetch = 0 : i64, scratch_operands = 0 : i64, tpu.core_type = #tpu.core_type<tc>, window_params = [{transform_indices = @transform_0, window_bounds = array<i64: 512, 128>}, {transform_indices = @transform_1, window_bounds = array<i64: 512, 8>}, {pipeline_mode = #tpu.pipeline_mode<synchronous>, transform_indices = @transform_2, window_bounds = array<i64: 128, 8>}, {transform_indices = @transform_3, window_bounds = array<i64: 512, 128>}]} {
    %c0 = arith.constant 0 : index
    %c0_0 = arith.constant 0 : index
    %0 = vector.load %arg3[%c0, %c0_0] : memref<128x8xbf16, #tpu.memory_space<vmem>>, vector<128x8xbf16>
    %c0_1 = arith.constant 0 : index
    %c0_2 = arith.constant 0 : index
    %1 = vector.load %arg1[%c0_1, %c0_2] : memref<512x128xbf16, #tpu.memory_space<vmem>>, vector<512x128xbf16>
    %cst = arith.constant dense<0.000000e+00> : vector<512x8xf32>
    %2 = tpu.matmul %1, %0, %cst {dimension_numbers = #tpu.dot_dimension_numbers<[1], [0], [0], [1], [0, 0, 1, 1], [], []>} : vector<512x128xbf16>, vector<128x8xbf16>, vector<512x8xf32> -> vector<512x8xf32>
    %cst_3 = arith.constant 0.000000e+00 : f32
    %3 = vector.broadcast %cst_3 : f32 to vector<512x8xf32>
    %4 = arith.cmpf oge, %2, %3 : vector<512x8xf32>
    %cst_4 = arith.constant 1.000000e+00 : f32
    %cst_5 = arith.constant -1.000000e+00 : f32
    %5 = vector.broadcast %cst_4 : f32 to vector<512x8xf32>
    %6 = vector.broadcast %cst_5 : f32 to vector<512x8xf32>
    %7 = arith.select %4, %5, %6 : vector<512x8xi1>, vector<512x8xf32>
    %cst_6 = arith.constant 9.99999997E-7 : f32
    %8 = vector.broadcast %cst_6 : f32 to vector<512x8xf32>
    %9 = arith.mulf %8, %7 : vector<512x8xf32>
    %10 = arith.addf %2, %9 : vector<512x8xf32>
    %11 = tpu.reciprocal %10 {approx = true} : vector<512x8xf32> -> vector<512x8xf32>
    %12 = arith.mulf %10, %11 : vector<512x8xf32>
    %cst_7 = arith.constant 2.000000e+00 : f32
    %13 = vector.broadcast %cst_7 : f32 to vector<512x8xf32>
    %14 = arith.subf %13, %12 : vector<512x8xf32>
    %15 = arith.mulf %11, %14 : vector<512x8xf32>
    %c0_8 = arith.constant 0 : index
    %c0_9 = arith.constant 0 : index
    %16 = vector.load %arg2[%c0_8, %c0_9] : memref<512x8xbf16, #tpu.memory_space<vmem>>, vector<512x8xbf16>
    %17 = arith.extf %16 : vector<512x8xbf16> to vector<512x8xf32>
    %18 = arith.mulf %17, %15 : vector<512x8xf32>
    %19 = arith.truncf %18 : vector<512x8xf32> to vector<512x8xbf16>
    %cst_10 = arith.constant dense<0.000000e+00> : vector<512x128xf32>
    %20 = tpu.matmul %19, %0, %cst_10 {dimension_numbers = #tpu.dot_dimension_numbers<[1], [1], [0], [0], [0, 0, 1, 0], [], []>} : vector<512x8xbf16>, vector<128x8xbf16>, vector<512x128xf32> -> vector<512x128xf32>
    %21 = arith.truncf %20 : vector<512x128xf32> to vector<512x128xbf16>
    %c0_11 = arith.constant 0 : index
    %c0_12 = arith.constant 0 : index
    %22 = vector.load %arg4[%c0_11, %c0_12] : memref<512x128xbf16, #tpu.memory_space<vmem>>, vector<512x128xbf16>
    tpu.vector_store %arg4[%c0_11, %c0_12], %21 {strides = array<i32>} : memref<512x128xbf16, #tpu.memory_space<vmem>>, vector<512x128xbf16>,
    return
  }
  func.func @transform_0(%arg0: i32) -> (i32, i32) {
    %c0_i32 = arith.constant 0 : i32
    %c0_i32_0 = arith.constant 0 : i32
    return %arg0, %c0_i32 : i32, i32
  }
  func.func @transform_1(%arg0: i32) -> (i32, i32) {
    %c0_i32 = arith.constant 0 : i32
    %c0_i32_0 = arith.constant 0 : i32
    return %arg0, %c0_i32 : i32, i32
  }
  func.func @transform_2(%arg0: i32) -> (i32, i32) {
    %c0_i32 = arith.constant 0 : i32
    %c0_i32_0 = arith.constant 0 : i32
    %c0_i32_1 = arith.constant 0 : i32
    return %c0_i32, %c0_i32_0 : i32, i32
  }
  func.func @transform_3(%arg0: i32) -> (i32, i32) {
    %c0_i32 = arith.constant 0 : i32
    %c0_i32_0 = arith.constant 0 : i32
    return %arg0, %c0_i32 : i32, i32
  }
}

module attributes {stable_mosaic.version = 11 : i64} {
  func.func @_aconv_fused_kernel(%arg0: i32, %arg1: memref<512x128xbf16, #tpu.memory_space<vmem>>, %arg2: memref<512x8xbf16, #tpu.memory_space<vmem>>, %arg3: memref<128x8xbf16, #tpu.memory_space<vmem>>, %arg4: memref<512x128xbf16, #tpu.memory_space<vmem>>) attributes {dimension_semantics = [#tpu.dimension_semantics<parallel>], iteration_bounds = array<i64: 1>, scalar_prefetch = 0 : i64, scratch_operands = 0 : i64, tpu.core_type = #tpu.core_type<tc>, window_params = [{transform_indices = @transform_0, window_bounds = array<i64: 512, 128>}, {transform_indices = @transform_1, window_bounds = array<i64: 512, 8>}, {pipeline_mode = #tpu.pipeline_mode<synchronous>, transform_indices = @transform_2, window_bounds = array<i64: 128, 8>}, {transform_indices = @transform_3, window_bounds = array<i64: 512, 128>}]} {
    %c0 = arith.constant 0 : index
    %c0_0 = arith.constant 0 : index
    %0 = vector.load %arg3[%c0, %c0_0] : memref<128x8xbf16, #tpu.memory_space<vmem>>, vector<128x8xbf16>
    %c0_1 = arith.constant 0 : index
    %c0_2 = arith.constant 0 : index
    %1 = vector.load %arg1[%c0_1, %c0_2] : memref<512x128xbf16, #tpu.memory_space<vmem>>, vector<512x128xbf16>
    %cst = arith.constant dense<0.000000e+00> : vector<512x8xf32>
    %2 = tpu.matmul %1, %0, %cst {dimension_numbers = #tpu.dot_dimension_numbers<[1], [0], [0], [1], [0, 0, 1, 1], [], []>} : vector<512x128xbf16>, vector<128x8xbf16>, vector<512x8xf32> -> vector<512x8xf32>
    %cst_3 = arith.constant 0.000000e+00 : f32
    %3 = vector.broadcast %cst_3 : f32 to vector<512x8xf32>
    %4 = arith.cmpf oge, %2, %3 : vector<512x8xf32>
    %cst_4 = arith.constant 1.000000e+00 : f32
    %cst_5 = arith.constant -1.000000e+00 : f32
    %5 = vector.broadcast %cst_4 : f32 to vector<512x8xf32>
    %6 = vector.broadcast %cst_5 : f32 to vector<512x8xf32>
    %7 = arith.select %4, %5, %6 : vector<512x8xi1>, vector<512x8xf32>
    %cst_6 = arith.constant 9.99999997E-7 : f32
    %8 = vector.broadcast %cst_6 : f32 to vector<512x8xf32>
    %9 = arith.mulf %8, %7 : vector<512x8xf32>
    %10 = arith.addf %2, %9 : vector<512x8xf32>
    %11 = tpu.reciprocal %10 {approx = true} : vector<512x8xf32> -> vector<512x8xf32>
    %12 = arith.mulf %10, %11 : vector<512x8xf32>
    %cst_7 = arith.constant 2.000000e+00 : f32
    %13 = vector.broadcast %cst_7 : f32 to vector<512x8xf32>
    %14 = arith.subf %13, %12 : vector<512x8xf32>
    %15 = arith.mulf %11, %14 : vector<512x8xf32>
    %c0_8 = arith.constant 0 : index
    %c0_9 = arith.constant 0 : index
    %16 = vector.load %arg2[%c0_8, %c0_9] : memref<512x8xbf16, #tpu.memory_space<vmem>>, vector<512x8xbf16>
    %17 = arith.extf %16 : vector<512x8xbf16> to vector<512x8xf32>
    %18 = arith.mulf %17, %15 : vector<512x8xf32>
    %19 = arith.truncf %18 : vector<512x8xf32> to vector<512x8xbf16>
    %cst_10 = arith.constant dense<0.000000e+00> : vector<512x128xf32>
    %20 = tpu.matmul %19, %0, %cst_10 {dimension_numbers = #tpu.dot_dimension_numbers<[1], [1], [0], [0], [0, 0, 1, 0], [], []>} : vector<512x8xbf16>, vector<128x8xbf16>, vector<512x128xf32> -> vector<512x128xf32>
    %21 = arith.truncf %20 : vector<512x128xf32> to vector<512x128xbf16>
    %c0_11 = arith.constant 0 : index
    %c0_12 = arith.constant 0 : index
    %22 = vector.load %arg4[%c0_11, %c0_12] : memref<512x128xbf16, #tpu.memory_space<vmem>>, vector<512x128xbf16>
    tpu.vector_store %arg4[%c0_11, %c0_12], %21 {strides = array<i32>} : memref<512x128xbf16, #tpu.memory_space<vmem>>, vector<512x128xbf16>,
    return
  }
  func.func @transform_0(%arg0: i32) -> (i32, i32) {
    %c0_i32 = arith.constant 0 : i32
    %c0_i32_0 = arith.constant 0 : i32
    return %arg0, %c0_i32 : i32, i32
  }
  func.func @transform_1(%arg0: i32) -> (i32, i32) {
    %c0_i32 = arith.constant 0 : i32
    %c0_i32_0 = arith.constant 0 : i32
    return %arg0, %c0_i32 : i32, i32
  }
  func.func @transform_2(%arg0: i32) -> (i32, i32) {
    %c0_i32 = arith.constant 0 : i32
    %c0_i32_0 = arith.constant 0 : i32
    %c0_i32_1 = arith.constant 0 : i32
    return %c0_i32, %c0_i32_0 : i32, i32
  }
  func.func @transform_3(%arg0: i32) -> (i32, i32) {
    %c0_i32 = arith.constant 0 : i32
    %c0_i32_0 = arith.constant 0 : i32
    return %arg0, %c0_i32 : i32, i32
  }
}

</mosaic_0001>

<bundles_post_ra>
// kernel: tpu_custom_call.1
= control target key start
LH: loop header
LB: loop body
LE: loop exit
PB: predicated region body
PF: predicated region fallthrough
CT: control target
= control target key end

     0   :  { %vm1361_vm0 = vcmask 64512   ;;  %s4184_s0 = inlined_call_operand.vmem [shape: bf16[512,128], index: 0, kind: input, shape index: {}]   ;;  %s4185_s1 = inlined_call_operand.vmem [shape: bf16[512,8], index: 1, kind: input, shape index: {}]   ;;  %s4186_s2 = inlined_call_operand.vmem [shape: bf16[128,8], index: 2, kind: input, shape index: {}]   ;;  %s4187_s3 = inlined_call_operand.hbm [shape: bf16[512,128], index: 3, kind: output, shape index: {}]  }
   0x1   :  { %v2933_v0 = vld [vmem:[%s4186_s2 + $0x38] sm:$0xff]   ;;  %v2934_v1 = vld [vmem:[%s4186_s2 + $0x30] sm:$0xff]   ;;  %v2935_v2 = vld [vmem:[%s4186_s2 + $0x28] sm:$0xff]  }
   0x2   :  { %2737 = vmatprep.subr.bf16.mxu0 %v2933_v0  ;;  %v2936_v3 = vld [vmem:[%s4186_s2 + $0x20] sm:$0xff]   ;;  %v3165_v5 = vld [vmem:[%s4186_s2 + $0x18] sm:$0xff]   ;;  %v3171_v6 = vld [vmem:[%s4186_s2 + $0x10] sm:$0xff]   ;;  %v1480_v9 = vsel %vm1361_vm0, %v2933_v0, 0  ;;  %2914 = vmatprep.subr.msk.bf16.mxu1 %vm1361_vm0, %v2933_v0  ;;  %v1477_v12 = vsel %vm1361_vm0, %v2934_v1, 0 }
   0x3   :  { %2738 = vmatpush3.bf16.msra.mxu0 %v2933_v0  ;;  %v2941_v4 = vld [vmem:[%s4184_s0] sm:$0xff]   ;;  %v3178_v7 = vld [vmem:[%s4186_s2 + $0x8] sm:$0xff]   ;;  %2905 = vmatpush3.bf16.xpose.msra.mxu1 %v1480_v9  ;;  %v2943_v11 = vld [vmem:[%s4184_s0 + $0x10] sm:$0xff]  }
   0x4   :  { %2739 = vmatprep.subr.bf16.mxu0 %v2934_v1  ;;  %2753 = vmatprep.mubr.bf16.mxu0 %v2941_v4  ;;  %v3185_v8 = vld [vmem:[%s4186_s2] sm:$0xff]   ;;  %v2942_v10 = vld [vmem:[%s4184_s0 + $0x8] sm:$0xff]   ;;  %v2944_v13 = vld [vmem:[%s4184_s0 + $0x18] sm:$0xff]  }
   0x5   :  { %2916 = vmatprep.subr.msk.bf16.mxu1 %vm1361_vm0, %v2934_v1  ;;  %v2945_v14 = vld [vmem:[%s4184_s0 + $0x20] sm:$0xff]  }
   0x7   :  { %2740 = vmatpush3.bf16.msra.mxu0 %v2934_v1 }
   0x8   :  { %2741 = vmatprep.subr.bf16.mxu0 %v2935_v2 }
   0xb   :  { %2742 = vmatpush3.bf16.msra.mxu0 %v2935_v2  ;;  %2906 = vmatpush3.bf16.xpose.msra.mxu1 %v1477_v12 }
   0xc   :  { %2743 = vmatprep.subr.bf16.mxu0 %v2936_v3  ;;  %2918 = vmatprep.subr.msk.bf16.mxu1 %vm1361_vm0, %v2935_v2 }
   0xf   :  { %2744 = vmatpush3.bf16.msra.mxu0 %v2936_v3 }
  0x10   :  { %2745 = vmatprep.subr.bf16.mxu0 %v3165_v5 }
  0x13   :  { %2746 = vmatpush3.bf16.msra.mxu0 %v3165_v5 }
  0x14   :  { %2747 = vmatprep.subr.bf16.mxu0 %v3171_v6 }
  0x17   :  { %2748 = vmatpush3.bf16.msra.mxu0 %v3171_v6 }
  0x18   :  { %2749 = vmatprep.subr.bf16.mxu0 %v3178_v7 }
  0x1b   :  { %2750 = vmatpush3.bf16.msra.mxu0 %v3178_v7 }
  0x1c   :  { %2751 = vmatprep.subr.bf16.mxu0 %v3185_v8 }
  0x1f   :  { %2752 = vmatpush3.bf16.msra.mxu0 %v3185_v8 }
  0x20   :  { %2913 = vmatprep.subr.msk.bf16.mxu0 %vm1361_vm0, %v2933_v0 }
  0x22   :  { %2754 = vmatmul.mubr.bf16.vlgmr.msra.gmra.mxu0 %v2942_v10 }
  0x23   :  { %2757 = vmatprep.mubr.bf16.mxu0 %v2943_v11  ;;  %2818 = vmatpush3.bf16.xpose.msra.mxu0 %v1480_v9 }
  0x24   :  { %2915 = vmatprep.subr.msk.bf16.mxu0 %vm1361_vm0, %v2934_v1 }
  0x25   :  { %8 = vsyncpa [#allocation3], 0  ;;  %v1474_v15 = vsel %vm1361_vm0, %v2935_v2, 0  ;;  %v2946_v16 = vld [vmem:[%s4184_s0 + $0x28] sm:$0xff]   ;;  %v2947_v17 = vld [vmem:[%s4184_s0 + $0x30] sm:$0xff]   ;;  %v1471_v18 = vsel %vm1361_vm0, %v2936_v3, 0 }
  0x26   :  { %2907 = vmatpush3.bf16.xpose.msra.mxu1 %v1474_v15  ;;  %v2948_v19 = vld [vmem:[%s4184_s0 + $0x38] sm:$0xff]   ;;  %v2949_v20 = vld [vmem:[%s4184_s0 + $0x40] sm:$0xff]   ;;  %v2950_v21 = vld [vmem:[%s4184_s0 + $0x48] sm:$0xff]   ;;  %v1468_v33 = vsel %vm1361_vm0, %v3165_v5, 0  ;;  %v1465_v36 = vsel %vm1361_vm0, %v3171_v6, 0  ;;  %v1462_v39 = vsel %vm1361_vm0, %v3178_v7, 0 }
  0x27   :  { %2920 = vmatprep.subr.msk.bf16.mxu1 %vm1361_vm0, %v2936_v3  ;;  %v2951_v22 = vld [vmem:[%s4184_s0 + $0x50] sm:$0xff]   ;;  %v2952_v23 = vld [vmem:[%s4184_s0 + $0x58] sm:$0xff]   ;;  %v2953_v24 = vld [vmem:[%s4184_s0 + $0x60] sm:$0xff]   ;;  %v1459_v44 = vsel %vm1361_vm0, %v3185_v8, 0  ;;  %v3123_v49 = vmov -1.0  }
  0x28   :  { %v2954_v25 = vld [vmem:[%s4184_s0 + $0x68] sm:$0xff]   ;;  %v2955_v26 = vld [vmem:[%s4184_s0 + $0x70] sm:$0xff]   ;;  %v2956_v27 = vld [vmem:[%s4184_s0 + $0x78] sm:$0xff]  }
  0x29   :  { %v2957_v28 = vld [vmem:[%s4184_s0 + $0x80] sm:$0xff]   ;;  %v2958_v29 = vld [vmem:[%s4184_s0 + $0x88] sm:$0xff]   ;;  %v2959_v30 = vld [vmem:[%s4184_s0 + $0x90] sm:$0xff]  }
  0x2a   :  { %2758 = vmatmul.mubr.bf16.gmra.mxu0 %v2944_v13  ;;  %v2960_v31 = vld [vmem:[%s4184_s0 + $0x98] sm:$0xff]   ;;  %v2961_v32 = vld [vmem:[%s4184_s0 + $0xa0] sm:$0xff]   ;;  %v2962_v34 = vld [vmem:[%s4184_s0 + $0xa8] sm:$0xff]  }
  0x2b   :  { %2761 = vmatprep.mubr.bf16.mxu0 %v2945_v14  ;;  %2820 = vmatpush3.bf16.xpose.msra.mxu0 %v1477_v12  ;;  %v2963_v35 = vld [vmem:[%s4184_s0 + $0xb0] sm:$0xff]   ;;  %v2964_v37 = vld [vmem:[%s4184_s0 + $0xb8] sm:$0xff]   ;;  %v2965_v38 = vld [vmem:[%s4184_s0 + $0xc0] sm:$0xff]  }
  0x2c   :  { %2917 = vmatprep.subr.msk.bf16.mxu0 %vm1361_vm0, %v2935_v2  ;;  %v2966_v40 = vld [vmem:[%s4184_s0 + $0xc8] sm:$0xff]   ;;  %v2967_v41 = vld [vmem:[%s4184_s0 + $0xd0] sm:$0xff]   ;;  %v2968_v42 = vld [vmem:[%s4184_s0 + $0xd8] sm:$0xff]  }
  0x2d   :  { %v2969_v43 = vld [vmem:[%s4184_s0 + $0xe0] sm:$0xff]   ;;  %v2970_v45 = vld [vmem:[%s4184_s0 + $0xe8] sm:$0xff]   ;;  %v2971_v46 = vld [vmem:[%s4184_s0 + $0xf0] sm:$0xff]  }
  0x2e   :  { %2908 = vmatpush3.bf16.xpose.msra.mxu1 %v1471_v18  ;;  %v2972_v47 = vld [vmem:[%s4184_s0 + $0xf8] sm:$0xff]   ;;  %v3323_v53 = vld [vmem:[%s4185_s1 + $0x8] sm:$0xff]   ;;  %v3331_v58 = vld [vmem:[%s4185_s1] sm:$0xff]  }
  0x2f   :  { %2922 = vmatprep.subr.msk.bf16.mxu1 %vm1361_vm0, %v3165_v5  ;;  %v2313_v61 = vunpack.c.l.bf16 %v3323_v53  ;;  %v3340_v0 = vld [vmem:[%s4185_s1 + $0x18] sm:$0xff]   ;;  %v3345_v1 = vld [vmem:[%s4185_s1 + $0x10] sm:$0xff]   ;;  %v2309_v2 = vunpack.c.l.bf16 %v3331_v58  ;;  %v2310_v9 = vunpack.c.h.bf16 %v3331_v58 }
  0x30   :  { %v2321_v11 = vunpack.c.l.bf16 %v3340_v0  ;;  %v2317_v13 = vunpack.c.l.bf16 %v3345_v1 }
  0x32   :  { %2762 = vmatmul.mubr.bf16.gmra.mxu0 %v2946_v16  ;;  %v3369_v16 = vld [vmem:[%s4185_s1 + $0x38] sm:$0xff]  }
  0x33   :  { %2765 = vmatprep.mubr.bf16.mxu0 %v2947_v17  ;;  %2822 = vmatpush3.bf16.xpose.msra.mxu0 %v1474_v15  ;;  %v3374_v17 = vld [vmem:[%s4185_s1 + $0x30] sm:$0xff]  }
  0x34   :  { %2919 = vmatprep.subr.msk.bf16.mxu0 %vm1361_vm0, %v2936_v3  ;;  %v2314_v3 = vunpack.c.h.bf16 %v3323_v53 }
  0x36   :  { %2909 = vmatpush3.bf16.xpose.msra.mxu1 %v1468_v33 }
  0x37   :  { %2924 = vmatprep.subr.msk.bf16.mxu1 %vm1361_vm0, %v3171_v6 }
  0x3a   :  { %2766 = vmatmul.mubr.bf16.gmra.mxu0 %v2948_v19 }
  0x3b   :  { %2769 = vmatprep.mubr.bf16.mxu0 %v2949_v20  ;;  %2824 = vmatpush3.bf16.xpose.msra.mxu0 %v1471_v18  ;;  %v2322_v20 = vunpack.c.h.bf16 %v3340_v0 }
  0x3c   :  { %2921 = vmatprep.subr.msk.bf16.mxu0 %vm1361_vm0, %v3165_v5 }
  0x3e   :  { %2910 = vmatpush3.bf16.xpose.msra.mxu1 %v1465_v36 }
  0x3f   :  { %2926 = vmatprep.subr.msk.bf16.mxu1 %vm1361_vm0, %v3178_v7 }
  0x42   :  { %2770 = vmatmul.mubr.bf16.gmra.mxu0 %v2950_v21  ;;  %v2318_v21 = vunpack.c.h.bf16 %v3345_v1 }
  0x43   :  { %2773 = vmatprep.mubr.bf16.mxu0 %v2951_v22  ;;  %2826 = vmatpush3.bf16.xpose.msra.mxu0 %v1468_v33  ;;  %v3398_v33 = vld [vmem:[%s4185_s1 + $0x48] sm:$0xff]  }
  0x44   :  { %2923 = vmatprep.subr.msk.bf16.mxu0 %vm1361_vm0, %v3171_v6 }
  0x46   :  { %2911 = vmatpush3.bf16.xpose.msra.mxu1 %v1462_v39 }
  0x47   :  { %2928 = vmatprep.subr.msk.bf16.mxu1 %vm1361_vm0, %v3185_v8 }
  0x4a   :  { %2774 = vmatmul.mubr.bf16.gmra.mxu0 %v2952_v23 }
  0x4b   :  { %2777 = vmatprep.mubr.bf16.mxu0 %v2953_v24  ;;  %2828 = vmatpush3.bf16.xpose.msra.mxu0 %v1465_v36 }
  0x4c   :  { %2925 = vmatprep.subr.msk.bf16.mxu0 %vm1361_vm0, %v3178_v7 }
  0x4e   :  { %2912 = vmatpush3.bf16.xpose.msra.mxu1 %v1459_v44 }
  0x52   :  { %2778 = vmatmul.mubr.bf16.gmra.mxu0 %v2954_v25  ;;  %v3386_v25 = vld [vmem:[%s4185_s1 + $0x20] sm:$0xff]  }
  0x53   :  { %2781 = vmatprep.mubr.bf16.mxu0 %v2955_v26  ;;  %2830 = vmatpush3.bf16.xpose.msra.mxu0 %v1462_v39  ;;  %v2325_v39 = vunpack.c.l.bf16 %v3386_v25 }
  0x54   :  { %2927 = vmatprep.subr.msk.bf16.mxu0 %vm1361_vm0, %v3185_v8  ;;  %v3357_v8 = vld [vmem:[%s4185_s1 + $0x28] sm:$0xff]  }
  0x5a   :  { %2782 = vmatmul.mubr.bf16.gmra.mxu0 %v2956_v27 }
  0x5b   :  { %2785 = vmatprep.mubr.bf16.mxu0 %v2957_v28  ;;  %2832 = vmatpush3.bf16.xpose.msra.mxu0 %v1459_v44  ;;  %v2330_v28 = vunpack.c.h.bf16 %v3357_v8 }
  0x62   :  { %2786 = vmatmul.mubr.bf16.gmra.mxu0 %v2958_v29 }
  0x63   :  { %2789 = vmatprep.mubr.bf16.mxu0 %v2959_v30 }
  0x6a   :  { %2790 = vmatmul.mubr.bf16.gmra.mxu0 %v2960_v31 }
  0x6b   :  { %2793 = vmatprep.mubr.bf16.mxu0 %v2961_v32 }
  0x72   :  { %2794 = vmatmul.mubr.bf16.gmra.mxu0 %v2962_v34  ;;  %v3403_v34 = vld [vmem:[%s4185_s1 + $0x40] sm:$0xff]  }
  0x73   :  { %2797 = vmatprep.mubr.bf16.mxu0 %v2963_v35 }
  0x7a   :  { %2798 = vmatmul.mubr.bf16.gmra.mxu0 %v2964_v37  ;;  %v3491_v37 = vld [vmem:[%s4185_s1 + $0x80] sm:$0xff]  }
  0x7b   :  { %2801 = vmatprep.mubr.bf16.mxu0 %v2965_v38 }
  0x82   :  { %2802 = vmatmul.mubr.bf16.gmra.mxu0 %v2966_v40 }
  0x83   :  { %2805 = vmatprep.mubr.bf16.mxu0 %v2967_v41 }
  0x8a   :  { %2806 = vmatmul.mubr.bf16.gmra.mxu0 %v2968_v42  ;;  %v3415_v42 = vld [vmem:[%s4185_s1 + $0x58] sm:$0xff]  }
  0x8b   :  { %2809 = vmatprep.mubr.bf16.mxu0 %v2969_v43 }
  0x92   :  { %2810 = vmatmul.mubr.bf16.gmra.mxu0 %v2970_v45 }
  0x93   :  { %2813 = vmatprep.mubr.bf16.mxu0 %v2971_v46 }
  0x9a   :  { %2814 = vmatmul.mubr.bf16.gmra.mxu0 %v2972_v47  ;;  %v3423_v47 = vld [vmem:[%s4185_s1 + $0x50] sm:$0xff]  }
  0xe2   :  { %v2755_v48 = vpop.f32.mrf.mxu0 }
  0xe3   :  { %vm627_vm1 = vcmp.ge.f32.partialorder %v2755_v48, 0.0 }
  0xe4   :  { %v691_v50 = vsel %vm627_vm1, 1.0, %v3123_v49  ;;  %v370_v51 = vpop.f32.mrf.mxu0 }
  0xe5   :  { %v755_v52 = vmul.f32 1e-06, %v691_v50  ;;  %vm625_vm2 = vcmp.ge.f32.partialorder %v370_v51, 0.0 }
  0xe6   :  { %v689_v54 = vsel %vm625_vm2, 1.0, %v3123_v49  ;;  %v2756_v55 = vpop.f32.mrf.mxu0 }
  0xe7   :  { %v3326_v56 = vadd.f32 %v2755_v48, %v755_v52  ;;  %v753_v57 = vmul.f32 1e-06, %v689_v54  ;;  %vm628_vm3 = vcmp.ge.f32.partialorder %v2756_v55, 0.0  ;;  %v3432_v52 = vld [vmem:[%s4185_s1 + $0x68] sm:$0xff]   ;;  %v3437_v54 = vld [vmem:[%s4185_s1 + $0x60] sm:$0xff]  }
  0xe8   :  { %v692_v59 = vsel %vm628_vm3, 1.0, %v3123_v49  ;;  %v373_v60 = vpop.f32.mrf.mxu0 }
  0xe9   :  { %v3335_v62 = vadd.f32 %v753_v57, %v370_v51  ;;  %v756_v63 = vmul.f32 1e-06, %v692_v59  ;;  %vm626_vm4 = vcmp.ge.f32.partialorder %v373_v60, 0.0  ;;  %2973 = vrcp.f32 %v3326_v56 }
  0xea   :  { %v690_v4 = vsel %vm626_vm4, 1.0, %v3123_v49  ;;  %v2759_v5 = vpop.f32.mrf.mxu0 }
  0xeb   :  { %2975 = vrcp.f32 %v3335_v62  ;;  %v3352_v6 = vadd.f32 %v2756_v55, %v756_v63  ;;  %v754_v7 = vmul.f32 1e-06, %v690_v4  ;;  %vm631_vm5 = vcmp.ge.f32.partialorder %v2759_v5, 0.0  ;;  %v3446_v4 = vld [vmem:[%s4185_s1 + $0x78] sm:$0xff]   ;;  %v3469_v63 = vld [vmem:[%s4185_s1 + $0x88] sm:$0xff]  }
  0xec   :  { %v695_v10 = vsel %vm631_vm5, 1.0, %v3123_v49  ;;  %v386_v12 = vpop.f32.mrf.mxu0 }
  0xed   :  { %2977 = vrcp.f32 %v3352_v6  ;;  %v3364_v14 = vadd.f32 %v754_v7, %v373_v60  ;;  %v759_v15 = vmul.f32 1e-06, %v695_v10  ;;  %vm629_vm6 = vcmp.ge.f32.partialorder %v386_v12, 0.0 }
  0xee   :  { %v693_v18 = vsel %vm629_vm6, 1.0, %v3123_v49  ;;  %v2760_v19 = vpop.f32.mrf.mxu0 }
  0xef   :  { %2979 = vrcp.f32 %v3364_v14  ;;  %v3381_v23 = vadd.f32 %v2759_v5, %v759_v15  ;;  %v757_v24 = vmul.f32 1e-06, %v693_v18  ;;  %vm632_vm7 = vcmp.ge.f32.partialorder %v2760_v19, 0.0  ;;  %v3457_v15 = vld [vmem:[%s4185_s1 + $0x70] sm:$0xff]  }
  0xf0   :  { %v696_v26 = vsel %vm632_vm7, 1.0, %v3123_v49  ;;  %v389_v27 = vpop.f32.mrf.mxu0 }
  0xf1   :  { %2981 = vrcp.f32 %v3381_v23  ;;  %v3393_v31 = vadd.f32 %v757_v24, %v386_v12  ;;  %v760_v32 = vmul.f32 1e-06, %v696_v26  ;;  %vm630_vm8 = vcmp.ge.f32.partialorder %v389_v27, 0.0 }
  0xf2   :  { %v694_v35 = vsel %vm630_vm8, 1.0, %v3123_v49  ;;  %v2763_v36 = vpop.f32.mrf.mxu0 }
  0xf3   :  { %2983 = vrcp.f32 %v3393_v31  ;;  %v3410_v40 = vadd.f32 %v2760_v19, %v760_v32  ;;  %v758_v41 = vmul.f32 1e-06, %v694_v35  ;;  %vm635_vm9 = vcmp.ge.f32.partialorder %v2763_v36, 0.0 }
  0xf4   :  { %v699_v43 = vsel %vm635_vm9, 1.0, %v3123_v49  ;;  %v402_v44 = vpop.f32.mrf.mxu0 }
  0xf5   :  { %2985 = vrcp.f32 %v3410_v40  ;;  %v3427_v50 = vadd.f32 %v758_v41, %v389_v27  ;;  %v763_v51 = vmul.f32 1e-06, %v699_v43  ;;  %vm633_vm10 = vcmp.ge.f32.partialorder %v402_v44, 0.0 }
  0xf6   :  { %v697_v55 = vsel %vm633_vm10, 1.0, %v3123_v49  ;;  %v2764_v57 = vpop.f32.mrf.mxu0  ;;  %v3448_v5 = vpop.eup %2973 }
  0xf7   :  { %2987 = vrcp.f32 %v3427_v50  ;;  %vm636_vm11 = vcmp.ge.f32.partialorder %v2764_v57, 0.0  ;;  %v3462_v32 = vadd.f32 %v2763_v36, %v763_v51  ;;  %v761_v35 = vmul.f32 1e-06, %v697_v55 }
  0xf8   :  { %v2976_v18 = vpop.eup %2975  ;;  %v405_v19 = vpop.f32.mrf.mxu0  ;;  %v700_v10 = vsel %vm636_vm11, 1.0, %v3123_v49  ;;  %v947_v51 = vmul.f32 %v3448_v5, %v3326_v56 }
  0xf9   :  { %vm634_vm12 = vcmp.ge.f32.partialorder %v405_v19, 0.0  ;;  %v945_v55 = vmul.f32 %v2976_v18, %v3335_v62  ;;  %v764_v7 = vmul.f32 1e-06, %v700_v10  ;;  %2989 = vrcp.f32 %v3462_v32 }
  0xfa   :  { %v2978_v12 = vpop.eup %2977  ;;  %v2767_v24 = vpop.f32.mrf.mxu0  ;;  %v698_v60 = vsel %vm634_vm12, 1.0, %v3123_v49  ;;  %v3483_v56 = vadd.f32 %v761_v35, %v402_v44 }
  0xfb   :  { %v948_v43 = vmul.f32 %v2978_v12, %v3352_v6  ;;  %vm639_vm13 = vcmp.ge.f32.partialorder %v2767_v24, 0.0  ;;  %v3485_v45 = vadd.f32 %v2764_v57, %v764_v7  ;;  %v762_v6 = vmul.f32 1e-06, %v698_v60 }
  0xfc   :  { %v2980_v41 = vpop.eup %2979  ;;  %v418_v59 = vpop.f32.mrf.mxu0  ;;  %v703_v27 = vsel %vm639_vm13, 1.0, %v3123_v49  ;;  %v1009_v46 = vsub.f32 2.0, %v945_v55  ;;  %2991 = vrcp.f32 %v3483_v56 }
  0xfd   :  { %v1012_v26 = vsub.f32 2.0, %v948_v43  ;;  %v946_v36 = vmul.f32 %v2980_v41, %v3364_v14  ;;  %vm637_vm14 = vcmp.ge.f32.partialorder %v418_v59, 0.0  ;;  %v1011_v43 = vsub.f32 2.0, %v947_v51 }
  0xfe   :  { %v2982_v62 = vpop.eup %2981  ;;  %v2768_v10 = vpop.f32.mrf.mxu0  ;;  %v3494_v38 = vadd.f32 %v762_v6, %v405_v19  ;;  %v767_v57 = vmul.f32 1e-06, %v703_v27  ;;  %v701_v60 = vsel %vm637_vm14, 1.0, %v3123_v49  ;;  %2993 = vrcp.f32 %v3485_v45 }
  0xff   :  { %v1076_v14 = vmul.f32 %v2978_v12, %v1012_v26  ;;  %v951_v30 = vmul.f32 %v2982_v62, %v3381_v23  ;;  %v1010_v35 = vsub.f32 2.0, %v946_v36  ;;  %v765_v23 = vmul.f32 1e-06, %v701_v60 }
 0x100   :  { %v2984_v44 = vpop.eup %2983  ;;  %v421_v7 = vpop.f32.mrf.mxu0  ;;  %v3501_v12 = vadd.f32 %v2767_v24, %v767_v57  ;;  %vm640_vm15 = vcmp.ge.f32.partialorder %v2768_v10, 0.0  ;;  %v1075_v26 = vmul.f32 %v3448_v5, %v1011_v43  ;;  %v1073_v27 = vmul.f32 %v2976_v18, %v1009_v46 }
 0x101   :  { %v1015_v29 = vsub.f32 2.0, %v951_v30  ;;  %v949_v36 = vmul.f32 %v2984_v44, %v3393_v31  ;;  %2995 = vrcp.f32 %v3494_v38  ;;  %v1268_v55 = vmul.f32 %v2314_v3, %v1076_v14 }
 0x102   :  { %v2986_v51 = vpop.eup %2985  ;;  %v2771_v19 = vpop.f32.mrf.mxu0  ;;  %v1074_v6 = vmul.f32 %v2980_v41, %v1010_v35  ;;  %2997 = vrcp.f32 %v3501_v12  ;;  %v704_v24 = vsel %vm640_vm15, 1.0, %v3123_v49  ;;  %v3512_v18 = vadd.f32 %v765_v23, %v418_v59 }
 0x103   :  { %v1079_v60 = vmul.f32 %v2982_v62, %v1015_v29  ;;  %v952_v48 = vmul.f32 %v2986_v51, %v3410_v40  ;;  %v768_v46 = vmul.f32 1e-06, %v704_v24  ;;  %vm638_vm1 = vcmp.ge.f32.partialorder %v421_v7, 0.0 }
 0x104   :  { %v2988_v30 = vpop.eup %2987  ;;  %v434_v57 = vpop.f32.mrf.mxu0  ;;  %vm643_vm2 = vcmp.ge.f32.partialorder %v2771_v19, 0.0  ;;  %v2374_v43 = vunpack.c.h.bf16 %v3491_v37  ;;  %v1267_v3 = vmul.f32 %v2313_v61, %v1075_v26  ;;  %v1013_v41 = vsub.f32 2.0, %v949_v36 }
 0x105   :  { %v950_v5 = vmul.f32 %v2988_v30, %v3427_v50  ;;  %v3517_v35 = vadd.f32 %v2768_v10, %v768_v46  ;;  %v1266_v29 = vmul.f32 %v2310_v9, %v1074_v6  ;;  %v702_v40 = vsel %vm638_vm1, 1.0, %v3123_v49 }
 0x106   :  { %v2772_v31 = vpop.f32.mrf.mxu0  ;;  %v707_v50 = vsel %vm643_vm2, 1.0, %v3123_v49  ;;  %vm641_vm3 = vcmp.ge.f32.partialorder %v434_v57, 0.0  ;;  %v1265_v62 = vmul.f32 %v2309_v2, %v1073_v27  ;;  %v1330_v23 = vpack.c.bf16 %v1268_v55, %v1267_v3  ;;  %v2990_v10 = vpop.eup %2989 }
 0x107   :  { %v1014_v14 = vsub.f32 2.0, %v950_v5  ;;  %v3527_v53 = vmul.f32 %v2321_v11, %v1079_v60  ;;  %v1016_v61 = vsub.f32 2.0, %v952_v48  ;;  %2999 = vrcp.f32 %v3512_v18 }
 0x108   :  { %v437_v59 = vpop.f32.mrf.mxu0  ;;  %v766_v26 = vmul.f32 1e-06, %v702_v40  ;;  %v771_v9 = vmul.f32 1e-06, %v707_v50  ;;  %v705_v36 = vsel %vm641_vm3, 1.0, %v3123_v49  ;;  %v1077_v24 = vmul.f32 %v2984_v44, %v1013_v41 }
 0x109   :  { %v1078_v5 = vmul.f32 %v2988_v30, %v1014_v14  ;;  %3001 = vrcp.f32 %v3517_v35  ;;  %v769_v58 = vmul.f32 1e-06, %v705_v36  ;;  %vm644_vm4 = vcmp.ge.f32.partialorder %v2772_v31, 0.0  ;;  %v3540_v3 = vpop.eup %2991  ;;  %v3574_v36 = vld [vmem:[%s4185_s1 + $0x98] sm:$0xff]  }
 0x10a   :  { %v2775_v6 = vpop.f32.mrf.mxu0  ;;  %v3532_v2 = vadd.f32 %v766_v26, %v421_v7  ;;  %v3534_v27 = vadd.f32 %v2771_v19, %v771_v9  ;;  %v1329_v11 = vpack.c.bf16 %v1266_v29, %v1265_v62  ;;  %v955_v55 = vmul.f32 %v2990_v10, %v3462_v32 }
 0x10b   :  { %v3537_v60 = vadd.f32 %v769_v58, %v434_v57  ;;  %v708_v46 = vsel %vm644_vm4, 1.0, %v3123_v49  ;;  %vm642_vm5 = vcmp.ge.f32.partialorder %v437_v59, 0.0  ;;  %v1080_v44 = vmul.f32 %v2986_v51, %v1016_v61  ;;  %v3545_v41 = vpop.eup %2993 }
 0x10c   :  { %v450_v48 = vpop.f32.mrf.mxu0  ;;  %3003 = vrcp.f32 %v3532_v2  ;;  %v772_v30 = vmul.f32 1e-06, %v708_v46  ;;  %2833 = vmatprep.mubr.msk.bf16.mxu0 %vm1361_vm0, %v1329_v11  ;;  %v706_v7 = vsel %vm642_vm5, 1.0, %v3123_v49  ;;  %vm647_vm6 = vcmp.ge.f32.partialorder %v2775_v6, 0.0 }
 0x10d   :  { %3005 = vrcp.f32 %v3534_v27  ;;  %v770_v32 = vmul.f32 1e-06, %v706_v7  ;;  %2834 = vmatmul.mubr.msk.bf16.vlgmr.msra.gmra.mxu0 %vm1361_vm0, %v1330_v23  ;;  %vm645_vm7 = vcmp.ge.f32.partialorder %v450_v48, 0.0  ;;  %v1269_v51 = vmul.f32 %v2317_v13, %v1077_v24 }
 0x10e   :  { %v2776_v19 = vpop.f32.mrf.mxu0  ;;  %v3549_v57 = vpop.eup %2995  ;;  %v1270_v14 = vmul.f32 %v2318_v21, %v1078_v5  ;;  %3007 = vrcp.f32 %v3537_v60  ;;  %v3556_v29 = vadd.f32 %v2772_v31, %v772_v30  ;;  %v711_v23 = vsel %vm647_vm6, 1.0, %v3123_v49 }
 0x10f   :  { %v3558_v50 = vpop.eup %2997  ;;  %v3560_v62 = vadd.f32 %v770_v32, %v437_v59  ;;  %v709_v61 = vsel %vm645_vm7, 1.0, %v3123_v49  ;;  %vm648_vm8 = vcmp.ge.f32.partialorder %v2776_v19, 0.0  ;;  %v1272_v13 = vmul.f32 %v2322_v20, %v1080_v44 }
 0x110   :  { %v453_v40 = vpop.f32.mrf.mxu0  ;;  %v1019_v26 = vsub.f32 2.0, %v955_v55  ;;  %v956_v1 = vmul.f32 %v3545_v41, %v3485_v45  ;;  %3009 = vrcp.f32 %v3556_v29  ;;  %v775_v31 = vmul.f32 1e-06, %v711_v23 }
 0x111   :  { %3011 = vrcp.f32 %v3560_v62  ;;  %v773_v59 = vmul.f32 1e-06, %v709_v61  ;;  %v712_v9 = vsel %vm648_vm8, 1.0, %v3123_v49  ;;  %v953_v0 = vmul.f32 %v3540_v3, %v3483_v56 }
 0x112   :  { %v2779_v21 = vpop.f32.mrf.mxu0  ;;  %v954_v20 = vmul.f32 %v3549_v57, %v3494_v38  ;;  %v959_v45 = vmul.f32 %v3558_v50, %v3501_v12  ;;  %v776_v24 = vmul.f32 1e-06, %v712_v9  ;;  %v3582_v58 = vadd.f32 %v2775_v6, %v775_v31  ;;  %v3613_v9 = vld [vmem:[%s4185_s1 + $0x90] sm:$0xff]  }
 0x113   :  { %v3584_v11 = vadd.f32 %v773_v59, %v450_v48  ;;  %v1331_v55 = vpack.c.bf16 %v1270_v14, %v1269_v51  ;;  %vm646_vm9 = vcmp.ge.f32.partialorder %v453_v40, 0.0  ;;  %v1083_v46 = vmul.f32 %v2990_v10, %v1019_v26 }
 0x114   :  { %v466_v5 = vpop.f32.mrf.mxu0  ;;  %v3586_v44 = vadd.f32 %v2776_v19, %v776_v24  ;;  %v710_v30 = vsel %vm646_vm9, 1.0, %v3123_v49  ;;  %v3000_v38 = vpop.eup %2999  ;;  %v1020_v32 = vsub.f32 2.0, %v956_v1  ;;  %3013 = vrcp.f32 %v3582_v58 }
 0x115   :  { %2837 = vmatprep.mubr.msk.bf16.mxu0 %vm1361_vm0, %v1331_v55  ;;  %v774_v12 = vmul.f32 1e-06, %v710_v30  ;;  %v1332_v6 = vpack.c.bf16 %v1272_v13, %v3527_v53  ;;  %v1017_v51 = vsub.f32 2.0, %v953_v0  ;;  %v1018_v10 = vsub.f32 2.0, %v954_v20 }
 0x116   :  { %v2780_v56 = vpop.f32.mrf.mxu0  ;;  %v3593_v48 = vpop.eup %3001  ;;  %3015 = vrcp.f32 %v3584_v11  ;;  %vm651_vm10 = vcmp.ge.f32.partialorder %v2779_v21, 0.0  ;;  %v1023_v14 = vsub.f32 2.0, %v959_v45  ;;  %v957_v53 = vmul.f32 %v3000_v38, %v3512_v18 }
 0x117   :  { %3017 = vrcp.f32 %v3586_v44  ;;  %v3599_v23 = vadd.f32 %v774_v12, %v453_v40  ;;  %2838 = vmatmul.mubr.msk.bf16.gmra.mxu0 %vm1361_vm0, %v1332_v6  ;;  %v715_v61 = vsel %vm651_vm10, 1.0, %v3123_v49  ;;  %vm649_vm11 = vcmp.ge.f32.partialorder %v466_v5, 0.0 }
 0x118   :  { %v3596_v19 = vpop.f32.mrf.mxu0  ;;  %v779_v13 = vmul.f32 1e-06, %v715_v61  ;;  %vm652_vm12 = vcmp.ge.f32.partialorder %v2780_v56, 0.0  ;;  %v1084_v31 = vmul.f32 %v3545_v41, %v1020_v32  ;;  %v713_v59 = vsel %vm649_vm11, 1.0, %v3123_v49 }
 0x119   :  { %v3004_v1 = vpop.eup %3003  ;;  %3019 = vrcp.f32 %v3599_v23  ;;  %v716_v40 = vsel %vm652_vm12, 1.0, %v3123_v49  ;;  %v960_v0 = vmul.f32 %v3593_v48, %v3517_v35  ;;  %v777_v41 = vmul.f32 1e-06, %v713_v59 }
 0x11a   :  { %v3604_v26 = vpop.f32.mrf.mxu0  ;;  %v3006_v18 = vpop.eup %3005  ;;  %v958_v20 = vmul.f32 %v3004_v1, %v3532_v2  ;;  %v3618_v45 = vadd.f32 %v2779_v21, %v779_v13  ;;  %v780_v32 = vmul.f32 1e-06, %v716_v40  ;;  %v1081_v12 = vmul.f32 %v3540_v3, %v1017_v51 }
 0x11b   :  { %v3008_v55 = vpop.eup %3007  ;;  %v963_v30 = vmul.f32 %v3006_v18, %v3534_v27  ;;  %v1082_v6 = vmul.f32 %v3549_v57, %v1018_v10  ;;  %v1087_v61 = vmul.f32 %v3558_v50, %v1023_v14  ;;  %v1021_v7 = vsub.f32 2.0, %v957_v53 }
 0x11c   :  { %v3620_v24 = vpop.f32.mrf.mxu0  ;;  %v1022_v22 = vsub.f32 2.0, %v958_v20  ;;  %v2381_v2 = vunpack.c.l.bf16 %v3613_v9  ;;  %v1276_v13 = vmul.f32 %v2330_v28, %v1084_v31  ;;  %v3631_v59 = vadd.f32 %v777_v41, %v466_v5 }
 0x11d   :  { %v3010_v21 = vpop.eup %3009  ;;  %v1273_v27 = vmul.f32 %v2325_v39, %v1081_v12  ;;  %v4188_v3 = vunpack.c.h.bf16 %v3386_v25  ;;  %v4189_v50 = vunpack.c.l.bf16 %v3357_v8  ;;  %v961_v14 = vmul.f32 %v3008_v55, %v3537_v60 }
 0x11e   :  { %v3626_v35 = vpop.f32.mrf.mxu0  ;;  %v3012_v51 = vpop.eup %3011  ;;  %v964_v53 = vmul.f32 %v3010_v21, %v3556_v29  ;;  %3021 = vrcp.f32 %v3618_v45  ;;  %v1024_v28 = vsub.f32 2.0, %v960_v0  ;;  %v1027_v5 = vsub.f32 2.0, %v963_v30 }
 0x11f   :  { %v1274_v57 = vmul.f32 %v4188_v3, %v1082_v6  ;;  %v1275_v10 = vmul.f32 %v4189_v50, %v1083_v46  ;;  %v3644_v31 = vadd.f32 %v2780_v56, %v780_v32  ;;  %v4190_v25 = vunpack.c.l.bf16 %v3369_v16 }
 0x120   :  { %v3642_v40 = vpop.f32.mrf.mxu0  ;;  %v1085_v41 = vmul.f32 %v3000_v38, %v1021_v7  ;;  %v1086_v8 = vmul.f32 %v3004_v1, %v1022_v22  ;;  %vm650_vm13 = vcmp.ge.f32.partialorder %v3596_v19, 0.0  ;;  %v962_v29 = vmul.f32 %v3012_v51, %v3560_v62 }
 0x121   :  { %v1333_v39 = vpack.c.bf16 %v1274_v57, %v1273_v27  ;;  %v3648_v20 = vmul.f32 %v4190_v25, %v1087_v61  ;;  %3023 = vrcp.f32 %v3631_v59  ;;  %v714_v46 = vsel %vm650_vm13, 1.0, %v3123_v49  ;;  %v3014_v0 = vpop.eup %3013 }
 0x122   :  { %v3651_v60 = vpop.f32.mrf.mxu0  ;;  %v1334_v56 = vpack.c.bf16 %v1276_v13, %v1275_v10  ;;  %v1025_v30 = vsub.f32 2.0, %v961_v14  ;;  %v1028_v32 = vsub.f32 2.0, %v964_v53  ;;  %v778_v12 = vmul.f32 1e-06, %v714_v46 }
 0x123   :  { %2841 = vmatprep.mubr.msk.bf16.mxu1 %vm1361_vm0, %v1333_v39  ;;  %vm655_vm14 = vcmp.ge.f32.partialorder %v3604_v26, 0.0  ;;  %v3016_v7 = vpop.eup %3015  ;;  %v1088_v38 = vmul.f32 %v3593_v48, %v1024_v28  ;;  %v1091_v1 = vmul.f32 %v3006_v18, %v1027_v5  ;;  %3025 = vrcp.f32 %v3644_v31 }
 0x124   :  { %v3658_v22 = vpop.f32.mrf.mxu0  ;;  %2842 = vmatmul.mubr.msk.bf16.vlgmr.msra.gmra.mxu1 %vm1361_vm0, %v1334_v56  ;;  %vm653_vm15 = vcmp.ge.f32.partialorder %v3620_v24, 0.0  ;;  %v3018_v62 = vpop.eup %3017  ;;  %v4191_v6 = vunpack.c.h.bf16 %v3374_v17  ;;  %v965_v13 = vmul.f32 %v3016_v7, %v3584_v11  ;;  %v3668_v27 = vadd.f32 %v778_v12, %v3596_v19 }
 0x125   :  { %v719_v3 = vsel %vm655_vm14, 1.0, %v3123_v49  ;;  %v1026_v48 = vsub.f32 2.0, %v962_v29  ;;  %v967_v18 = vmul.f32 %v3014_v0, %v3582_v58  ;;  %v968_v50 = vmul.f32 %v3018_v62, %v3586_v44 }
 0x126   :  { %v1278_v61 = vmul.f32 %v4191_v6, %v1086_v8  ;;  %v3671_v57 = vpop.f32.mrf.mxu0  ;;  %v717_v10 = vsel %vm653_vm15, 1.0, %v3123_v49  ;;  %v3020_v14 = vpop.eup %3019  ;;  %v1089_v53 = vmul.f32 %v3008_v55, %v1025_v30  ;;  %v1092_v28 = vmul.f32 %v3010_v21, %v1028_v32 }
 0x127   :  { %3027 = vrcp.f32 %v3668_v27  ;;  %v781_v11 = vmul.f32 1e-06, %v717_v10  ;;  %v1029_v19 = vsub.f32 2.0, %v965_v13  ;;  %v966_v39 = vmul.f32 %v3020_v14, %v3599_v23 }
 0x128   :  { %v3677_v5 = vpop.f32.mrf.mxu0  ;;  %v783_v25 = vmul.f32 1e-06, %v719_v3  ;;  %vm656_vm1 = vcmp.ge.f32.partialorder %v3626_v35, 0.0  ;;  %v4192_v58 = vunpack.c.l.bf16 %v3374_v17  ;;  %v4193_v44 = vunpack.c.h.bf16 %v3369_v16 }
 0x129   :  { %v1032_v46 = vsub.f32 2.0, %v968_v50  ;;  %v720_v55 = vsel %vm656_vm1, 1.0, %v3123_v49  ;;  %v1090_v56 = vmul.f32 %v3012_v51, %v1026_v48  ;;  %v1031_v30 = vsub.f32 2.0, %v967_v18 }
 0x12a   :  { %v1277_v8 = vmul.f32 %v4192_v58, %v1085_v41  ;;  %v1280_v29 = vmul.f32 %v4193_v44, %v1088_v38  ;;  %v3686_v21 = vpop.f32.mrf.mxu0  ;;  %v3689_v32 = vadd.f32 %v781_v11, %v3620_v24  ;;  %v784_v23 = vmul.f32 1e-06, %v720_v55 }
 0x12b   :  { %v4194_v12 = vunpack.c.l.bf16 %v3398_v33  ;;  %v4195_v17 = vunpack.c.l.bf16 %v3403_v34  ;;  %v1030_v16 = vsub.f32 2.0, %v966_v39  ;;  %v3699_v3 = vpop.eup %3021  ;;  %v4196_v51 = vunpack.c.h.bf16 %v3398_v33 }
 0x12c   :  { %v1335_v38 = vpack.c.bf16 %v1278_v61, %v1277_v8  ;;  %v3697_v13 = vpop.f32.mrf.mxu0  ;;  %v1093_v18 = vmul.f32 %v3016_v7, %v1029_v19  ;;  %v3704_v24 = vadd.f32 %v3604_v26, %v783_v25  ;;  %vm654_vm2 = vcmp.ge.f32.partialorder %v3642_v40, 0.0 }
 0x12d   :  { %v3693_v6 = vmul.f32 %v4194_v12, %v1091_v1  ;;  %v1281_v41 = vmul.f32 %v4195_v17, %v1089_v53  ;;  %v1284_v48 = vmul.f32 %v4196_v51, %v1092_v28  ;;  %v1096_v1 = vmul.f32 %v3018_v62, %v1032_v46 }
 0x12e   :  { %v3708_v50 = vadd.f32 %v3626_v35, %v784_v23  ;;  %2845 = vmatprep.mubr.msk.bf16.mxu1 %vm1361_vm0, %v1335_v38  ;;  %v718_v61 = vsel %vm654_vm2, 1.0, %v3123_v49  ;;  %v1336_v10 = vpack.c.bf16 %v1280_v29, %v3648_v20  ;;  %v3713_v53 = vpop.f32.mrf.mxu0  ;;  %v4197_v33 = vunpack.c.h.bf16 %v3403_v34  ;;  %v3024_v62 = vpop.eup %3023 }
 0x12f   :  { %v3717_v28 = vmul.f32 %v3014_v0, %v1031_v30  ;;  %3029 = vrcp.f32 %v3689_v32  ;;  %v782_v26 = vmul.f32 1e-06, %v718_v61  ;;  %v1094_v11 = vmul.f32 %v3020_v14, %v1030_v16 }
 0x130   :  { %v1282_v7 = vmul.f32 %v4197_v33, %v1090_v56  ;;  %v3722_v35 = vmul.f32 %v3699_v3, %v3618_v45  ;;  %2846 = vmatmul.mubr.msk.bf16.gmra.mxu1 %vm1361_vm0, %v1336_v10  ;;  %vm659_vm3 = vcmp.ge.f32.partialorder %v3651_v60, 0.0  ;;  %vm657_vm4 = vcmp.ge.f32.partialorder %v3658_v22, 0.0  ;;  %v3727_v20 = vpop.f32.mrf.mxu0  ;;  %v3735_v19 = vpop.eup %3025 }
 0x131   :  { %3031 = vrcp.f32 %v3704_v24  ;;  %v3731_v34 = vadd.f32 %v782_v26, %v3642_v40  ;;  %v723_v0 = vsel %vm659_vm3, 1.0, %v3123_v49  ;;  %v721_v14 = vsel %vm657_vm4, 1.0, %v3123_v49 }
 0x132   :  { %v4198_v45 = vunpack.c.l.bf16 %v3423_v47  ;;  %v4199_v25 = vunpack.c.h.bf16 %v3415_v42  ;;  %3033 = vrcp.f32 %v3708_v50  ;;  %v785_v8 = vmul.f32 1e-06, %v721_v14  ;;  %v3744_v44 = vpop.f32.mrf.mxu0 }
 0x133   :  { %v969_v40 = vmul.f32 %v3024_v62, %v3631_v59  ;;  %3035 = vrcp.f32 %v3731_v34  ;;  %vm660_vm5 = vcmp.ge.f32.partialorder %v3671_v57, 0.0  ;;  %v1337_v29 = vpack.c.bf16 %v1282_v7, %v1281_v41 }
 0x134   :  { %v1285_v39 = vmul.f32 %v4198_v45, %v1093_v18  ;;  %v3741_v58 = vmul.f32 %v4199_v25, %v1096_v1  ;;  %v4200_v46 = vunpack.c.h.bf16 %v3423_v47  ;;  %v1035_v56 = vsub.f32 2.0, %v3722_v35  ;;  %v3753_v12 = vpop.f32.mrf.mxu0  ;;  %v3028_v17 = vpop.eup %3027 }
 0x135   :  { %v787_v30 = vmul.f32 1e-06, %v723_v0  ;;  %v724_v23 = vsel %vm660_vm5, 1.0, %v3123_v49  ;;  %v972_v16 = vmul.f32 %v3735_v19, %v3644_v31  ;;  %v3758_v59 = vadd.f32 %v785_v8, %v3658_v22  ;;  %2849 = vmatprep.mubr.msk.bf16.mxu1 %vm1361_vm0, %v1337_v29 }
 0x136   :  { %v1286_v55 = vmul.f32 %v4200_v46, %v1094_v11  ;;  %v788_v38 = vmul.f32 1e-06, %v724_v23  ;;  %vm658_vm6 = vcmp.ge.f32.partialorder %v3677_v5, 0.0  ;;  %v970_v47 = vmul.f32 %v3028_v17, %v3668_v27  ;;  %v3766_v18 = vpop.f32.mrf.mxu0 }
 0x137   :  { %v722_v41 = vsel %vm658_vm6, 1.0, %v3123_v49  ;;  %v1338_v51 = vpack.c.bf16 %v1284_v48, %v3693_v6  ;;  %vm663_vm7 = vcmp.ge.f32.partialorder %v3686_v21, 0.0  ;;  %v1033_v1 = vsub.f32 2.0, %v969_v40 }
 0x138   :  { %v3769_v31 = vadd.f32 %v3671_v57, %v788_v38  ;;  %v786_v22 = vmul.f32 1e-06, %v722_v41  ;;  %v727_v61 = vsel %vm663_vm7, 1.0, %v3123_v49  ;;  %v1034_v10 = vsub.f32 2.0, %v970_v47  ;;  %v3777_v6 = vpop.f32.mrf.mxu0 }
 0x139   :  { %v3773_v33 = vadd.f32 %v3651_v60, %v787_v30  ;;  %2850 = vmatmul.mubr.msk.bf16.gmra.mxu1 %vm1361_vm0, %v1338_v51  ;;  %v791_v27 = vmul.f32 1e-06, %v727_v61  ;;  %vm661_vm8 = vcmp.ge.f32.partialorder %v3697_v13, 0.0  ;;  %3037 = vrcp.f32 %v3758_v59 }
 0x13a   :  { %v3781_v48 = vadd.f32 %v786_v22, %v3677_v5  ;;  %v725_v57 = vsel %vm661_vm8, 1.0, %v3123_v49  ;;  %vm664_vm9 = vcmp.ge.f32.partialorder %v3713_v53, 0.0  ;;  %v1036_v7 = vsub.f32 2.0, %v972_v16  ;;  %v3789_v11 = vpop.f32.mrf.mxu0  ;;  %v3842_v22 = vld [vmem:[%s4185_s1 + $0xa8] sm:$0xff]  }
 0x13b   :  { %v1098_v26 = vmul.f32 %v3028_v17, %v1034_v10  ;;  %3039 = vrcp.f32 %v3769_v31  ;;  %v3787_v60 = vadd.f32 %v3686_v21, %v791_v27  ;;  %v789_v35 = vmul.f32 1e-06, %v725_v57 }
 0x13c   :  { %3041 = vrcp.f32 %v3781_v48  ;;  %v728_v0 = vsel %vm664_vm9, 1.0, %v3123_v49  ;;  %v1339_v5 = vpack.c.bf16 %v1286_v55, %v1285_v39  ;;  %v3793_v14 = vpop.eup %3029  ;;  %v4201_v45 = vunpack.c.l.bf16 %v3415_v42  ;;  %v3800_v29 = vpop.f32.mrf.mxu0 }
 0x13d   :  { %v1097_v8 = vmul.f32 %v3024_v62, %v1033_v1  ;;  %v2386_v40 = vunpack.c.h.bf16 %v3574_v36  ;;  %v2382_v21 = vunpack.c.h.bf16 %v3613_v9  ;;  %3043 = vrcp.f32 %v3773_v33 }
 0x13e   :  { %v1287_v25 = vmul.f32 %v4201_v45, %v3717_v28  ;;  %v3804_v46 = vadd.f32 %v789_v35, %v3697_v13  ;;  %v792_v30 = vmul.f32 1e-06, %v728_v0  ;;  %2853 = vmatprep.mubr.msk.bf16.mxu1 %vm1361_vm0, %v1339_v5  ;;  %vm662_vm10 = vcmp.ge.f32.partialorder %v3727_v20, 0.0  ;;  %v3808_v39 = vpop.eup %3031  ;;  %v3815_v17 = vpop.f32.mrf.mxu0 }
 0x13f   :  { %v1099_v42 = vmul.f32 %v3699_v3, %v1035_v56  ;;  %v4202_v28 = vunpack.c.h.bf16 %v3437_v54  ;;  %v726_v55 = vsel %vm662_vm10, 1.0, %v3123_v49  ;;  %v3034_v13 = vpop.eup %3033  ;;  %v1100_v16 = vmul.f32 %v3735_v19, %v1036_v7 }
 0x140   :  { %v1340_v23 = vpack.c.bf16 %v3741_v58, %v1287_v25  ;;  %v973_v38 = vmul.f32 %v3793_v14, %v3689_v32  ;;  %3045 = vrcp.f32 %v3787_v60  ;;  %v790_v47 = vmul.f32 1e-06, %v726_v55  ;;  %v3036_v41 = vpop.eup %3035  ;;  %v3827_v58 = vpop.f32.mrf.mxu0 }
 0x141   :  { %v1290_v62 = vmul.f32 %v4202_v28, %v1098_v26  ;;  %v4203_v3 = vunpack.c.l.bf16 %v3437_v54  ;;  %3047 = vrcp.f32 %v3804_v46  ;;  %vm667_vm11 = vcmp.ge.f32.partialorder %v3744_v44, 0.0 }
 0x142   :  { %2854 = vmatmul.mubr.msk.bf16.gmra.mxu1 %vm1361_vm0, %v1340_v23  ;;  %vm665_vm12 = vcmp.ge.f32.partialorder %v3753_v12, 0.0  ;;  %v974_v19 = vmul.f32 %v3036_v41, %v3731_v34  ;;  %v3831_v32 = vadd.f32 %v3713_v53, %v792_v30  ;;  %v3834_v51 = vadd.f32 %v790_v47, %v3727_v20  ;;  %v3845_v10 = vpop.f32.mrf.mxu0  ;;  %v3873_v23 = vld [vmem:[%s4185_s1 + $0xb8] sm:$0xff]  }
 0x143   :  { %v1289_v56 = vmul.f32 %v4203_v3, %v1097_v8  ;;  %vm668_vm13 = vcmp.ge.f32.partialorder %v3766_v18, 0.0  ;;  %v976_v54 = vmul.f32 %v3034_v13, %v3708_v50  ;;  %v731_v1 = vsel %vm667_vm11, 1.0, %v3123_v49  ;;  %v3855_v50 = vld [vmem:[%s4185_s1 + $0xa0] sm:$0xff]  }
 0x144   :  { %v729_v61 = vsel %vm665_vm12, 1.0, %v3123_v49  ;;  %v4204_v53 = vunpack.c.h.bf16 %v3432_v52  ;;  %v975_v27 = vmul.f32 %v3808_v39, %v3704_v24  ;;  %v1037_v57 = vsub.f32 2.0, %v973_v38  ;;  %v3860_v0 = vpop.f32.mrf.mxu0 }
 0x145   :  { %v1341_v34 = vpack.c.bf16 %v1290_v62, %v1289_v56  ;;  %3049 = vrcp.f32 %v3834_v51  ;;  %v1038_v7 = vsub.f32 2.0, %v974_v19  ;;  %v795_v26 = vmul.f32 1e-06, %v731_v1 }
 0x146   :  { %v1292_v20 = vmul.f32 %v4204_v53, %v1100_v16  ;;  %v732_v35 = vsel %vm668_vm13, 1.0, %v3123_v49  ;;  %vm666_vm14 = vcmp.ge.f32.partialorder %v3777_v6, 0.0  ;;  %3051 = vrcp.f32 %v3831_v32  ;;  %v3865_v25 = vpop.eup %3037  ;;  %v3878_v16 = vld [vmem:[%s4185_s1 + $0xb0] sm:$0xff]   ;;  %v3880_v38 = vpop.f32.mrf.mxu0 }
 0x147   :  { %2857 = vmatprep.mubr.msk.bf16.mxu1 %vm1361_vm0, %v1341_v34  ;;  %v793_v5 = vmul.f32 1e-06, %v729_v61  ;;  %v730_v45 = vsel %vm666_vm14, 1.0, %v3123_v49  ;;  %v4205_v8 = vunpack.c.l.bf16 %v3432_v52  ;;  %v1040_v28 = vsub.f32 2.0, %v976_v54 }
 0x148   :  { %v2389_v62 = vunpack.c.l.bf16 %v3855_v50  ;;  %v794_v55 = vmul.f32 1e-06, %v730_v45  ;;  %v3040_v47 = vpop.eup %3039  ;;  %v1039_v3 = vsub.f32 2.0, %v975_v27  ;;  %v796_v52 = vmul.f32 1e-06, %v732_v35  ;;  %v3888_v53 = vpop.f32.mrf.mxu0 }
 0x149   :  { %v1291_v30 = vmul.f32 %v4205_v8, %v1099_v42  ;;  %v2390_v56 = vunpack.c.h.bf16 %v3855_v50  ;;  %v3042_v19 = vpop.eup %3041  ;;  %v1101_v54 = vmul.f32 %v3793_v14, %v1037_v57  ;;  %v1102_v1 = vmul.f32 %v3036_v41, %v1038_v7 }
 0x14a   :  { %v3886_v61 = vadd.f32 %v3744_v44, %v795_v26  ;;  %v3891_v45 = vadd.f32 %v793_v5, %v3753_v12  ;;  %v3044_v24 = vpop.eup %3043  ;;  %v1104_v42 = vmul.f32 %v3034_v13, %v1040_v28  ;;  %v978_v14 = vmul.f32 %v3042_v19, %v3781_v48  ;;  %v3902_v44 = vpop.f32.mrf.mxu0 }
 0x14b   :  { %v1342_v34 = vpack.c.bf16 %v1292_v20, %v1291_v30  ;;  %v3898_v41 = vadd.f32 %v794_v55, %v3777_v6  ;;  %vm671_vm15 = vcmp.ge.f32.partialorder %v3789_v11, 0.0  ;;  %v1103_v12 = vmul.f32 %v3808_v39, %v1039_v3 }
 0x14c   :  { %v977_v20 = vmul.f32 %v3865_v25, %v3758_v59  ;;  %v980_v57 = vmul.f32 %v3040_v47, %v3769_v31  ;;  %v3909_v13 = vadd.f32 %v3766_v18, %v796_v52  ;;  %v4206_v6 = vunpack.c.l.bf16 %v3457_v15  ;;  %v3927_v55 = vpop.f32.mrf.mxu0 }
 0x14d   :  { %2858 = vmatmul.mubr.msk.bf16.gmra.mxu1 %vm1361_vm0, %v1342_v34  ;;  %v3911_v48 = vpop.eup %3045  ;;  %v4207_v26 = vunpack.c.h.bf16 %v3457_v15  ;;  %3053 = vrcp.f32 %v3886_v61  ;;  %vm669_vm1 = vcmp.ge.f32.partialorder %v3800_v29, 0.0  ;;  %v979_v59 = vmul.f32 %v3044_v24, %v3773_v33 }
 0x14e   :  { %v1293_v7 = vmul.f32 %v4206_v6, %v1101_v54  ;;  %v3048_v39 = vpop.eup %3047  ;;  %3055 = vrcp.f32 %v3891_v45  ;;  %v735_v18 = vsel %vm671_vm15, 1.0, %v3123_v49  ;;  %vm672_vm2 = vcmp.ge.f32.partialorder %v3815_v17, 0.0 }
 0x14f   :  { %v1294_v5 = vmul.f32 %v4207_v26, %v1102_v1  ;;  %v4208_v31 = vunpack.c.h.bf16 %v3446_v4  ;;  %v1042_v28 = vsub.f32 2.0, %v978_v14  ;;  %3057 = vrcp.f32 %v3898_v41 }
 0x150   :  { %v733_v15 = vsel %vm669_vm1, 1.0, %v3123_v49  ;;  %v4209_v3 = vunpack.c.l.bf16 %v3446_v4  ;;  %v1041_v33 = vsub.f32 2.0, %v977_v20  ;;  %v1044_v54 = vsub.f32 2.0, %v980_v57  ;;  %v3940_v20 = vpop.f32.mrf.mxu0 }
 0x151   :  { %v1296_v30 = vmul.f32 %v4208_v31, %v1104_v42  ;;  %3059 = vrcp.f32 %v3909_v13  ;;  %v981_v34 = vmul.f32 %v3048_v39, %v3804_v46  ;;  %v799_v6 = vmul.f32 1e-06, %v735_v18 }
 0x152   :  { %v1295_v52 = vmul.f32 %v4209_v3, %v1103_v12  ;;  %v3050_v1 = vpop.eup %3049  ;;  %v736_v42 = vsel %vm672_vm2, 1.0, %v3123_v49  ;;  %v1343_v14 = vpack.c.bf16 %v1294_v5, %v1293_v7  ;;  %v1043_v26 = vsub.f32 2.0, %v979_v59  ;;  %v3957_v3 = vpop.f32.mrf.mxu0 }
 0x153   :  { %v982_v31 = vmul.f32 %v3050_v1, %v3834_v51  ;;  %v797_v8 = vmul.f32 1e-06, %v733_v15  ;;  %v2398_v27 = vunpack.c.h.bf16 %v3878_v16  ;;  %v3052_v35 = vpop.eup %3051  ;;  %v1106_v4 = vmul.f32 %v3042_v19, %v1042_v28 }
 0x154   :  { %v983_v12 = vmul.f32 %v3911_v48, %v3787_v60  ;;  %2861 = vmatprep.mubr.msk.bf16.mxu1 %vm1361_vm0, %v1343_v14  ;;  %vm670_vm3 = vcmp.ge.f32.partialorder %v3827_v58, 0.0  ;;  %v1344_v46 = vpack.c.bf16 %v1296_v30, %v1295_v52  ;;  %v1105_v57 = vmul.f32 %v3865_v25, %v1041_v33 }
 0x155   :  { %v1108_v7 = vmul.f32 %v3040_v47, %v1044_v54  ;;  %v1046_v5 = vsub.f32 2.0, %v982_v31  ;;  %v800_v51 = vmul.f32 1e-06, %v736_v42  ;;  %v1045_v59 = vsub.f32 2.0, %v981_v34 }
 0x156   :  { %v3944_v18 = vadd.f32 %v3789_v11, %v799_v6  ;;  %v734_v19 = vsel %vm670_vm3, 1.0, %v3123_v49  ;;  %2862 = vmatmul.mubr.msk.bf16.gmra.mxu1 %vm1361_vm0, %v1344_v46  ;;  %vm673_vm4 = vcmp.ge.f32.partialorder %v3860_v0, 0.0  ;;  %v984_v60 = vmul.f32 %v3052_v35, %v3831_v32 }
 0x157   :  { %v3951_v30 = vadd.f32 %v797_v8, %v3800_v29  ;;  %v798_v28 = vmul.f32 1e-06, %v734_v19  ;;  %vm676_vm5 = vcmp.ge.f32.partialorder %v3880_v38, 0.0  ;;  %v1107_v25 = vmul.f32 %v3044_v24, %v1043_v26  ;;  %v3969_v29 = vld [vmem:[%s4185_s1 + $0xc8] sm:$0xff]  }
 0x158   :  { %v1298_v47 = vmul.f32 %v2374_v43, %v1106_v4  ;;  %v1047_v11 = vsub.f32 2.0, %v983_v12  ;;  %v737_v15 = vsel %vm673_vm4, 1.0, %v3123_v49  ;;  %v1110_v52 = vmul.f32 %v3050_v1, %v1046_v5  ;;  %v3987_v4 = vpop.f32.mrf.mxu0 }
 0x159   :  { %v3960_v33 = vadd.f32 %v3815_v17, %v800_v51  ;;  %v3963_v32 = vadd.f32 %v798_v28, %v3827_v58  ;;  %vm675_vm6 = vcmp.ge.f32.partialorder %v3845_v10, 0.0  ;;  %v1109_v43 = vmul.f32 %v3048_v39, %v1045_v59 }
 0x15a   :  { %3061 = vrcp.f32 %v3944_v18  ;;  %v801_v24 = vmul.f32 1e-06, %v737_v15  ;;  %v740_v8 = vsel %vm676_vm5, 1.0, %v3123_v49  ;;  %v3973_v54 = vpop.eup %3053  ;;  %v4210_v17 = vunpack.c.l.bf16 %v3491_v37 }
 0x15b   :  { %v4211_v58 = vunpack.c.h.bf16 %v3469_v63  ;;  %v1048_v6 = vsub.f32 2.0, %v984_v60  ;;  %3063 = vrcp.f32 %v3951_v30  ;;  %v3980_v42 = vpop.eup %3055  ;;  %v4212_v39 = vunpack.c.l.bf16 %v3469_v63 }
 0x15c   :  { %v1297_v1 = vmul.f32 %v4210_v17, %v1105_v57  ;;  %3065 = vrcp.f32 %v3963_v32  ;;  %v739_v26 = vsel %vm675_vm6, 1.0, %v3123_v49  ;;  %v2409_v31 = vunpack.c.l.bf16 %v3969_v29  ;;  %v3058_v37 = vpop.eup %3057 }
 0x15d   :  { %v1300_v34 = vmul.f32 %v4211_v58, %v1108_v7  ;;  %v1299_v14 = vmul.f32 %v4212_v39, %v1107_v25  ;;  %v1302_v12 = vmul.f32 %v2382_v21, %v1110_v52  ;;  %3067 = vrcp.f32 %v3960_v33 }
 0x15e   :  { %v804_v46 = vmul.f32 1e-06, %v740_v8  ;;  %v1345_v57 = vpack.c.bf16 %v1298_v47, %v1297_v1  ;;  %v3060_v7 = vpop.eup %3059  ;;  %v1111_v63 = vmul.f32 %v3911_v48, %v1047_v11  ;;  %v1301_v5 = vmul.f32 %v2381_v2, %v1109_v43 }
 0x15f   :  { %v3996_v51 = vadd.f32 %v801_v24, %v3860_v0  ;;  %vm674_vm7 = vcmp.ge.f32.partialorder %v3888_v53, 0.0  ;;  %v1112_v59 = vmul.f32 %v3052_v35, %v1048_v6  ;;  %v803_v19 = vmul.f32 1e-06, %v739_v26  ;;  %v4006_v0 = vpop.f32.mrf.mxu0 }
 0x160   :  { %2865 = vmatprep.mubr.msk.bf16.mxu1 %vm1361_vm0, %v1345_v57  ;;  %v738_v21 = vsel %vm674_vm7, 1.0, %v3123_v49  ;;  %v1346_v60 = vpack.c.bf16 %v1300_v34, %v1299_v14  ;;  %v987_v28 = vmul.f32 %v3973_v54, %v3886_v61  ;;  %v985_v48 = vmul.f32 %v3980_v42, %v3891_v45 }
 0x161   :  { %v986_v9 = vmul.f32 %v3058_v37, %v3898_v41  ;;  %v802_v2 = vmul.f32 1e-06, %v738_v21  ;;  %v4009_v25 = vadd.f32 %v3880_v38, %v804_v46  ;;  %vm677_vm8 = vcmp.ge.f32.partialorder %v3927_v55, 0.0  ;;  %v4035_v15 = vpop.f32.mrf.mxu0 }
 0x162   :  { %2866 = vmatmul.mubr.msk.bf16.gmra.mxu1 %vm1361_vm0, %v1346_v60  ;;  %vm680_vm9 = vcmp.ge.f32.partialorder %v3940_v20, 0.0  ;;  %v1347_v35 = vpack.c.bf16 %v1302_v12, %v1301_v5  ;;  %v988_v61 = vmul.f32 %v3060_v7, %v3909_v13  ;;  %3069 = vrcp.f32 %v3996_v51 }
 0x163   :  { %v4017_v45 = vadd.f32 %v802_v2, %v3888_v53  ;;  %vm679_vm10 = vcmp.ge.f32.partialorder %v3902_v44, 0.0  ;;  %v1304_v38 = vmul.f32 %v2386_v40, %v1112_v59  ;;  %v4023_v41 = vadd.f32 %v3845_v10, %v803_v19  ;;  %v4031_v53 = vld [vmem:[%s4185_s1 + $0xc0] sm:$0xff]  }
 0x164   :  { %v741_v47 = vsel %vm677_vm8, 1.0, %v3123_v49  ;;  %2869 = vmatprep.mubr.msk.bf16.mxu1 %vm1361_vm0, %v1347_v35  ;;  %vm678_vm11 = vcmp.ge.f32.partialorder %v3957_v3, 0.0  ;;  %v1051_v13 = vsub.f32 2.0, %v987_v28  ;;  %v1050_v11 = vsub.f32 2.0, %v986_v9 }
 0x165   :  { %3071 = vrcp.f32 %v4017_v45  ;;  %v744_v40 = vsel %vm680_vm9, 1.0, %v3123_v49  ;;  %v743_v10 = vsel %vm679_vm10, 1.0, %v3123_v49  ;;  %v805_v52 = vmul.f32 1e-06, %v741_v47 }
 0x166   :  { %3073 = vrcp.f32 %v4009_v25  ;;  %v742_v43 = vsel %vm678_vm11, 1.0, %v3123_v49  ;;  %v4213_v24 = vunpack.c.l.bf16 %v3574_v36  ;;  %v1049_v17 = vsub.f32 2.0, %v985_v48 }
 0x167   :  { %v1052_v1 = vsub.f32 2.0, %v988_v61  ;;  %v806_v58 = vmul.f32 1e-06, %v742_v43  ;;  %v3062_v34 = vpop.eup %3061  ;;  %3075 = vrcp.f32 %v4023_v41  ;;  %v2405_v6 = vunpack.c.l.bf16 %v4031_v53 }
 0x168   :  { %v1303_v8 = vmul.f32 %v4213_v24, %v1111_v63  ;;  %v4045_v39 = vadd.f32 %v805_v52, %v3927_v55  ;;  %v808_v14 = vmul.f32 1e-06, %v744_v40  ;;  %v3064_v26 = vpop.eup %3063  ;;  %v1114_v12 = vmul.f32 %v3058_v37, %v1050_v11  ;;  %v597_v63 = vpop.f32.mrf.mxu0 }
 0x169   :  { %v807_v46 = vmul.f32 1e-06, %v743_v10  ;;  %v4048_v57 = vadd.f32 %v806_v58, %v3957_v3  ;;  %v3066_v5 = vpop.eup %3065  ;;  %v1115_v59 = vmul.f32 %v3973_v54, %v1051_v13  ;;  %v2410_v19 = vunpack.c.h.bf16 %v3969_v29 }
 0x16a   :  { %v1348_v36 = vpack.c.bf16 %v1304_v38, %v1303_v8  ;;  %v2406_v21 = vunpack.c.h.bf16 %v4031_v53  ;;  %3077 = vrcp.f32 %v4045_v39  ;;  %v3068_v55 = vpop.eup %3067  ;;  %v1113_v60 = vmul.f32 %v3980_v42, %v1049_v17  ;;  %v4071_v9 = vpop.f32.mrf.mxu0 }
 0x16b   :  { %v1116_v28 = vmul.f32 %v3060_v7, %v1052_v1  ;;  %v991_v37 = vmul.f32 %v3062_v34, %v3944_v18  ;;  %vm683_vm12 = vcmp.ge.f32.partialorder %v3987_v4, 0.0  ;;  %v989_v3 = vmul.f32 %v3064_v26, %v3951_v30 }
 0x16c   :  { %2870 = vmatmul.mubr.msk.bf16.gmra.mxu1 %vm1361_vm0, %v1348_v36  ;;  %v4060_v54 = vadd.f32 %v3940_v20, %v808_v14  ;;  %3079 = vrcp.f32 %v4048_v57  ;;  %vm681_vm13 = vcmp.ge.f32.partialorder %v4006_v0, 0.0  ;;  %v1306_v48 = vmul.f32 %v2390_v56, %v1114_v12 }
 0x16d   :  { %v990_v42 = vmul.f32 %v3066_v5, %v3963_v32  ;;  %v4068_v18 = vadd.f32 %v3902_v44, %v807_v46  ;;  %v745_v7 = vsel %vm681_vm13, 1.0, %v3123_v49  ;;  %v992_v30 = vmul.f32 %v3068_v55, %v3960_v33 }
 0x16e   :  { %v747_v20 = vsel %vm683_vm12, 1.0, %v3123_v49  ;;  %v809_v2 = vmul.f32 1e-06, %v745_v7  ;;  %vm684_vm14 = vcmp.ge.f32.partialorder %v4035_v15, 0.0  ;;  %v1305_v35 = vmul.f32 %v2389_v62, %v1113_v60  ;;  %v610_v62 = vpop.f32.mrf.mxu0 }
 0x16f   :  { %v4214_v56 = vunpack.c.h.bf16 %v3842_v22  ;;  %v1055_v61 = vsub.f32 2.0, %v991_v37  ;;  %v748_v44 = vsel %vm684_vm14, 1.0, %v3123_v49  ;;  %v3070_v38 = vpop.eup %3069  ;;  %v1053_v47 = vsub.f32 2.0, %v989_v3 }
 0x170   :  { %3081 = vrcp.f32 %v4060_v54  ;;  %v4083_v33 = vadd.f32 %v809_v2, %v4006_v0  ;;  %v812_v13 = vmul.f32 1e-06, %v748_v44  ;;  %v1054_v11 = vsub.f32 2.0, %v990_v42 }
 0x171   :  { %v1308_v32 = vmul.f32 %v4214_v56, %v1116_v28  ;;  %3083 = vrcp.f32 %v4068_v18  ;;  %v811_v40 = vmul.f32 1e-06, %v747_v20  ;;  %v1349_v50 = vpack.c.bf16 %v1306_v48, %v1305_v35 }
 0x172   :  { %v3072_v10 = vpop.eup %3071  ;;  %v4215_v52 = vunpack.c.l.bf16 %v3842_v22  ;;  %v1056_v24 = vsub.f32 2.0, %v992_v30  ;;  %3085 = vrcp.f32 %v4083_v33  ;;  %vm682_vm15 = vcmp.ge.f32.partialorder %v597_v63, 0.0 }
 0x173   :  { %v3074_v8 = vpop.eup %3073  ;;  %v993_v17 = vmul.f32 %v3070_v38, %v3996_v51  ;;  %v994_v0 = vmul.f32 %v3072_v10, %v4017_v45  ;;  %v4092_v1 = vadd.f32 %v4035_v15, %v812_v13  ;;  %2873 = vmatprep.mubr.msk.bf16.mxu1 %vm1361_vm0, %v1349_v50  ;;  %v746_v58 = vsel %vm682_vm15, 1.0, %v3123_v49  ;;  %v2816_v51 = vpop.f32.mrf.mxu0 }
 0x174   :  { %v1307_v43 = vmul.f32 %v4215_v52, %v1115_v59  ;;  %v1119_v14 = vmul.f32 %v3062_v34, %v1055_v61  ;;  %v1117_v12 = vmul.f32 %v3064_v26, %v1053_v47  ;;  %v810_v22 = vmul.f32 1e-06, %v746_v58  ;;  %v4096_v36 = vpop.eup %3075 }
 0x175   :  { %v1118_v59 = vmul.f32 %v3066_v5, %v1054_v11  ;;  %v1058_v60 = vsub.f32 2.0, %v994_v0  ;;  %v4099_v28 = vadd.f32 %v3987_v4, %v811_v40  ;;  %vm687_vm1 = vcmp.ge.f32.partialorder %v4071_v9, 0.0  ;;  %v613_v44 = vpop.f32.mrf.mxu0 }
 0x176   :  { %v1350_v46 = vpack.c.bf16 %v1308_v32, %v1307_v43  ;;  %v1120_v45 = vmul.f32 %v3068_v55, %v1056_v24  ;;  %v996_v15 = vmul.f32 %v3074_v8, %v4009_v25  ;;  %v4103_v37 = vadd.f32 %v810_v22, %v597_v63 }
 0x177   :  { %vm685_vm2 = vcmp.ge.f32.partialorder %v610_v62, 0.0  ;;  %v3078_v34 = vpop.eup %3077  ;;  %v1057_v26 = vsub.f32 2.0, %v993_v17  ;;  %3087 = vrcp.f32 %v4092_v1  ;;  %v751_v5 = vsel %vm687_vm1, 1.0, %v3123_v49 }
 0x178   :  { %2874 = vmatmul.mubr.msk.bf16.gmra.mxu1 %vm1361_vm0, %v1350_v46  ;;  %v749_v4 = vsel %vm685_vm2, 1.0, %v3123_v49  ;;  %v995_v3 = vmul.f32 %v4096_v36, %v4023_v41  ;;  %3089 = vrcp.f32 %v4103_v37  ;;  %vm688_vm3 = vcmp.ge.f32.partialorder %v2816_v51, 0.0 }
 0x179   :  { %v813_v55 = vmul.f32 1e-06, %v749_v4  ;;  %v3080_v25 = vpop.eup %3079  ;;  %v1310_v63 = vmul.f32 %v2398_v27, %v1118_v59  ;;  %v1122_v48 = vmul.f32 %v3072_v10, %v1058_v60  ;;  %v997_v42 = vmul.f32 %v3078_v34, %v4045_v39  ;;  %v2622_v4 = vld [vmem:[%s4185_s1 + $0xe0] sm:$0xff]  }
 0x17a   :  { %3091 = vrcp.f32 %v4099_v28  ;;  %v998_v7 = vmul.f32 %v3080_v25, %v4048_v57  ;;  %v815_v30 = vmul.f32 1e-06, %v751_v5  ;;  %v752_v41 = vsel %vm688_vm3, 1.0, %v3123_v49  ;;  %v2621_v5 = vld [vmem:[%s4185_s1 + $0xd8] sm:$0xff]  }
 0x17b   :  { %v4117_v20 = vadd.f32 %v813_v55, %v610_v62  ;;  %v4216_v2 = vunpack.c.l.bf16 %v3878_v16  ;;  %v1121_v56 = vmul.f32 %v3070_v38, %v1057_v26  ;;  %v1060_v32 = vsub.f32 2.0, %v996_v15  ;;  %v2620_v16 = vld [vmem:[%s4185_s1 + $0xd0] sm:$0xff]  }
 0x17c   :  { %v816_v61 = vmul.f32 1e-06, %v752_v41  ;;  %v4217_v27 = vunpack.c.l.bf16 %v3873_v23  ;;  %v4218_v39 = vunpack.c.h.bf16 %v3873_v23  ;;  %v1062_v11 = vsub.f32 2.0, %v998_v7 }
 0x17d   :  { %v1309_v35 = vmul.f32 %v4216_v2, %v1117_v12  ;;  %3093 = vrcp.f32 %v4117_v20  ;;  %v3082_v57 = vpop.eup %3081  ;;  %v1314_v40 = vmul.f32 %v2406_v21, %v1122_v48  ;;  %v1061_v50 = vsub.f32 2.0, %v997_v42 }
 0x17e   :  { %v1311_v47 = vmul.f32 %v4217_v27, %v1119_v14  ;;  %v1312_v13 = vmul.f32 %v4218_v39, %v1120_v45  ;;  %v4132_v38 = vadd.f32 %v2816_v51, %v816_v61  ;;  %v3084_v10 = vpop.eup %3083  ;;  %v1059_v52 = vsub.f32 2.0, %v995_v3 }
 0x17f   :  { %v1351_v62 = vpack.c.bf16 %v1310_v63, %v1309_v35  ;;  %v2414_v43 = vunpack.c.h.bf16 %v2620_v16  ;;  %v4135_v23 = vadd.f32 %v4071_v9, %v815_v30  ;;  %vm686_vm4 = vcmp.ge.f32.partialorder %v613_v44, 0.0  ;;  %v3086_v24 = vpop.eup %3085 }
 0x180   :  { %v1313_v17 = vmul.f32 %v2405_v6, %v1121_v56  ;;  %v1124_v21 = vmul.f32 %v3074_v8, %v1060_v32  ;;  %v1126_v0 = vmul.f32 %v3080_v25, %v1062_v11  ;;  %v750_v58 = vsel %vm686_vm4, 1.0, %v3123_v49 }
 0x181   :  { %2877 = vmatprep.mubr.msk.bf16.mxu1 %vm1361_vm0, %v1351_v62  ;;  %v1000_v14 = vmul.f32 %v3082_v57, %v4060_v54  ;;  %3095 = vrcp.f32 %v4132_v38  ;;  %v814_v12 = vmul.f32 1e-06, %v750_v58  ;;  %v1352_v22 = vpack.c.bf16 %v1312_v13, %v1311_v47  ;;  %v2623_v13 = vld [vmem:[%s4185_s1 + $0xe8] sm:$0xff]  }
 0x182   :  { %v1125_v46 = vmul.f32 %v3078_v34, %v1061_v50  ;;  %v2413_v9 = vunpack.c.l.bf16 %v2620_v16  ;;  %v1001_v59 = vmul.f32 %v3086_v24, %v4083_v33  ;;  %v1353_v60 = vpack.c.bf16 %v1314_v40, %v1313_v17  ;;  %v2624_v16 = vld [vmem:[%s4185_s1 + $0xf0] sm:$0xff]  }
 0x183   :  { %v1123_v53 = vmul.f32 %v4096_v36, %v1059_v52  ;;  %v999_v6 = vmul.f32 %v3084_v10, %v4068_v18  ;;  %3097 = vrcp.f32 %v4135_v23  ;;  %v878_v8 = vadd.f32 %v814_v12, %v613_v44  ;;  %2878 = vmatmul.mubr.msk.bf16.gmra.mxu1 %vm1361_vm0, %v1352_v22 }
 0x184   :  { %v1318_v49 = vmul.f32 %v2414_v43, %v1126_v0  ;;  %2881 = vmatprep.mubr.msk.bf16.mxu1 %vm1361_vm0, %v1353_v60  ;;  %v3088_v54 = vpop.eup %3087  ;;  %v1316_v51 = vmul.f32 %v2410_v19, %v1124_v21  ;;  %v1064_v45 = vsub.f32 2.0, %v1000_v14  ;;  %v1317_v15 = vmul.f32 %v2413_v9, %v1125_v46 }
 0x185   :  { %3099 = vrcp.f32 %v878_v8  ;;  %v3090_v33 = vpop.eup %3089  ;;  %v1065_v34 = vsub.f32 2.0, %v1001_v59  ;;  %v1315_v18 = vmul.f32 %v2409_v31, %v1123_v53  ;;  %v1063_v26 = vsub.f32 2.0, %v999_v6 }
 0x186   :  { %v1002_v19 = vmul.f32 %v3090_v33, %v4103_v37  ;;  %v2418_v3 = vunpack.c.h.bf16 %v2621_v5  ;;  %v2422_v55 = vunpack.c.h.bf16 %v2622_v4  ;;  %v1355_v25 = vpack.c.bf16 %v1318_v49, %v1317_v15 }
 0x187   :  { %v3092_v36 = vpop.eup %3091  ;;  %v1128_v63 = vmul.f32 %v3082_v57, %v1064_v45  ;;  %v1004_v48 = vmul.f32 %v3088_v54, %v4092_v1  ;;  %v1354_v29 = vpack.c.bf16 %v1316_v51, %v1315_v18  ;;  %v1129_v7 = vmul.f32 %v3086_v24, %v1065_v34 }
 0x188   :  { %v1066_v42 = vsub.f32 2.0, %v1002_v19  ;;  %v2421_v30 = vunpack.c.l.bf16 %v2622_v4  ;;  %v1127_v41 = vmul.f32 %v3084_v10, %v1063_v26  ;;  %v2417_v2 = vunpack.c.l.bf16 %v2621_v5 }
 0x189   :  { %v1003_v35 = vmul.f32 %v3092_v36, %v4099_v28  ;;  %v1320_v37 = vmul.f32 %v2418_v3, %v1128_v63  ;;  %v1068_v32 = vsub.f32 2.0, %v1004_v48  ;;  %v2426_v28 = vunpack.c.h.bf16 %v2623_v13 }
 0x18a   :  { %v3094_v31 = vpop.eup %3093  ;;  %v1130_v56 = vmul.f32 %v3090_v33, %v1066_v42  ;;  %v1321_v27 = vmul.f32 %v2421_v30, %v1129_v7  ;;  %v1319_v47 = vmul.f32 %v2417_v2, %v1127_v41  ;;  %v2425_v43 = vunpack.c.l.bf16 %v2623_v13 }
 0x18b   :  { %2882 = vmatmul.mubr.msk.bf16.gmra.mxu1 %vm1361_vm0, %v1354_v29  ;;  %v1005_v44 = vmul.f32 %v3094_v31, %v4117_v20  ;;  %v1067_v39 = vsub.f32 2.0, %v1003_v35  ;;  %v1132_v40 = vmul.f32 %v3088_v54, %v1068_v32  ;;  %v2429_v21 = vunpack.c.l.bf16 %v2624_v16 }
 0x18c   :  { %2885 = vmatprep.mubr.msk.bf16.mxu1 %vm1361_vm0, %v1355_v25  ;;  %v1322_v61 = vmul.f32 %v2422_v55, %v1130_v56  ;;  %v1356_v20 = vpack.c.bf16 %v1320_v37, %v1319_v47  ;;  %v2430_v0 = vunpack.c.h.bf16 %v2624_v16 }
 0x18d   :  { %v1069_v50 = vsub.f32 2.0, %v1005_v44  ;;  %v1131_v52 = vmul.f32 %v3092_v36, %v1067_v39  ;;  %v1324_v58 = vmul.f32 %v2426_v28, %v1132_v40 }
 0x18e   :  { %v3096_v1 = vpop.eup %3095  ;;  %v1357_v57 = vpack.c.bf16 %v1322_v61, %v1321_v27 }
 0x18f   :  { %v1008_v62 = vmul.f32 %v3096_v1, %v4132_v38  ;;  %v1133_v14 = vmul.f32 %v3094_v31, %v1069_v50  ;;  %v1323_v46 = vmul.f32 %v2425_v43, %v1131_v52  ;;  %v2625_v38 = vld [vmem:[%s4185_s1 + $0xf8] sm:$0xff]   ;;  %s3124_s1 = smov [#allocation2]  }
 0x190   :  { %v3098_v11 = vpop.eup %3097  ;;  %v2434_v60 = vunpack.c.h.bf16 %v2625_v38  ;;  %v2433_v54 = vunpack.c.l.bf16 %v2625_v38  ;;  %s2096_s13 = sshll.u32 %s3124_s1, 4  ;;  %s2097_s13 = int_to_ptr.vmem [resolvable:$true] %s2096_s13 }
 0x191   :  { %v1007_v24 = vmul.f32 %v3098_v11, %v4135_v23  ;;  %v1072_v12 = vsub.f32 2.0, %v1008_v62  ;;  %v1325_v23 = vmul.f32 %v2429_v21, %v1133_v14  ;;  %s3101_s14 = scalar_lea.vmem %s2097_s13, 4096  ;;  %p3106_p1 = scmp.lt.s32.totalorder %s2097_s13, %s2097_s13 }
 0x192   :  { %v3100_v10 = vpop.eup %3099  ;;  %p3102_p0 = scmp.ne.s32.totalorder %s2097_s13, %s3101_s14  ;;  %p3107_p2 = scmp.lt.s32.totalorder %s3101_s14, %s3101_s14 }
 0x193   :  { %v1006_v17 = vmul.f32 %v3100_v10, %v878_v8  ;;  %2886 = vmatmul.mubr.msk.bf16.gmra.mxu1 %vm1361_vm0, %v1356_v20  ;;  %v1071_v9 = vsub.f32 2.0, %v1007_v24  ;;  %v1136_v53 = vmul.f32 %v3096_v1, %v1072_v12  ;;  %v1358_v8 = vpack.c.bf16 %v1324_v58, %v1323_v46 }
 0x194   :  { %2889 = vmatprep.mubr.msk.bf16.mxu1 %vm1361_vm0, %v1357_v57  ;;  %p3108_p3 = por %p3107_p2, %p3106_p1 }
 0x195   :  { %v1070_v22 = vsub.f32 2.0, %v1006_v17  ;;  %v1135_v49 = vmul.f32 %v3098_v11, %v1071_v9  ;;  %v1328_v45 = vmul.f32 %v2434_v60, %v1136_v53 }
 0x196   :  { %p3109_p4 = pnand %p3108_p3, %p3102_p0 }
 0x197   :  { %v1134_v59 = vmul.f32 %v3100_v10, %v1070_v22  ;;  %v1327_v33 = vmul.f32 %v2433_v54, %v1135_v49 }
 0x199   :  { %v1326_v6 = vmul.f32 %v2430_v0, %v1134_v59  ;;  %v1360_v15 = vpack.c.bf16 %v1328_v45, %v1327_v33 }
 0x19b   :  { %2890 = vmatmul.mubr.msk.bf16.gmra.mxu1 %vm1361_vm0, %v1358_v8  ;;  %v1359_v51 = vpack.c.bf16 %v1326_v6, %v1325_v23 }
 0x19d   :  { %2893 = vmatprep.mubr.msk.bf16.mxu1 %vm1361_vm0, %v1359_v51 }
 0x1a3   :  { %2894 = vmatmul.mubr.msk.bf16.gmra.mxu1 %vm1361_vm0, %v1360_v15 }
 0x1cd   :  { %v2835_v34 = vpop.f32.mrf.mxu0 }
 0x1cf   :  { %v1516_v36 = vpop.f32.mrf.mxu0 }
 0x1d1   :  { %v2836_v18 = vpop.f32.mrf.mxu0 }
 0x1d2   :  { %v2443_v26 = vpack.c.bf16 %v2836_v18, %v2835_v34 }
 0x1d3   :  { %v1519_v5 = vpop.f32.mrf.mxu0 }
 0x1d4   :  { %2626 = vst [vmem:[#allocation2 + $0x8] sm:$0xff] %v2443_v26   ;;  %v2438_v4 = vpack.c.bf16 %v1519_v5, %v1516_v36 }
 0x1d6   :  { %2439 = vst [vmem:[#allocation2] sm:$0xff] %v2438_v4  }
 0x1d7   :  { %v2839_v19 = vpop.f32.mrf.mxu0 }
 0x1d9   :  { %v1532_v3 = vpop.f32.mrf.mxu0 }
 0x1db   :  { %v2840_v55 = vpop.f32.mrf.mxu0 }
 0x1dc   :  { %v2453_v25 = vpack.c.bf16 %v2840_v55, %v2839_v19 }
 0x1dd   :  { %v1535_v63 = vpop.f32.mrf.mxu0 }
 0x1de   :  { %2628 = vst [vmem:[#allocation2 + $0x18] sm:$0xff] %v2453_v25   ;;  %v2448_v48 = vpack.c.bf16 %v1535_v63, %v1532_v3 }
 0x1e0   :  { %2627 = vst [vmem:[#allocation2 + $0x10] sm:$0xff] %v2448_v48  }
 0x1e4   :  { %v2843_v42 = vpop.f32.mrf.mxu1 }
 0x1e6   :  { %v1548_v29 = vpop.f32.mrf.mxu1 }
 0x1e8   :  { %v2844_v31 = vpop.f32.mrf.mxu1 }
 0x1e9   :  { %v2463_v7 = vpack.c.bf16 %v2844_v31, %v2843_v42 }
 0x1ea   :  { %v1551_v30 = vpop.f32.mrf.mxu1 }
 0x1eb   :  { %2630 = vst [vmem:[#allocation2 + $0x28] sm:$0xff] %v2463_v7   ;;  %v2458_v41 = vpack.c.bf16 %v1551_v30, %v1548_v29 }
 0x1ed   :  { %2629 = vst [vmem:[#allocation2 + $0x20] sm:$0xff] %v2458_v41  }
 0x1f0   :  { %v2847_v2 = vpop.f32.mrf.mxu1 }
 0x1f2   :  { %v1564_v35 = vpop.f32.mrf.mxu1 }
 0x1f4   :  { %v2848_v56 = vpop.f32.mrf.mxu1 }
 0x1f5   :  { %v2473_v37 = vpack.c.bf16 %v2848_v56, %v2847_v2 }
 0x1f6   :  { %v1567_v32 = vpop.f32.mrf.mxu1 }
 0x1f7   :  { %2632 = vst [vmem:[#allocation2 + $0x38] sm:$0xff] %v2473_v37   ;;  %v2468_v61 = vpack.c.bf16 %v1567_v32, %v1564_v35 }
 0x1f9   :  { %v2851_v44 = vpop.f32.mrf.mxu1  ;;  %2631 = vst [vmem:[#allocation2 + $0x30] sm:$0xff] %v2468_v61  }
 0x1fb   :  { %v1580_v1 = vpop.f32.mrf.mxu1 }
 0x1fd   :  { %v2852_v27 = vpop.f32.mrf.mxu1 }
 0x1fe   :  { %v2483_v47 = vpack.c.bf16 %v2852_v27, %v2851_v44 }
 0x1ff   :  { %v1583_v39 = vpop.f32.mrf.mxu1 }
 0x200   :  { %2634 = vst [vmem:[#allocation2 + $0x48] sm:$0xff] %v2483_v47   ;;  %v2478_v13 = vpack.c.bf16 %v1583_v39, %v1580_v1 }
 0x202   :  { %v2855_v11 = vpop.f32.mrf.mxu1  ;;  %2633 = vst [vmem:[#allocation2 + $0x40] sm:$0xff] %v2478_v13  }
 0x204   :  { %v1596_v28 = vpop.f32.mrf.mxu1 }
 0x206   :  { %v2856_v57 = vpop.f32.mrf.mxu1 }
 0x207   :  { %v2493_v40 = vpack.c.bf16 %v2856_v57, %v2855_v11 }
 0x208   :  { %v1599_v50 = vpop.f32.mrf.mxu1 }
 0x209   :  { %2636 = vst [vmem:[#allocation2 + $0x58] sm:$0xff] %v2493_v40   ;;  %v2488_v16 = vpack.c.bf16 %v1599_v50, %v1596_v28 }
 0x20b   :  { %2635 = vst [vmem:[#allocation2 + $0x50] sm:$0xff] %v2488_v16  }
 0x20d   :  { %v2859_v62 = vpop.f32.mrf.mxu1 }
 0x20f   :  { %v1612_v20 = vpop.f32.mrf.mxu1 }
 0x211   :  { %v2860_v10 = vpop.f32.mrf.mxu1 }
 0x212   :  { %v2503_v52 = vpack.c.bf16 %v2860_v10, %v2859_v62 }
 0x213   :  { %v1615_v43 = vpop.f32.mrf.mxu1 }
 0x214   :  { %2638 = vst [vmem:[#allocation2 + $0x68] sm:$0xff] %v2503_v52   ;;  %v2498_v24 = vpack.c.bf16 %v1615_v43, %v1612_v20 }
 0x216   :  { %2637 = vst [vmem:[#allocation2 + $0x60] sm:$0xff] %v2498_v24   ;;  %v2863_v17 = vpop.f32.mrf.mxu1 }
 0x218   :  { %v1628_v21 = vpop.f32.mrf.mxu1 }
 0x21a   :  { %v2864_v0 = vpop.f32.mrf.mxu1 }
 0x21b   :  { %v2513_v58 = vpack.c.bf16 %v2864_v0, %v2863_v17 }
 0x21c   :  { %v1631_v14 = vpop.f32.mrf.mxu1 }
 0x21d   :  { %2640 = vst [vmem:[#allocation2 + $0x78] sm:$0xff] %v2513_v58   ;;  %v2508_v12 = vpack.c.bf16 %v1631_v14, %v1628_v21 }
 0x21f   :  { %2639 = vst [vmem:[#allocation2 + $0x70] sm:$0xff] %v2508_v12  }
 0x222   :  { %v2867_v22 = vpop.f32.mrf.mxu1 }
 0x224   :  { %v1644_v46 = vpop.f32.mrf.mxu1 }
 0x226   :  { %v2868_v9 = vpop.f32.mrf.mxu1 }
 0x227   :  { %v2523_v38 = vpack.c.bf16 %v2868_v9, %v2867_v22 }
 0x228   :  { %v1647_v59 = vpop.f32.mrf.mxu1 }
 0x229   :  { %2642 = vst [vmem:[#allocation2 + $0x88] sm:$0xff] %v2523_v38   ;;  %v2518_v60 = vpack.c.bf16 %v1647_v59, %v1644_v46 }
 0x22b   :  { %2641 = vst [vmem:[#allocation2 + $0x80] sm:$0xff] %v2518_v60  }
 0x22c   :  { %v2871_v23 = vpop.f32.mrf.mxu1 }
 0x22e   :  { %v1660_v53 = vpop.f32.mrf.mxu1 }
 0x230   :  { %v2872_v6 = vpop.f32.mrf.mxu1 }
 0x231   :  { %v2533_v8 = vpack.c.bf16 %v2872_v6, %v2871_v23 }
 0x232   :  { %v1663_v49 = vpop.f32.mrf.mxu1 }
 0x233   :  { %2644 = vst [vmem:[#allocation2 + $0x98] sm:$0xff] %v2533_v8   ;;  %v2528_v54 = vpack.c.bf16 %v1663_v49, %v1660_v53 }
 0x235   :  { %2643 = vst [vmem:[#allocation2 + $0x90] sm:$0xff] %v2528_v54  }
 0x238   :  { %v2875_v51 = vpop.f32.mrf.mxu1 }
 0x23a   :  { %v1676_v45 = vpop.f32.mrf.mxu1 }
 0x23c   :  { %v2876_v33 = vpop.f32.mrf.mxu1 }
 0x23d   :  { %v2543_v15 = vpack.c.bf16 %v2876_v33, %v2875_v51 }
 0x23e   :  { %v1679_v34 = vpop.f32.mrf.mxu1 }
 0x23f   :  { %2646 = vst [vmem:[#allocation2 + $0xa8] sm:$0xff] %v2543_v15   ;;  %v2538_v36 = vpack.c.bf16 %v1679_v34, %v1676_v45 }
 0x241   :  { %2645 = vst [vmem:[#allocation2 + $0xa0] sm:$0xff] %v2538_v36  }
 0x243   :  { %v2879_v18 = vpop.f32.mrf.mxu1 }
 0x245   :  { %v1692_v26 = vpop.f32.mrf.mxu1 }
 0x247   :  { %v2880_v5 = vpop.f32.mrf.mxu1 }
 0x248   :  { %v2553_v4 = vpack.c.bf16 %v2880_v5, %v2879_v18 }
 0x249   :  { %v1695_v19 = vpop.f32.mrf.mxu1 }
 0x24a   :  { %2648 = vst [vmem:[#allocation2 + $0xb8] sm:$0xff] %v2553_v4   ;;  %v2548_v3 = vpack.c.bf16 %v1695_v19, %v1692_v26 }
 0x24b   :  { %v2883_v55 = vpop.f32.mrf.mxu1 }
 0x24c   :  { %2647 = vst [vmem:[#allocation2 + $0xb0] sm:$0xff] %v2548_v3  }
 0x24d   :  { %v1708_v25 = vpop.f32.mrf.mxu1 }
 0x24f   :  { %v2884_v63 = vpop.f32.mrf.mxu1 }
 0x250   :  { %v2563_v48 = vpack.c.bf16 %v2884_v63, %v2883_v55 }
 0x251   :  { %v1711_v42 = vpop.f32.mrf.mxu1 }
 0x252   :  { %2650 = vst [vmem:[#allocation2 + $0xc8] sm:$0xff] %v2563_v48   ;;  %v2558_v29 = vpack.c.bf16 %v1711_v42, %v1708_v25 }
 0x253   :  { %v2887_v31 = vpop.f32.mrf.mxu1 }
 0x254   :  { %2649 = vst [vmem:[#allocation2 + $0xc0] sm:$0xff] %v2558_v29  }
 0x255   :  { %v1724_v7 = vpop.f32.mrf.mxu1 }
 0x257   :  { %v2888_v30 = vpop.f32.mrf.mxu1 }
 0x258   :  { %v2573_v41 = vpack.c.bf16 %v2888_v30, %v2887_v31 }
 0x259   :  { %v1727_v2 = vpop.f32.mrf.mxu1 }
 0x25a   :  { %2652 = vst [vmem:[#allocation2 + $0xd8] sm:$0xff] %v2573_v41   ;;  %v2568_v35 = vpack.c.bf16 %v1727_v2, %v1724_v7 }
 0x25b   :  { %v2891_v56 = vpop.f32.mrf.mxu1 }
 0x25c   :  { %2651 = vst [vmem:[#allocation2 + $0xd0] sm:$0xff] %v2568_v35  }
 0x25d   :  { %v1740_v37 = vpop.f32.mrf.mxu1 }
 0x25f   :  { %v2892_v32 = vpop.f32.mrf.mxu1 }
 0x260   :  { %v2583_v61 = vpack.c.bf16 %v2892_v32, %v2891_v56 }
 0x261   :  { %v1743_v44 = vpop.f32.mrf.mxu1 }
 0x262   :  { %2654 = vst [vmem:[#allocation2 + $0xe8] sm:$0xff] %v2583_v61   ;;  %v2578_v1 = vpack.c.bf16 %v1743_v44, %v1740_v37 }
 0x263   :  { %v2895_v27 = vpop.f32.mrf.mxu1 }
 0x264   :  { %2653 = vst [vmem:[#allocation2 + $0xe0] sm:$0xff] %v2578_v1  }
 0x265   :  { %v1756_v47 = vpop.f32.mrf.mxu1 }
 0x267   :  { %v2896_v39 = vpop.f32.mrf.mxu1 }
 0x268   :  { %v2593_v13 = vpack.c.bf16 %v2896_v39, %v2895_v27 }
 0x269   :  { %v1759_v11 = vpop.f32.mrf.mxu1 }
 0x26a   :  { %2656 = vst [vmem:[#allocation2 + $0xf8] sm:$0xff] %v2593_v13   ;;  %v2588_v28 = vpack.c.bf16 %v1759_v11, %v1756_v47 }
 0x26c   :  { %2655 = vst [vmem:[#allocation2 + $0xf0] sm:$0xff] %v2588_v28  }
 0x26d   :  { %3112 = shalt.err (!%p3109_p4)
}
 0x26e   :  { %s3125_s15 = smov 64   ;;  %s3126_s16 = smov 4  }
 0x26f   :  { %2102 = dma.vmem_to_hbm [thread:$0]  %s2097_s13, 4096, %s4187_s3, [#allocation3], %s3125_s15, %s3125_s15, %s3126_s16  }
 0x270   :  { %3121 = dma.done.wait [#allocation3], 4096  }
 0x271   :  { %3122 = vsyncadd [#allocation3], 4294963200 }
 0x272   :  { %2106 = vsyncpa [#allocation3], 1 }

// kernel: tpu_custom_call.1
= control target key start
LH: loop header
LB: loop body
LE: loop exit
PB: predicated region body
PF: predicated region fallthrough
CT: control target
= control target key end

     0   :  { %vm1361_vm0 = vcmask 64512   ;;  %s4184_s0 = inlined_call_operand.vmem [shape: bf16[512,128], index: 0, kind: input, shape index: {}]   ;;  %s4185_s1 = inlined_call_operand.vmem [shape: bf16[512,8], index: 1, kind: input, shape index: {}]   ;;  %s4186_s2 = inlined_call_operand.vmem [shape: bf16[128,8], index: 2, kind: input, shape index: {}]   ;;  %s4187_s3 = inlined_call_operand.hbm [shape: bf16[512,128], index: 3, kind: output, shape index: {}]  }
   0x1   :  { %v2933_v0 = vld [vmem:[%s4186_s2 + $0x38] sm:$0xff]   ;;  %v2934_v1 = vld [vmem:[%s4186_s2 + $0x30] sm:$0xff]   ;;  %v2935_v2 = vld [vmem:[%s4186_s2 + $0x28] sm:$0xff]  }
   0x2   :  { %2737 = vmatprep.subr.bf16.mxu0 %v2933_v0  ;;  %v2936_v3 = vld [vmem:[%s4186_s2 + $0x20] sm:$0xff]   ;;  %v3165_v5 = vld [vmem:[%s4186_s2 + $0x18] sm:$0xff]   ;;  %v3171_v6 = vld [vmem:[%s4186_s2 + $0x10] sm:$0xff]   ;;  %v1480_v9 = vsel %vm1361_vm0, %v2933_v0, 0  ;;  %2914 = vmatprep.subr.msk.bf16.mxu1 %vm1361_vm0, %v2933_v0  ;;  %v1477_v12 = vsel %vm1361_vm0, %v2934_v1, 0 }
   0x3   :  { %2738 = vmatpush3.bf16.msra.mxu0 %v2933_v0  ;;  %v2941_v4 = vld [vmem:[%s4184_s0] sm:$0xff]   ;;  %v3178_v7 = vld [vmem:[%s4186_s2 + $0x8] sm:$0xff]   ;;  %2905 = vmatpush3.bf16.xpose.msra.mxu1 %v1480_v9  ;;  %v2943_v11 = vld [vmem:[%s4184_s0 + $0x10] sm:$0xff]  }
   0x4   :  { %2739 = vmatprep.subr.bf16.mxu0 %v2934_v1  ;;  %2753 = vmatprep.mubr.bf16.mxu0 %v2941_v4  ;;  %v3185_v8 = vld [vmem:[%s4186_s2] sm:$0xff]   ;;  %v2942_v10 = vld [vmem:[%s4184_s0 + $0x8] sm:$0xff]   ;;  %v2944_v13 = vld [vmem:[%s4184_s0 + $0x18] sm:$0xff]  }
   0x5   :  { %2916 = vmatprep.subr.msk.bf16.mxu1 %vm1361_vm0, %v2934_v1  ;;  %v2945_v14 = vld [vmem:[%s4184_s0 + $0x20] sm:$0xff]  }
   0x7   :  { %2740 = vmatpush3.bf16.msra.mxu0 %v2934_v1 }
   0x8   :  { %2741 = vmatprep.subr.bf16.mxu0 %v2935_v2 }
   0xb   :  { %2742 = vmatpush3.bf16.msra.mxu0 %v2935_v2  ;;  %2906 = vmatpush3.bf16.xpose.msra.mxu1 %v1477_v12 }
   0xc   :  { %2743 = vmatprep.subr.bf16.mxu0 %v2936_v3  ;;  %2918 = vmatprep.subr.msk.bf16.mxu1 %vm1361_vm0, %v2935_v2 }
   0xf   :  { %2744 = vmatpush3.bf16.msra.mxu0 %v2936_v3 }
  0x10   :  { %2745 = vmatprep.subr.bf16.mxu0 %v3165_v5 }
  0x13   :  { %2746 = vmatpush3.bf16.msra.mxu0 %v3165_v5 }
  0x14   :  { %2747 = vmatprep.subr.bf16.mxu0 %v3171_v6 }
  0x17   :  { %2748 = vmatpush3.bf16.msra.mxu0 %v3171_v6 }
  0x18   :  { %2749 = vmatprep.subr.bf16.mxu0 %v3178_v7 }
  0x1b   :  { %2750 = vmatpush3.bf16.msra.mxu0 %v3178_v7 }
  0x1c   :  { %2751 = vmatprep.subr.bf16.mxu0 %v3185_v8 }
  0x1f   :  { %2752 = vmatpush3.bf16.msra.mxu0 %v3185_v8 }
  0x20   :  { %2913 = vmatprep.subr.msk.bf16.mxu0 %vm1361_vm0, %v2933_v0 }
  0x22   :  { %2754 = vmatmul.mubr.bf16.vlgmr.msra.gmra.mxu0 %v2942_v10 }
  0x23   :  { %2757 = vmatprep.mubr.bf16.mxu0 %v2943_v11  ;;  %2818 = vmatpush3.bf16.xpose.msra.mxu0 %v1480_v9 }
  0x24   :  { %2915 = vmatprep.subr.msk.bf16.mxu0 %vm1361_vm0, %v2934_v1 }
  0x25   :  { %8 = vsyncpa [#allocation3], 0  ;;  %v1474_v15 = vsel %vm1361_vm0, %v2935_v2, 0  ;;  %v2946_v16 = vld [vmem:[%s4184_s0 + $0x28] sm:$0xff]   ;;  %v2947_v17 = vld [vmem:[%s4184_s0 + $0x30] sm:$0xff]   ;;  %v1471_v18 = vsel %vm1361_vm0, %v2936_v3, 0 }
  0x26   :  { %2907 = vmatpush3.bf16.xpose.msra.mxu1 %v1474_v15  ;;  %v2948_v19 = vld [vmem:[%s4184_s0 + $0x38] sm:$0xff]   ;;  %v2949_v20 = vld [vmem:[%s4184_s0 + $0x40] sm:$0xff]   ;;  %v2950_v21 = vld [vmem:[%s4184_s0 + $0x48] sm:$0xff]   ;;  %v1468_v33 = vsel %vm1361_vm0, %v3165_v5, 0  ;;  %v1465_v36 = vsel %vm1361_vm0, %v3171_v6, 0  ;;  %v1462_v39 = vsel %vm1361_vm0, %v3178_v7, 0 }
  0x27   :  { %2920 = vmatprep.subr.msk.bf16.mxu1 %vm1361_vm0, %v2936_v3  ;;  %v2951_v22 = vld [vmem:[%s4184_s0 + $0x50] sm:$0xff]   ;;  %v2952_v23 = vld [vmem:[%s4184_s0 + $0x58] sm:$0xff]   ;;  %v2953_v24 = vld [vmem:[%s4184_s0 + $0x60] sm:$0xff]   ;;  %v1459_v44 = vsel %vm1361_vm0, %v3185_v8, 0  ;;  %v3123_v49 = vmov -1.0  }
  0x28   :  { %v2954_v25 = vld [vmem:[%s4184_s0 + $0x68] sm:$0xff]   ;;  %v2955_v26 = vld [vmem:[%s4184_s0 + $0x70] sm:$0xff]   ;;  %v2956_v27 = vld [vmem:[%s4184_s0 + $0x78] sm:$0xff]  }
  0x29   :  { %v2957_v28 = vld [vmem:[%s4184_s0 + $0x80] sm:$0xff]   ;;  %v2958_v29 = vld [vmem:[%s4184_s0 + $0x88] sm:$0xff]   ;;  %v2959_v30 = vld [vmem:[%s4184_s0 + $0x90] sm:$0xff]  }
  0x2a   :  { %2758 = vmatmul.mubr.bf16.gmra.mxu0 %v2944_v13  ;;  %v2960_v31 = vld [vmem:[%s4184_s0 + $0x98] sm:$0xff]   ;;  %v2961_v32 = vld [vmem:[%s4184_s0 + $0xa0] sm:$0xff]   ;;  %v2962_v34 = vld [vmem:[%s4184_s0 + $0xa8] sm:$0xff]  }
  0x2b   :  { %2761 = vmatprep.mubr.bf16.mxu0 %v2945_v14  ;;  %2820 = vmatpush3.bf16.xpose.msra.mxu0 %v1477_v12  ;;  %v2963_v35 = vld [vmem:[%s4184_s0 + $0xb0] sm:$0xff]   ;;  %v2964_v37 = vld [vmem:[%s4184_s0 + $0xb8] sm:$0xff]   ;;  %v2965_v38 = vld [vmem:[%s4184_s0 + $0xc0] sm:$0xff]  }
  0x2c   :  { %2917 = vmatprep.subr.msk.bf16.mxu0 %vm1361_vm0, %v2935_v2  ;;  %v2966_v40 = vld [vmem:[%s4184_s0 + $0xc8] sm:$0xff]   ;;  %v2967_v41 = vld [vmem:[%s4184_s0 + $0xd0] sm:$0xff]   ;;  %v2968_v42 = vld [vmem:[%s4184_s0 + $0xd8] sm:$0xff]  }
  0x2d   :  { %v2969_v43 = vld [vmem:[%s4184_s0 + $0xe0] sm:$0xff]   ;;  %v2970_v45 = vld [vmem:[%s4184_s0 + $0xe8] sm:$0xff]   ;;  %v2971_v46 = vld [vmem:[%s4184_s0 + $0xf0] sm:$0xff]  }
  0x2e   :  { %2908 = vmatpush3.bf16.xpose.msra.mxu1 %v1471_v18  ;;  %v2972_v47 = vld [vmem:[%s4184_s0 + $0xf8] sm:$0xff]   ;;  %v3323_v53 = vld [vmem:[%s4185_s1 + $0x8] sm:$0xff]   ;;  %v3331_v58 = vld [vmem:[%s4185_s1] sm:$0xff]  }
  0x2f   :  { %2922 = vmatprep.subr.msk.bf16.mxu1 %vm1361_vm0, %v3165_v5  ;;  %v2313_v61 = vunpack.c.l.bf16 %v3323_v53  ;;  %v3340_v0 = vld [vmem:[%s4185_s1 + $0x18] sm:$0xff]   ;;  %v3345_v1 = vld [vmem:[%s4185_s1 + $0x10] sm:$0xff]   ;;  %v2309_v2 = vunpack.c.l.bf16 %v3331_v58  ;;  %v2310_v9 = vunpack.c.h.bf16 %v3331_v58 }
  0x30   :  { %v2321_v11 = vunpack.c.l.bf16 %v3340_v0  ;;  %v2317_v13 = vunpack.c.l.bf16 %v3345_v1 }
  0x32   :  { %2762 = vmatmul.mubr.bf16.gmra.mxu0 %v2946_v16  ;;  %v3369_v16 = vld [vmem:[%s4185_s1 + $0x38] sm:$0xff]  }
  0x33   :  { %2765 = vmatprep.mubr.bf16.mxu0 %v2947_v17  ;;  %2822 = vmatpush3.bf16.xpose.msra.mxu0 %v1474_v15  ;;  %v3374_v17 = vld [vmem:[%s4185_s1 + $0x30] sm:$0xff]  }
  0x34   :  { %2919 = vmatprep.subr.msk.bf16.mxu0 %vm1361_vm0, %v2936_v3  ;;  %v2314_v3 = vunpack.c.h.bf16 %v3323_v53 }
  0x36   :  { %2909 = vmatpush3.bf16.xpose.msra.mxu1 %v1468_v33 }
  0x37   :  { %2924 = vmatprep.subr.msk.bf16.mxu1 %vm1361_vm0, %v3171_v6 }
  0x3a   :  { %2766 = vmatmul.mubr.bf16.gmra.mxu0 %v2948_v19 }
  0x3b   :  { %2769 = vmatprep.mubr.bf16.mxu0 %v2949_v20  ;;  %2824 = vmatpush3.bf16.xpose.msra.mxu0 %v1471_v18  ;;  %v2322_v20 = vunpack.c.h.bf16 %v3340_v0 }
  0x3c   :  { %2921 = vmatprep.subr.msk.bf16.mxu0 %vm1361_vm0, %v3165_v5 }
  0x3e   :  { %2910 = vmatpush3.bf16.xpose.msra.mxu1 %v1465_v36 }
  0x3f   :  { %2926 = vmatprep.subr.msk.bf16.mxu1 %vm1361_vm0, %v3178_v7 }
  0x42   :  { %2770 = vmatmul.mubr.bf16.gmra.mxu0 %v2950_v21  ;;  %v2318_v21 = vunpack.c.h.bf16 %v3345_v1 }
  0x43   :  { %2773 = vmatprep.mubr.bf16.mxu0 %v2951_v22  ;;  %2826 = vmatpush3.bf16.xpose.msra.mxu0 %v1468_v33  ;;  %v3398_v33 = vld [vmem:[%s4185_s1 + $0x48] sm:$0xff]  }
  0x44   :  { %2923 = vmatprep.subr.msk.bf16.mxu0 %vm1361_vm0, %v3171_v6 }
  0x46   :  { %2911 = vmatpush3.bf16.xpose.msra.mxu1 %v1462_v39 }
  0x47   :  { %2928 = vmatprep.subr.msk.bf16.mxu1 %vm1361_vm0, %v3185_v8 }
  0x4a   :  { %2774 = vmatmul.mubr.bf16.gmra.mxu0 %v2952_v23 }
  0x4b   :  { %2777 = vmatprep.mubr.bf16.mxu0 %v2953_v24  ;;  %2828 = vmatpush3.bf16.xpose.msra.mxu0 %v1465_v36 }
  0x4c   :  { %2925 = vmatprep.subr.msk.bf16.mxu0 %vm1361_vm0, %v3178_v7 }
  0x4e   :  { %2912 = vmatpush3.bf16.xpose.msra.mxu1 %v1459_v44 }
  0x52   :  { %2778 = vmatmul.mubr.bf16.gmra.mxu0 %v2954_v25  ;;  %v3386_v25 = vld [vmem:[%s4185_s1 + $0x20] sm:$0xff]  }
  0x53   :  { %2781 = vmatprep.mubr.bf16.mxu0 %v2955_v26  ;;  %2830 = vmatpush3.bf16.xpose.msra.mxu0 %v1462_v39  ;;  %v2325_v39 = vunpack.c.l.bf16 %v3386_v25 }
  0x54   :  { %2927 = vmatprep.subr.msk.bf16.mxu0 %vm1361_vm0, %v3185_v8  ;;  %v3357_v8 = vld [vmem:[%s4185_s1 + $0x28] sm:$0xff]  }
  0x5a   :  { %2782 = vmatmul.mubr.bf16.gmra.mxu0 %v2956_v27 }
  0x5b   :  { %2785 = vmatprep.mubr.bf16.mxu0 %v2957_v28  ;;  %2832 = vmatpush3.bf16.xpose.msra.mxu0 %v1459_v44  ;;  %v2330_v28 = vunpack.c.h.bf16 %v3357_v8 }
  0x62   :  { %2786 = vmatmul.mubr.bf16.gmra.mxu0 %v2958_v29 }
  0x63   :  { %2789 = vmatprep.mubr.bf16.mxu0 %v2959_v30 }
  0x6a   :  { %2790 = vmatmul.mubr.bf16.gmra.mxu0 %v2960_v31 }
  0x6b   :  { %2793 = vmatprep.mubr.bf16.mxu0 %v2961_v32 }
  0x72   :  { %2794 = vmatmul.mubr.bf16.gmra.mxu0 %v2962_v34  ;;  %v3403_v34 = vld [vmem:[%s4185_s1 + $0x40] sm:$0xff]  }
  0x73   :  { %2797 = vmatprep.mubr.bf16.mxu0 %v2963_v35 }
  0x7a   :  { %2798 = vmatmul.mubr.bf16.gmra.mxu0 %v2964_v37  ;;  %v3491_v37 = vld [vmem:[%s4185_s1 + $0x80] sm:$0xff]  }
  0x7b   :  { %2801 = vmatprep.mubr.bf16.mxu0 %v2965_v38 }
  0x82   :  { %2802 = vmatmul.mubr.bf16.gmra.mxu0 %v2966_v40 }
  0x83   :  { %2805 = vmatprep.mubr.bf16.mxu0 %v2967_v41 }
  0x8a   :  { %2806 = vmatmul.mubr.bf16.gmra.mxu0 %v2968_v42  ;;  %v3415_v42 = vld [vmem:[%s4185_s1 + $0x58] sm:$0xff]  }
  0x8b   :  { %2809 = vmatprep.mubr.bf16.mxu0 %v2969_v43 }
  0x92   :  { %2810 = vmatmul.mubr.bf16.gmra.mxu0 %v2970_v45 }
  0x93   :  { %2813 = vmatprep.mubr.bf16.mxu0 %v2971_v46 }
  0x9a   :  { %2814 = vmatmul.mubr.bf16.gmra.mxu0 %v2972_v47  ;;  %v3423_v47 = vld [vmem:[%s4185_s1 + $0x50] sm:$0xff]  }
  0xe2   :  { %v2755_v48 = vpop.f32.mrf.mxu0 }
  0xe3   :  { %vm627_vm1 = vcmp.ge.f32.partialorder %v2755_v48, 0.0 }
  0xe4   :  { %v691_v50 = vsel %vm627_vm1, 1.0, %v3123_v49  ;;  %v370_v51 = vpop.f32.mrf.mxu0 }
  0xe5   :  { %v755_v52 = vmul.f32 1e-06, %v691_v50  ;;  %vm625_vm2 = vcmp.ge.f32.partialorder %v370_v51, 0.0 }
  0xe6   :  { %v689_v54 = vsel %vm625_vm2, 1.0, %v3123_v49  ;;  %v2756_v55 = vpop.f32.mrf.mxu0 }
  0xe7   :  { %v3326_v56 = vadd.f32 %v2755_v48, %v755_v52  ;;  %v753_v57 = vmul.f32 1e-06, %v689_v54  ;;  %vm628_vm3 = vcmp.ge.f32.partialorder %v2756_v55, 0.0  ;;  %v3432_v52 = vld [vmem:[%s4185_s1 + $0x68] sm:$0xff]   ;;  %v3437_v54 = vld [vmem:[%s4185_s1 + $0x60] sm:$0xff]  }
  0xe8   :  { %v692_v59 = vsel %vm628_vm3, 1.0, %v3123_v49  ;;  %v373_v60 = vpop.f32.mrf.mxu0 }
  0xe9   :  { %v3335_v62 = vadd.f32 %v753_v57, %v370_v51  ;;  %v756_v63 = vmul.f32 1e-06, %v692_v59  ;;  %vm626_vm4 = vcmp.ge.f32.partialorder %v373_v60, 0.0  ;;  %2973 = vrcp.f32 %v3326_v56 }
  0xea   :  { %v690_v4 = vsel %vm626_vm4, 1.0, %v3123_v49  ;;  %v2759_v5 = vpop.f32.mrf.mxu0 }
  0xeb   :  { %2975 = vrcp.f32 %v3335_v62  ;;  %v3352_v6 = vadd.f32 %v2756_v55, %v756_v63  ;;  %v754_v7 = vmul.f32 1e-06, %v690_v4  ;;  %vm631_vm5 = vcmp.ge.f32.partialorder %v2759_v5, 0.0  ;;  %v3446_v4 = vld [vmem:[%s4185_s1 + $0x78] sm:$0xff]   ;;  %v3469_v63 = vld [vmem:[%s4185_s1 + $0x88] sm:$0xff]  }
  0xec   :  { %v695_v10 = vsel %vm631_vm5, 1.0, %v3123_v49  ;;  %v386_v12 = vpop.f32.mrf.mxu0 }
  0xed   :  { %2977 = vrcp.f32 %v3352_v6  ;;  %v3364_v14 = vadd.f32 %v754_v7, %v373_v60  ;;  %v759_v15 = vmul.f32 1e-06, %v695_v10  ;;  %vm629_vm6 = vcmp.ge.f32.partialorder %v386_v12, 0.0 }
  0xee   :  { %v693_v18 = vsel %vm629_vm6, 1.0, %v3123_v49  ;;  %v2760_v19 = vpop.f32.mrf.mxu0 }
  0xef   :  { %2979 = vrcp.f32 %v3364_v14  ;;  %v3381_v23 = vadd.f32 %v2759_v5, %v759_v15  ;;  %v757_v24 = vmul.f32 1e-06, %v693_v18  ;;  %vm632_vm7 = vcmp.ge.f32.partialorder %v2760_v19, 0.0  ;;  %v3457_v15 = vld [vmem:[%s4185_s1 + $0x70] sm:$0xff]  }
  0xf0   :  { %v696_v26 = vsel %vm632_vm7, 1.0, %v3123_v49  ;;  %v389_v27 = vpop.f32.mrf.mxu0 }
  0xf1   :  { %2981 = vrcp.f32 %v3381_v23  ;;  %v3393_v31 = vadd.f32 %v757_v24, %v386_v12  ;;  %v760_v32 = vmul.f32 1e-06, %v696_v26  ;;  %vm630_vm8 = vcmp.ge.f32.partialorder %v389_v27, 0.0 }
  0xf2   :  { %v694_v35 = vsel %vm630_vm8, 1.0, %v3123_v49  ;;  %v2763_v36 = vpop.f32.mrf.mxu0 }
  0xf3   :  { %2983 = vrcp.f32 %v3393_v31  ;;  %v3410_v40 = vadd.f32 %v2760_v19, %v760_v32  ;;  %v758_v41 = vmul.f32 1e-06, %v694_v35  ;;  %vm635_vm9 = vcmp.ge.f32.partialorder %v2763_v36, 0.0 }
  0xf4   :  { %v699_v43 = vsel %vm635_vm9, 1.0, %v3123_v49  ;;  %v402_v44 = vpop.f32.mrf.mxu0 }
  0xf5   :  { %2985 = vrcp.f32 %v3410_v40  ;;  %v3427_v50 = vadd.f32 %v758_v41, %v389_v27  ;;  %v763_v51 = vmul.f32 1e-06, %v699_v43  ;;  %vm633_vm10 = vcmp.ge.f32.partialorder %v402_v44, 0.0 }
  0xf6   :  { %v697_v55 = vsel %vm633_vm10, 1.0, %v3123_v49  ;;  %v2764_v57 = vpop.f32.mrf.mxu0  ;;  %v3448_v5 = vpop.eup %2973 }
  0xf7   :  { %2987 = vrcp.f32 %v3427_v50  ;;  %vm636_vm11 = vcmp.ge.f32.partialorder %v2764_v57, 0.0  ;;  %v3462_v32 = vadd.f32 %v2763_v36, %v763_v51  ;;  %v761_v35 = vmul.f32 1e-06, %v697_v55 }
  0xf8   :  { %v2976_v18 = vpop.eup %2975  ;;  %v405_v19 = vpop.f32.mrf.mxu0  ;;  %v700_v10 = vsel %vm636_vm11, 1.0, %v3123_v49  ;;  %v947_v51 = vmul.f32 %v3448_v5, %v3326_v56 }
  0xf9   :  { %vm634_vm12 = vcmp.ge.f32.partialorder %v405_v19, 0.0  ;;  %v945_v55 = vmul.f32 %v2976_v18, %v3335_v62  ;;  %v764_v7 = vmul.f32 1e-06, %v700_v10  ;;  %2989 = vrcp.f32 %v3462_v32 }
  0xfa   :  { %v2978_v12 = vpop.eup %2977  ;;  %v2767_v24 = vpop.f32.mrf.mxu0  ;;  %v698_v60 = vsel %vm634_vm12, 1.0, %v3123_v49  ;;  %v3483_v56 = vadd.f32 %v761_v35, %v402_v44 }
  0xfb   :  { %v948_v43 = vmul.f32 %v2978_v12, %v3352_v6  ;;  %vm639_vm13 = vcmp.ge.f32.partialorder %v2767_v24, 0.0  ;;  %v3485_v45 = vadd.f32 %v2764_v57, %v764_v7  ;;  %v762_v6 = vmul.f32 1e-06, %v698_v60 }
  0xfc   :  { %v2980_v41 = vpop.eup %2979  ;;  %v418_v59 = vpop.f32.mrf.mxu0  ;;  %v703_v27 = vsel %vm639_vm13, 1.0, %v3123_v49  ;;  %v1009_v46 = vsub.f32 2.0, %v945_v55  ;;  %2991 = vrcp.f32 %v3483_v56 }
  0xfd   :  { %v1012_v26 = vsub.f32 2.0, %v948_v43  ;;  %v946_v36 = vmul.f32 %v2980_v41, %v3364_v14  ;;  %vm637_vm14 = vcmp.ge.f32.partialorder %v418_v59, 0.0  ;;  %v1011_v43 = vsub.f32 2.0, %v947_v51 }
  0xfe   :  { %v2982_v62 = vpop.eup %2981  ;;  %v2768_v10 = vpop.f32.mrf.mxu0  ;;  %v3494_v38 = vadd.f32 %v762_v6, %v405_v19  ;;  %v767_v57 = vmul.f32 1e-06, %v703_v27  ;;  %v701_v60 = vsel %vm637_vm14, 1.0, %v3123_v49  ;;  %2993 = vrcp.f32 %v3485_v45 }
  0xff   :  { %v1076_v14 = vmul.f32 %v2978_v12, %v1012_v26  ;;  %v951_v30 = vmul.f32 %v2982_v62, %v3381_v23  ;;  %v1010_v35 = vsub.f32 2.0, %v946_v36  ;;  %v765_v23 = vmul.f32 1e-06, %v701_v60 }
 0x100   :  { %v2984_v44 = vpop.eup %2983  ;;  %v421_v7 = vpop.f32.mrf.mxu0  ;;  %v3501_v12 = vadd.f32 %v2767_v24, %v767_v57  ;;  %vm640_vm15 = vcmp.ge.f32.partialorder %v2768_v10, 0.0  ;;  %v1075_v26 = vmul.f32 %v3448_v5, %v1011_v43  ;;  %v1073_v27 = vmul.f32 %v2976_v18, %v1009_v46 }
 0x101   :  { %v1015_v29 = vsub.f32 2.0, %v951_v30  ;;  %v949_v36 = vmul.f32 %v2984_v44, %v3393_v31  ;;  %2995 = vrcp.f32 %v3494_v38  ;;  %v1268_v55 = vmul.f32 %v2314_v3, %v1076_v14 }
 0x102   :  { %v2986_v51 = vpop.eup %2985  ;;  %v2771_v19 = vpop.f32.mrf.mxu0  ;;  %v1074_v6 = vmul.f32 %v2980_v41, %v1010_v35  ;;  %2997 = vrcp.f32 %v3501_v12  ;;  %v704_v24 = vsel %vm640_vm15, 1.0, %v3123_v49  ;;  %v3512_v18 = vadd.f32 %v765_v23, %v418_v59 }
 0x103   :  { %v1079_v60 = vmul.f32 %v2982_v62, %v1015_v29  ;;  %v952_v48 = vmul.f32 %v2986_v51, %v3410_v40  ;;  %v768_v46 = vmul.f32 1e-06, %v704_v24  ;;  %vm638_vm1 = vcmp.ge.f32.partialorder %v421_v7, 0.0 }
 0x104   :  { %v2988_v30 = vpop.eup %2987  ;;  %v434_v57 = vpop.f32.mrf.mxu0  ;;  %vm643_vm2 = vcmp.ge.f32.partialorder %v2771_v19, 0.0  ;;  %v2374_v43 = vunpack.c.h.bf16 %v3491_v37  ;;  %v1267_v3 = vmul.f32 %v2313_v61, %v1075_v26  ;;  %v1013_v41 = vsub.f32 2.0, %v949_v36 }
 0x105   :  { %v950_v5 = vmul.f32 %v2988_v30, %v3427_v50  ;;  %v3517_v35 = vadd.f32 %v2768_v10, %v768_v46  ;;  %v1266_v29 = vmul.f32 %v2310_v9, %v1074_v6  ;;  %v702_v40 = vsel %vm638_vm1, 1.0, %v3123_v49 }
 0x106   :  { %v2772_v31 = vpop.f32.mrf.mxu0  ;;  %v707_v50 = vsel %vm643_vm2, 1.0, %v3123_v49  ;;  %vm641_vm3 = vcmp.ge.f32.partialorder %v434_v57, 0.0  ;;  %v1265_v62 = vmul.f32 %v2309_v2, %v1073_v27  ;;  %v1330_v23 = vpack.c.bf16 %v1268_v55, %v1267_v3  ;;  %v2990_v10 = vpop.eup %2989 }
 0x107   :  { %v1014_v14 = vsub.f32 2.0, %v950_v5  ;;  %v3527_v53 = vmul.f32 %v2321_v11, %v1079_v60  ;;  %v1016_v61 = vsub.f32 2.0, %v952_v48  ;;  %2999 = vrcp.f32 %v3512_v18 }
 0x108   :  { %v437_v59 = vpop.f32.mrf.mxu0  ;;  %v766_v26 = vmul.f32 1e-06, %v702_v40  ;;  %v771_v9 = vmul.f32 1e-06, %v707_v50  ;;  %v705_v36 = vsel %vm641_vm3, 1.0, %v3123_v49  ;;  %v1077_v24 = vmul.f32 %v2984_v44, %v1013_v41 }
 0x109   :  { %v1078_v5 = vmul.f32 %v2988_v30, %v1014_v14  ;;  %3001 = vrcp.f32 %v3517_v35  ;;  %v769_v58 = vmul.f32 1e-06, %v705_v36  ;;  %vm644_vm4 = vcmp.ge.f32.partialorder %v2772_v31, 0.0  ;;  %v3540_v3 = vpop.eup %2991  ;;  %v3574_v36 = vld [vmem:[%s4185_s1 + $0x98] sm:$0xff]  }
 0x10a   :  { %v2775_v6 = vpop.f32.mrf.mxu0  ;;  %v3532_v2 = vadd.f32 %v766_v26, %v421_v7  ;;  %v3534_v27 = vadd.f32 %v2771_v19, %v771_v9  ;;  %v1329_v11 = vpack.c.bf16 %v1266_v29, %v1265_v62  ;;  %v955_v55 = vmul.f32 %v2990_v10, %v3462_v32 }
 0x10b   :  { %v3537_v60 = vadd.f32 %v769_v58, %v434_v57  ;;  %v708_v46 = vsel %vm644_vm4, 1.0, %v3123_v49  ;;  %vm642_vm5 = vcmp.ge.f32.partialorder %v437_v59, 0.0  ;;  %v1080_v44 = vmul.f32 %v2986_v51, %v1016_v61  ;;  %v3545_v41 = vpop.eup %2993 }
 0x10c   :  { %v450_v48 = vpop.f32.mrf.mxu0  ;;  %3003 = vrcp.f32 %v3532_v2  ;;  %v772_v30 = vmul.f32 1e-06, %v708_v46  ;;  %2833 = vmatprep.mubr.msk.bf16.mxu0 %vm1361_vm0, %v1329_v11  ;;  %v706_v7 = vsel %vm642_vm5, 1.0, %v3123_v49  ;;  %vm647_vm6 = vcmp.ge.f32.partialorder %v2775_v6, 0.0 }
 0x10d   :  { %3005 = vrcp.f32 %v3534_v27  ;;  %v770_v32 = vmul.f32 1e-06, %v706_v7  ;;  %2834 = vmatmul.mubr.msk.bf16.vlgmr.msra.gmra.mxu0 %vm1361_vm0, %v1330_v23  ;;  %vm645_vm7 = vcmp.ge.f32.partialorder %v450_v48, 0.0  ;;  %v1269_v51 = vmul.f32 %v2317_v13, %v1077_v24 }
 0x10e   :  { %v2776_v19 = vpop.f32.mrf.mxu0  ;;  %v3549_v57 = vpop.eup %2995  ;;  %v1270_v14 = vmul.f32 %v2318_v21, %v1078_v5  ;;  %3007 = vrcp.f32 %v3537_v60  ;;  %v3556_v29 = vadd.f32 %v2772_v31, %v772_v30  ;;  %v711_v23 = vsel %vm647_vm6, 1.0, %v3123_v49 }
 0x10f   :  { %v3558_v50 = vpop.eup %2997  ;;  %v3560_v62 = vadd.f32 %v770_v32, %v437_v59  ;;  %v709_v61 = vsel %vm645_vm7, 1.0, %v3123_v49  ;;  %vm648_vm8 = vcmp.ge.f32.partialorder %v2776_v19, 0.0  ;;  %v1272_v13 = vmul.f32 %v2322_v20, %v1080_v44 }
 0x110   :  { %v453_v40 = vpop.f32.mrf.mxu0  ;;  %v1019_v26 = vsub.f32 2.0, %v955_v55  ;;  %v956_v1 = vmul.f32 %v3545_v41, %v3485_v45  ;;  %3009 = vrcp.f32 %v3556_v29  ;;  %v775_v31 = vmul.f32 1e-06, %v711_v23 }
 0x111   :  { %3011 = vrcp.f32 %v3560_v62  ;;  %v773_v59 = vmul.f32 1e-06, %v709_v61  ;;  %v712_v9 = vsel %vm648_vm8, 1.0, %v3123_v49  ;;  %v953_v0 = vmul.f32 %v3540_v3, %v3483_v56 }
 0x112   :  { %v2779_v21 = vpop.f32.mrf.mxu0  ;;  %v954_v20 = vmul.f32 %v3549_v57, %v3494_v38  ;;  %v959_v45 = vmul.f32 %v3558_v50, %v3501_v12  ;;  %v776_v24 = vmul.f32 1e-06, %v712_v9  ;;  %v3582_v58 = vadd.f32 %v2775_v6, %v775_v31  ;;  %v3613_v9 = vld [vmem:[%s4185_s1 + $0x90] sm:$0xff]  }
 0x113   :  { %v3584_v11 = vadd.f32 %v773_v59, %v450_v48  ;;  %v1331_v55 = vpack.c.bf16 %v1270_v14, %v1269_v51  ;;  %vm646_vm9 = vcmp.ge.f32.partialorder %v453_v40, 0.0  ;;  %v1083_v46 = vmul.f32 %v2990_v10, %v1019_v26 }
 0x114   :  { %v466_v5 = vpop.f32.mrf.mxu0  ;;  %v3586_v44 = vadd.f32 %v2776_v19, %v776_v24  ;;  %v710_v30 = vsel %vm646_vm9, 1.0, %v3123_v49  ;;  %v3000_v38 = vpop.eup %2999  ;;  %v1020_v32 = vsub.f32 2.0, %v956_v1  ;;  %3013 = vrcp.f32 %v3582_v58 }
 0x115   :  { %2837 = vmatprep.mubr.msk.bf16.mxu0 %vm1361_vm0, %v1331_v55  ;;  %v774_v12 = vmul.f32 1e-06, %v710_v30  ;;  %v1332_v6 = vpack.c.bf16 %v1272_v13, %v3527_v53  ;;  %v1017_v51 = vsub.f32 2.0, %v953_v0  ;;  %v1018_v10 = vsub.f32 2.0, %v954_v20 }
 0x116   :  { %v2780_v56 = vpop.f32.mrf.mxu0  ;;  %v3593_v48 = vpop.eup %3001  ;;  %3015 = vrcp.f32 %v3584_v11  ;;  %vm651_vm10 = vcmp.ge.f32.partialorder %v2779_v21, 0.0  ;;  %v1023_v14 = vsub.f32 2.0, %v959_v45  ;;  %v957_v53 = vmul.f32 %v3000_v38, %v3512_v18 }
 0x117   :  { %3017 = vrcp.f32 %v3586_v44  ;;  %v3599_v23 = vadd.f32 %v774_v12, %v453_v40  ;;  %2838 = vmatmul.mubr.msk.bf16.gmra.mxu0 %vm1361_vm0, %v1332_v6  ;;  %v715_v61 = vsel %vm651_vm10, 1.0, %v3123_v49  ;;  %vm649_vm11 = vcmp.ge.f32.partialorder %v466_v5, 0.0 }
 0x118   :  { %v3596_v19 = vpop.f32.mrf.mxu0  ;;  %v779_v13 = vmul.f32 1e-06, %v715_v61  ;;  %vm652_vm12 = vcmp.ge.f32.partialorder %v2780_v56, 0.0  ;;  %v1084_v31 = vmul.f32 %v3545_v41, %v1020_v32  ;;  %v713_v59 = vsel %vm649_vm11, 1.0, %v3123_v49 }
 0x119   :  { %v3004_v1 = vpop.eup %3003  ;;  %3019 = vrcp.f32 %v3599_v23  ;;  %v716_v40 = vsel %vm652_vm12, 1.0, %v3123_v49  ;;  %v960_v0 = vmul.f32 %v3593_v48, %v3517_v35  ;;  %v777_v41 = vmul.f32 1e-06, %v713_v59 }
 0x11a   :  { %v3604_v26 = vpop.f32.mrf.mxu0  ;;  %v3006_v18 = vpop.eup %3005  ;;  %v958_v20 = vmul.f32 %v3004_v1, %v3532_v2  ;;  %v3618_v45 = vadd.f32 %v2779_v21, %v779_v13  ;;  %v780_v32 = vmul.f32 1e-06, %v716_v40  ;;  %v1081_v12 = vmul.f32 %v3540_v3, %v1017_v51 }
 0x11b   :  { %v3008_v55 = vpop.eup %3007  ;;  %v963_v30 = vmul.f32 %v3006_v18, %v3534_v27  ;;  %v1082_v6 = vmul.f32 %v3549_v57, %v1018_v10  ;;  %v1087_v61 = vmul.f32 %v3558_v50, %v1023_v14  ;;  %v1021_v7 = vsub.f32 2.0, %v957_v53 }
 0x11c   :  { %v3620_v24 = vpop.f32.mrf.mxu0  ;;  %v1022_v22 = vsub.f32 2.0, %v958_v20  ;;  %v2381_v2 = vunpack.c.l.bf16 %v3613_v9  ;;  %v1276_v13 = vmul.f32 %v2330_v28, %v1084_v31  ;;  %v3631_v59 = vadd.f32 %v777_v41, %v466_v5 }
 0x11d   :  { %v3010_v21 = vpop.eup %3009  ;;  %v1273_v27 = vmul.f32 %v2325_v39, %v1081_v12  ;;  %v4188_v3 = vunpack.c.h.bf16 %v3386_v25  ;;  %v4189_v50 = vunpack.c.l.bf16 %v3357_v8  ;;  %v961_v14 = vmul.f32 %v3008_v55, %v3537_v60 }
 0x11e   :  { %v3626_v35 = vpop.f32.mrf.mxu0  ;;  %v3012_v51 = vpop.eup %3011  ;;  %v964_v53 = vmul.f32 %v3010_v21, %v3556_v29  ;;  %3021 = vrcp.f32 %v3618_v45  ;;  %v1024_v28 = vsub.f32 2.0, %v960_v0  ;;  %v1027_v5 = vsub.f32 2.0, %v963_v30 }
 0x11f   :  { %v1274_v57 = vmul.f32 %v4188_v3, %v1082_v6  ;;  %v1275_v10 = vmul.f32 %v4189_v50, %v1083_v46  ;;  %v3644_v31 = vadd.f32 %v2780_v56, %v780_v32  ;;  %v4190_v25 = vunpack.c.l.bf16 %v3369_v16 }
 0x120   :  { %v3642_v40 = vpop.f32.mrf.mxu0  ;;  %v1085_v41 = vmul.f32 %v3000_v38, %v1021_v7  ;;  %v1086_v8 = vmul.f32 %v3004_v1, %v1022_v22  ;;  %vm650_vm13 = vcmp.ge.f32.partialorder %v3596_v19, 0.0  ;;  %v962_v29 = vmul.f32 %v3012_v51, %v3560_v62 }
 0x121   :  { %v1333_v39 = vpack.c.bf16 %v1274_v57, %v1273_v27  ;;  %v3648_v20 = vmul.f32 %v4190_v25, %v1087_v61  ;;  %3023 = vrcp.f32 %v3631_v59  ;;  %v714_v46 = vsel %vm650_vm13, 1.0, %v3123_v49  ;;  %v3014_v0 = vpop.eup %3013 }
 0x122   :  { %v3651_v60 = vpop.f32.mrf.mxu0  ;;  %v1334_v56 = vpack.c.bf16 %v1276_v13, %v1275_v10  ;;  %v1025_v30 = vsub.f32 2.0, %v961_v14  ;;  %v1028_v32 = vsub.f32 2.0, %v964_v53  ;;  %v778_v12 = vmul.f32 1e-06, %v714_v46 }
 0x123   :  { %2841 = vmatprep.mubr.msk.bf16.mxu1 %vm1361_vm0, %v1333_v39  ;;  %vm655_vm14 = vcmp.ge.f32.partialorder %v3604_v26, 0.0  ;;  %v3016_v7 = vpop.eup %3015  ;;  %v1088_v38 = vmul.f32 %v3593_v48, %v1024_v28  ;;  %v1091_v1 = vmul.f32 %v3006_v18, %v1027_v5  ;;  %3025 = vrcp.f32 %v3644_v31 }
 0x124   :  { %v3658_v22 = vpop.f32.mrf.mxu0  ;;  %2842 = vmatmul.mubr.msk.bf16.vlgmr.msra.gmra.mxu1 %vm1361_vm0, %v1334_v56  ;;  %vm653_vm15 = vcmp.ge.f32.partialorder %v3620_v24, 0.0  ;;  %v3018_v62 = vpop.eup %3017  ;;  %v4191_v6 = vunpack.c.h.bf16 %v3374_v17  ;;  %v965_v13 = vmul.f32 %v3016_v7, %v3584_v11  ;;  %v3668_v27 = vadd.f32 %v778_v12, %v3596_v19 }
 0x125   :  { %v719_v3 = vsel %vm655_vm14, 1.0, %v3123_v49  ;;  %v1026_v48 = vsub.f32 2.0, %v962_v29  ;;  %v967_v18 = vmul.f32 %v3014_v0, %v3582_v58  ;;  %v968_v50 = vmul.f32 %v3018_v62, %v3586_v44 }
 0x126   :  { %v1278_v61 = vmul.f32 %v4191_v6, %v1086_v8  ;;  %v3671_v57 = vpop.f32.mrf.mxu0  ;;  %v717_v10 = vsel %vm653_vm15, 1.0, %v3123_v49  ;;  %v3020_v14 = vpop.eup %3019  ;;  %v1089_v53 = vmul.f32 %v3008_v55, %v1025_v30  ;;  %v1092_v28 = vmul.f32 %v3010_v21, %v1028_v32 }
 0x127   :  { %3027 = vrcp.f32 %v3668_v27  ;;  %v781_v11 = vmul.f32 1e-06, %v717_v10  ;;  %v1029_v19 = vsub.f32 2.0, %v965_v13  ;;  %v966_v39 = vmul.f32 %v3020_v14, %v3599_v23 }
 0x128   :  { %v3677_v5 = vpop.f32.mrf.mxu0  ;;  %v783_v25 = vmul.f32 1e-06, %v719_v3  ;;  %vm656_vm1 = vcmp.ge.f32.partialorder %v3626_v35, 0.0  ;;  %v4192_v58 = vunpack.c.l.bf16 %v3374_v17  ;;  %v4193_v44 = vunpack.c.h.bf16 %v3369_v16 }
 0x129   :  { %v1032_v46 = vsub.f32 2.0, %v968_v50  ;;  %v720_v55 = vsel %vm656_vm1, 1.0, %v3123_v49  ;;  %v1090_v56 = vmul.f32 %v3012_v51, %v1026_v48  ;;  %v1031_v30 = vsub.f32 2.0, %v967_v18 }
 0x12a   :  { %v1277_v8 = vmul.f32 %v4192_v58, %v1085_v41  ;;  %v1280_v29 = vmul.f32 %v4193_v44, %v1088_v38  ;;  %v3686_v21 = vpop.f32.mrf.mxu0  ;;  %v3689_v32 = vadd.f32 %v781_v11, %v3620_v24  ;;  %v784_v23 = vmul.f32 1e-06, %v720_v55 }
 0x12b   :  { %v4194_v12 = vunpack.c.l.bf16 %v3398_v33  ;;  %v4195_v17 = vunpack.c.l.bf16 %v3403_v34  ;;  %v1030_v16 = vsub.f32 2.0, %v966_v39  ;;  %v3699_v3 = vpop.eup %3021  ;;  %v4196_v51 = vunpack.c.h.bf16 %v3398_v33 }
 0x12c   :  { %v1335_v38 = vpack.c.bf16 %v1278_v61, %v1277_v8  ;;  %v3697_v13 = vpop.f32.mrf.mxu0  ;;  %v1093_v18 = vmul.f32 %v3016_v7, %v1029_v19  ;;  %v3704_v24 = vadd.f32 %v3604_v26, %v783_v25  ;;  %vm654_vm2 = vcmp.ge.f32.partialorder %v3642_v40, 0.0 }
 0x12d   :  { %v3693_v6 = vmul.f32 %v4194_v12, %v1091_v1  ;;  %v1281_v41 = vmul.f32 %v4195_v17, %v1089_v53  ;;  %v1284_v48 = vmul.f32 %v4196_v51, %v1092_v28  ;;  %v1096_v1 = vmul.f32 %v3018_v62, %v1032_v46 }
 0x12e   :  { %v3708_v50 = vadd.f32 %v3626_v35, %v784_v23  ;;  %2845 = vmatprep.mubr.msk.bf16.mxu1 %vm1361_vm0, %v1335_v38  ;;  %v718_v61 = vsel %vm654_vm2, 1.0, %v3123_v49  ;;  %v1336_v10 = vpack.c.bf16 %v1280_v29, %v3648_v20  ;;  %v3713_v53 = vpop.f32.mrf.mxu0  ;;  %v4197_v33 = vunpack.c.h.bf16 %v3403_v34  ;;  %v3024_v62 = vpop.eup %3023 }
 0x12f   :  { %v3717_v28 = vmul.f32 %v3014_v0, %v1031_v30  ;;  %3029 = vrcp.f32 %v3689_v32  ;;  %v782_v26 = vmul.f32 1e-06, %v718_v61  ;;  %v1094_v11 = vmul.f32 %v3020_v14, %v1030_v16 }
 0x130   :  { %v1282_v7 = vmul.f32 %v4197_v33, %v1090_v56  ;;  %v3722_v35 = vmul.f32 %v3699_v3, %v3618_v45  ;;  %2846 = vmatmul.mubr.msk.bf16.gmra.mxu1 %vm1361_vm0, %v1336_v10  ;;  %vm659_vm3 = vcmp.ge.f32.partialorder %v3651_v60, 0.0  ;;  %vm657_vm4 = vcmp.ge.f32.partialorder %v3658_v22, 0.0  ;;  %v3727_v20 = vpop.f32.mrf.mxu0  ;;  %v3735_v19 = vpop.eup %3025 }
 0x131   :  { %3031 = vrcp.f32 %v3704_v24  ;;  %v3731_v34 = vadd.f32 %v782_v26, %v3642_v40  ;;  %v723_v0 = vsel %vm659_vm3, 1.0, %v3123_v49  ;;  %v721_v14 = vsel %vm657_vm4, 1.0, %v3123_v49 }
 0x132   :  { %v4198_v45 = vunpack.c.l.bf16 %v3423_v47  ;;  %v4199_v25 = vunpack.c.h.bf16 %v3415_v42  ;;  %3033 = vrcp.f32 %v3708_v50  ;;  %v785_v8 = vmul.f32 1e-06, %v721_v14  ;;  %v3744_v44 = vpop.f32.mrf.mxu0 }
 0x133   :  { %v969_v40 = vmul.f32 %v3024_v62, %v3631_v59  ;;  %3035 = vrcp.f32 %v3731_v34  ;;  %vm660_vm5 = vcmp.ge.f32.partialorder %v3671_v57, 0.0  ;;  %v1337_v29 = vpack.c.bf16 %v1282_v7, %v1281_v41 }
 0x134   :  { %v1285_v39 = vmul.f32 %v4198_v45, %v1093_v18  ;;  %v3741_v58 = vmul.f32 %v4199_v25, %v1096_v1  ;;  %v4200_v46 = vunpack.c.h.bf16 %v3423_v47  ;;  %v1035_v56 = vsub.f32 2.0, %v3722_v35  ;;  %v3753_v12 = vpop.f32.mrf.mxu0  ;;  %v3028_v17 = vpop.eup %3027 }
 0x135   :  { %v787_v30 = vmul.f32 1e-06, %v723_v0  ;;  %v724_v23 = vsel %vm660_vm5, 1.0, %v3123_v49  ;;  %v972_v16 = vmul.f32 %v3735_v19, %v3644_v31  ;;  %v3758_v59 = vadd.f32 %v785_v8, %v3658_v22  ;;  %2849 = vmatprep.mubr.msk.bf16.mxu1 %vm1361_vm0, %v1337_v29 }
 0x136   :  { %v1286_v55 = vmul.f32 %v4200_v46, %v1094_v11  ;;  %v788_v38 = vmul.f32 1e-06, %v724_v23  ;;  %vm658_vm6 = vcmp.ge.f32.partialorder %v3677_v5, 0.0  ;;  %v970_v47 = vmul.f32 %v3028_v17, %v3668_v27  ;;  %v3766_v18 = vpop.f32.mrf.mxu0 }
 0x137   :  { %v722_v41 = vsel %vm658_vm6, 1.0, %v3123_v49  ;;  %v1338_v51 = vpack.c.bf16 %v1284_v48, %v3693_v6  ;;  %vm663_vm7 = vcmp.ge.f32.partialorder %v3686_v21, 0.0  ;;  %v1033_v1 = vsub.f32 2.0, %v969_v40 }
 0x138   :  { %v3769_v31 = vadd.f32 %v3671_v57, %v788_v38  ;;  %v786_v22 = vmul.f32 1e-06, %v722_v41  ;;  %v727_v61 = vsel %vm663_vm7, 1.0, %v3123_v49  ;;  %v1034_v10 = vsub.f32 2.0, %v970_v47  ;;  %v3777_v6 = vpop.f32.mrf.mxu0 }
 0x139   :  { %v3773_v33 = vadd.f32 %v3651_v60, %v787_v30  ;;  %2850 = vmatmul.mubr.msk.bf16.gmra.mxu1 %vm1361_vm0, %v1338_v51  ;;  %v791_v27 = vmul.f32 1e-06, %v727_v61  ;;  %vm661_vm8 = vcmp.ge.f32.partialorder %v3697_v13, 0.0  ;;  %3037 = vrcp.f32 %v3758_v59 }
 0x13a   :  { %v3781_v48 = vadd.f32 %v786_v22, %v3677_v5  ;;  %v725_v57 = vsel %vm661_vm8, 1.0, %v3123_v49  ;;  %vm664_vm9 = vcmp.ge.f32.partialorder %v3713_v53, 0.0  ;;  %v1036_v7 = vsub.f32 2.0, %v972_v16  ;;  %v3789_v11 = vpop.f32.mrf.mxu0  ;;  %v3842_v22 = vld [vmem:[%s4185_s1 + $0xa8] sm:$0xff]  }
 0x13b   :  { %v1098_v26 = vmul.f32 %v3028_v17, %v1034_v10  ;;  %3039 = vrcp.f32 %v3769_v31  ;;  %v3787_v60 = vadd.f32 %v3686_v21, %v791_v27  ;;  %v789_v35 = vmul.f32 1e-06, %v725_v57 }
 0x13c   :  { %3041 = vrcp.f32 %v3781_v48  ;;  %v728_v0 = vsel %vm664_vm9, 1.0, %v3123_v49  ;;  %v1339_v5 = vpack.c.bf16 %v1286_v55, %v1285_v39  ;;  %v3793_v14 = vpop.eup %3029  ;;  %v4201_v45 = vunpack.c.l.bf16 %v3415_v42  ;;  %v3800_v29 = vpop.f32.mrf.mxu0 }
 0x13d   :  { %v1097_v8 = vmul.f32 %v3024_v62, %v1033_v1  ;;  %v2386_v40 = vunpack.c.h.bf16 %v3574_v36  ;;  %v2382_v21 = vunpack.c.h.bf16 %v3613_v9  ;;  %3043 = vrcp.f32 %v3773_v33 }
 0x13e   :  { %v1287_v25 = vmul.f32 %v4201_v45, %v3717_v28  ;;  %v3804_v46 = vadd.f32 %v789_v35, %v3697_v13  ;;  %v792_v30 = vmul.f32 1e-06, %v728_v0  ;;  %2853 = vmatprep.mubr.msk.bf16.mxu1 %vm1361_vm0, %v1339_v5  ;;  %vm662_vm10 = vcmp.ge.f32.partialorder %v3727_v20, 0.0  ;;  %v3808_v39 = vpop.eup %3031  ;;  %v3815_v17 = vpop.f32.mrf.mxu0 }
 0x13f   :  { %v1099_v42 = vmul.f32 %v3699_v3, %v1035_v56  ;;  %v4202_v28 = vunpack.c.h.bf16 %v3437_v54  ;;  %v726_v55 = vsel %vm662_vm10, 1.0, %v3123_v49  ;;  %v3034_v13 = vpop.eup %3033  ;;  %v1100_v16 = vmul.f32 %v3735_v19, %v1036_v7 }
 0x140   :  { %v1340_v23 = vpack.c.bf16 %v3741_v58, %v1287_v25  ;;  %v973_v38 = vmul.f32 %v3793_v14, %v3689_v32  ;;  %3045 = vrcp.f32 %v3787_v60  ;;  %v790_v47 = vmul.f32 1e-06, %v726_v55  ;;  %v3036_v41 = vpop.eup %3035  ;;  %v3827_v58 = vpop.f32.mrf.mxu0 }
 0x141   :  { %v1290_v62 = vmul.f32 %v4202_v28, %v1098_v26  ;;  %v4203_v3 = vunpack.c.l.bf16 %v3437_v54  ;;  %3047 = vrcp.f32 %v3804_v46  ;;  %vm667_vm11 = vcmp.ge.f32.partialorder %v3744_v44, 0.0 }
 0x142   :  { %2854 = vmatmul.mubr.msk.bf16.gmra.mxu1 %vm1361_vm0, %v1340_v23  ;;  %vm665_vm12 = vcmp.ge.f32.partialorder %v3753_v12, 0.0  ;;  %v974_v19 = vmul.f32 %v3036_v41, %v3731_v34  ;;  %v3831_v32 = vadd.f32 %v3713_v53, %v792_v30  ;;  %v3834_v51 = vadd.f32 %v790_v47, %v3727_v20  ;;  %v3845_v10 = vpop.f32.mrf.mxu0  ;;  %v3873_v23 = vld [vmem:[%s4185_s1 + $0xb8] sm:$0xff]  }
 0x143   :  { %v1289_v56 = vmul.f32 %v4203_v3, %v1097_v8  ;;  %vm668_vm13 = vcmp.ge.f32.partialorder %v3766_v18, 0.0  ;;  %v976_v54 = vmul.f32 %v3034_v13, %v3708_v50  ;;  %v731_v1 = vsel %vm667_vm11, 1.0, %v3123_v49  ;;  %v3855_v50 = vld [vmem:[%s4185_s1 + $0xa0] sm:$0xff]  }
 0x144   :  { %v729_v61 = vsel %vm665_vm12, 1.0, %v3123_v49  ;;  %v4204_v53 = vunpack.c.h.bf16 %v3432_v52  ;;  %v975_v27 = vmul.f32 %v3808_v39, %v3704_v24  ;;  %v1037_v57 = vsub.f32 2.0, %v973_v38  ;;  %v3860_v0 = vpop.f32.mrf.mxu0 }
 0x145   :  { %v1341_v34 = vpack.c.bf16 %v1290_v62, %v1289_v56  ;;  %3049 = vrcp.f32 %v3834_v51  ;;  %v1038_v7 = vsub.f32 2.0, %v974_v19  ;;  %v795_v26 = vmul.f32 1e-06, %v731_v1 }
 0x146   :  { %v1292_v20 = vmul.f32 %v4204_v53, %v1100_v16  ;;  %v732_v35 = vsel %vm668_vm13, 1.0, %v3123_v49  ;;  %vm666_vm14 = vcmp.ge.f32.partialorder %v3777_v6, 0.0  ;;  %3051 = vrcp.f32 %v3831_v32  ;;  %v3865_v25 = vpop.eup %3037  ;;  %v3878_v16 = vld [vmem:[%s4185_s1 + $0xb0] sm:$0xff]   ;;  %v3880_v38 = vpop.f32.mrf.mxu0 }
 0x147   :  { %2857 = vmatprep.mubr.msk.bf16.mxu1 %vm1361_vm0, %v1341_v34  ;;  %v793_v5 = vmul.f32 1e-06, %v729_v61  ;;  %v730_v45 = vsel %vm666_vm14, 1.0, %v3123_v49  ;;  %v4205_v8 = vunpack.c.l.bf16 %v3432_v52  ;;  %v1040_v28 = vsub.f32 2.0, %v976_v54 }
 0x148   :  { %v2389_v62 = vunpack.c.l.bf16 %v3855_v50  ;;  %v794_v55 = vmul.f32 1e-06, %v730_v45  ;;  %v3040_v47 = vpop.eup %3039  ;;  %v1039_v3 = vsub.f32 2.0, %v975_v27  ;;  %v796_v52 = vmul.f32 1e-06, %v732_v35  ;;  %v3888_v53 = vpop.f32.mrf.mxu0 }
 0x149   :  { %v1291_v30 = vmul.f32 %v4205_v8, %v1099_v42  ;;  %v2390_v56 = vunpack.c.h.bf16 %v3855_v50  ;;  %v3042_v19 = vpop.eup %3041  ;;  %v1101_v54 = vmul.f32 %v3793_v14, %v1037_v57  ;;  %v1102_v1 = vmul.f32 %v3036_v41, %v1038_v7 }
 0x14a   :  { %v3886_v61 = vadd.f32 %v3744_v44, %v795_v26  ;;  %v3891_v45 = vadd.f32 %v793_v5, %v3753_v12  ;;  %v3044_v24 = vpop.eup %3043  ;;  %v1104_v42 = vmul.f32 %v3034_v13, %v1040_v28  ;;  %v978_v14 = vmul.f32 %v3042_v19, %v3781_v48  ;;  %v3902_v44 = vpop.f32.mrf.mxu0 }
 0x14b   :  { %v1342_v34 = vpack.c.bf16 %v1292_v20, %v1291_v30  ;;  %v3898_v41 = vadd.f32 %v794_v55, %v3777_v6  ;;  %vm671_vm15 = vcmp.ge.f32.partialorder %v3789_v11, 0.0  ;;  %v1103_v12 = vmul.f32 %v3808_v39, %v1039_v3 }
 0x14c   :  { %v977_v20 = vmul.f32 %v3865_v25, %v3758_v59  ;;  %v980_v57 = vmul.f32 %v3040_v47, %v3769_v31  ;;  %v3909_v13 = vadd.f32 %v3766_v18, %v796_v52  ;;  %v4206_v6 = vunpack.c.l.bf16 %v3457_v15  ;;  %v3927_v55 = vpop.f32.mrf.mxu0 }
 0x14d   :  { %2858 = vmatmul.mubr.msk.bf16.gmra.mxu1 %vm1361_vm0, %v1342_v34  ;;  %v3911_v48 = vpop.eup %3045  ;;  %v4207_v26 = vunpack.c.h.bf16 %v3457_v15  ;;  %3053 = vrcp.f32 %v3886_v61  ;;  %vm669_vm1 = vcmp.ge.f32.partialorder %v3800_v29, 0.0  ;;  %v979_v59 = vmul.f32 %v3044_v24, %v3773_v33 }
 0x14e   :  { %v1293_v7 = vmul.f32 %v4206_v6, %v1101_v54  ;;  %v3048_v39 = vpop.eup %3047  ;;  %3055 = vrcp.f32 %v3891_v45  ;;  %v735_v18 = vsel %vm671_vm15, 1.0, %v3123_v49  ;;  %vm672_vm2 = vcmp.ge.f32.partialorder %v3815_v17, 0.0 }
 0x14f   :  { %v1294_v5 = vmul.f32 %v4207_v26, %v1102_v1  ;;  %v4208_v31 = vunpack.c.h.bf16 %v3446_v4  ;;  %v1042_v28 = vsub.f32 2.0, %v978_v14  ;;  %3057 = vrcp.f32 %v3898_v41 }
 0x150   :  { %v733_v15 = vsel %vm669_vm1, 1.0, %v3123_v49  ;;  %v4209_v3 = vunpack.c.l.bf16 %v3446_v4  ;;  %v1041_v33 = vsub.f32 2.0, %v977_v20  ;;  %v1044_v54 = vsub.f32 2.0, %v980_v57  ;;  %v3940_v20 = vpop.f32.mrf.mxu0 }
 0x151   :  { %v1296_v30 = vmul.f32 %v4208_v31, %v1104_v42  ;;  %3059 = vrcp.f32 %v3909_v13  ;;  %v981_v34 = vmul.f32 %v3048_v39, %v3804_v46  ;;  %v799_v6 = vmul.f32 1e-06, %v735_v18 }
 0x152   :  { %v1295_v52 = vmul.f32 %v4209_v3, %v1103_v12  ;;  %v3050_v1 = vpop.eup %3049  ;;  %v736_v42 = vsel %vm672_vm2, 1.0, %v3123_v49  ;;  %v1343_v14 = vpack.c.bf16 %v1294_v5, %v1293_v7  ;;  %v1043_v26 = vsub.f32 2.0, %v979_v59  ;;  %v3957_v3 = vpop.f32.mrf.mxu0 }
 0x153   :  { %v982_v31 = vmul.f32 %v3050_v1, %v3834_v51  ;;  %v797_v8 = vmul.f32 1e-06, %v733_v15  ;;  %v2398_v27 = vunpack.c.h.bf16 %v3878_v16  ;;  %v3052_v35 = vpop.eup %3051  ;;  %v1106_v4 = vmul.f32 %v3042_v19, %v1042_v28 }
 0x154   :  { %v983_v12 = vmul.f32 %v3911_v48, %v3787_v60  ;;  %2861 = vmatprep.mubr.msk.bf16.mxu1 %vm1361_vm0, %v1343_v14  ;;  %vm670_vm3 = vcmp.ge.f32.partialorder %v3827_v58, 0.0  ;;  %v1344_v46 = vpack.c.bf16 %v1296_v30, %v1295_v52  ;;  %v1105_v57 = vmul.f32 %v3865_v25, %v1041_v33 }
 0x155   :  { %v1108_v7 = vmul.f32 %v3040_v47, %v1044_v54  ;;  %v1046_v5 = vsub.f32 2.0, %v982_v31  ;;  %v800_v51 = vmul.f32 1e-06, %v736_v42  ;;  %v1045_v59 = vsub.f32 2.0, %v981_v34 }
 0x156   :  { %v3944_v18 = vadd.f32 %v3789_v11, %v799_v6  ;;  %v734_v19 = vsel %vm670_vm3, 1.0, %v3123_v49  ;;  %2862 = vmatmul.mubr.msk.bf16.gmra.mxu1 %vm1361_vm0, %v1344_v46  ;;  %vm673_vm4 = vcmp.ge.f32.partialorder %v3860_v0, 0.0  ;;  %v984_v60 = vmul.f32 %v3052_v35, %v3831_v32 }
 0x157   :  { %v3951_v30 = vadd.f32 %v797_v8, %v3800_v29  ;;  %v798_v28 = vmul.f32 1e-06, %v734_v19  ;;  %vm676_vm5 = vcmp.ge.f32.partialorder %v3880_v38, 0.0  ;;  %v1107_v25 = vmul.f32 %v3044_v24, %v1043_v26  ;;  %v3969_v29 = vld [vmem:[%s4185_s1 + $0xc8] sm:$0xff]  }
 0x158   :  { %v1298_v47 = vmul.f32 %v2374_v43, %v1106_v4  ;;  %v1047_v11 = vsub.f32 2.0, %v983_v12  ;;  %v737_v15 = vsel %vm673_vm4, 1.0, %v3123_v49  ;;  %v1110_v52 = vmul.f32 %v3050_v1, %v1046_v5  ;;  %v3987_v4 = vpop.f32.mrf.mxu0 }
 0x159   :  { %v3960_v33 = vadd.f32 %v3815_v17, %v800_v51  ;;  %v3963_v32 = vadd.f32 %v798_v28, %v3827_v58  ;;  %vm675_vm6 = vcmp.ge.f32.partialorder %v3845_v10, 0.0  ;;  %v1109_v43 = vmul.f32 %v3048_v39, %v1045_v59 }
 0x15a   :  { %3061 = vrcp.f32 %v3944_v18  ;;  %v801_v24 = vmul.f32 1e-06, %v737_v15  ;;  %v740_v8 = vsel %vm676_vm5, 1.0, %v3123_v49  ;;  %v3973_v54 = vpop.eup %3053  ;;  %v4210_v17 = vunpack.c.l.bf16 %v3491_v37 }
 0x15b   :  { %v4211_v58 = vunpack.c.h.bf16 %v3469_v63  ;;  %v1048_v6 = vsub.f32 2.0, %v984_v60  ;;  %3063 = vrcp.f32 %v3951_v30  ;;  %v3980_v42 = vpop.eup %3055  ;;  %v4212_v39 = vunpack.c.l.bf16 %v3469_v63 }
 0x15c   :  { %v1297_v1 = vmul.f32 %v4210_v17, %v1105_v57  ;;  %3065 = vrcp.f32 %v3963_v32  ;;  %v739_v26 = vsel %vm675_vm6, 1.0, %v3123_v49  ;;  %v2409_v31 = vunpack.c.l.bf16 %v3969_v29  ;;  %v3058_v37 = vpop.eup %3057 }
 0x15d   :  { %v1300_v34 = vmul.f32 %v4211_v58, %v1108_v7  ;;  %v1299_v14 = vmul.f32 %v4212_v39, %v1107_v25  ;;  %v1302_v12 = vmul.f32 %v2382_v21, %v1110_v52  ;;  %3067 = vrcp.f32 %v3960_v33 }
 0x15e   :  { %v804_v46 = vmul.f32 1e-06, %v740_v8  ;;  %v1345_v57 = vpack.c.bf16 %v1298_v47, %v1297_v1  ;;  %v3060_v7 = vpop.eup %3059  ;;  %v1111_v63 = vmul.f32 %v3911_v48, %v1047_v11  ;;  %v1301_v5 = vmul.f32 %v2381_v2, %v1109_v43 }
 0x15f   :  { %v3996_v51 = vadd.f32 %v801_v24, %v3860_v0  ;;  %vm674_vm7 = vcmp.ge.f32.partialorder %v3888_v53, 0.0  ;;  %v1112_v59 = vmul.f32 %v3052_v35, %v1048_v6  ;;  %v803_v19 = vmul.f32 1e-06, %v739_v26  ;;  %v4006_v0 = vpop.f32.mrf.mxu0 }
 0x160   :  { %2865 = vmatprep.mubr.msk.bf16.mxu1 %vm1361_vm0, %v1345_v57  ;;  %v738_v21 = vsel %vm674_vm7, 1.0, %v3123_v49  ;;  %v1346_v60 = vpack.c.bf16 %v1300_v34, %v1299_v14  ;;  %v987_v28 = vmul.f32 %v3973_v54, %v3886_v61  ;;  %v985_v48 = vmul.f32 %v3980_v42, %v3891_v45 }
 0x161   :  { %v986_v9 = vmul.f32 %v3058_v37, %v3898_v41  ;;  %v802_v2 = vmul.f32 1e-06, %v738_v21  ;;  %v4009_v25 = vadd.f32 %v3880_v38, %v804_v46  ;;  %vm677_vm8 = vcmp.ge.f32.partialorder %v3927_v55, 0.0  ;;  %v4035_v15 = vpop.f32.mrf.mxu0 }
 0x162   :  { %2866 = vmatmul.mubr.msk.bf16.gmra.mxu1 %vm1361_vm0, %v1346_v60  ;;  %vm680_vm9 = vcmp.ge.f32.partialorder %v3940_v20, 0.0  ;;  %v1347_v35 = vpack.c.bf16 %v1302_v12, %v1301_v5  ;;  %v988_v61 = vmul.f32 %v3060_v7, %v3909_v13  ;;  %3069 = vrcp.f32 %v3996_v51 }
 0x163   :  { %v4017_v45 = vadd.f32 %v802_v2, %v3888_v53  ;;  %vm679_vm10 = vcmp.ge.f32.partialorder %v3902_v44, 0.0  ;;  %v1304_v38 = vmul.f32 %v2386_v40, %v1112_v59  ;;  %v4023_v41 = vadd.f32 %v3845_v10, %v803_v19  ;;  %v4031_v53 = vld [vmem:[%s4185_s1 + $0xc0] sm:$0xff]  }
 0x164   :  { %v741_v47 = vsel %vm677_vm8, 1.0, %v3123_v49  ;;  %2869 = vmatprep.mubr.msk.bf16.mxu1 %vm1361_vm0, %v1347_v35  ;;  %vm678_vm11 = vcmp.ge.f32.partialorder %v3957_v3, 0.0  ;;  %v1051_v13 = vsub.f32 2.0, %v987_v28  ;;  %v1050_v11 = vsub.f32 2.0, %v986_v9 }
 0x165   :  { %3071 = vrcp.f32 %v4017_v45  ;;  %v744_v40 = vsel %vm680_vm9, 1.0, %v3123_v49  ;;  %v743_v10 = vsel %vm679_vm10, 1.0, %v3123_v49  ;;  %v805_v52 = vmul.f32 1e-06, %v741_v47 }
 0x166   :  { %3073 = vrcp.f32 %v4009_v25  ;;  %v742_v43 = vsel %vm678_vm11, 1.0, %v3123_v49  ;;  %v4213_v24 = vunpack.c.l.bf16 %v3574_v36  ;;  %v1049_v17 = vsub.f32 2.0, %v985_v48 }
 0x167   :  { %v1052_v1 = vsub.f32 2.0, %v988_v61  ;;  %v806_v58 = vmul.f32 1e-06, %v742_v43  ;;  %v3062_v34 = vpop.eup %3061  ;;  %3075 = vrcp.f32 %v4023_v41  ;;  %v2405_v6 = vunpack.c.l.bf16 %v4031_v53 }
 0x168   :  { %v1303_v8 = vmul.f32 %v4213_v24, %v1111_v63  ;;  %v4045_v39 = vadd.f32 %v805_v52, %v3927_v55  ;;  %v808_v14 = vmul.f32 1e-06, %v744_v40  ;;  %v3064_v26 = vpop.eup %3063  ;;  %v1114_v12 = vmul.f32 %v3058_v37, %v1050_v11  ;;  %v597_v63 = vpop.f32.mrf.mxu0 }
 0x169   :  { %v807_v46 = vmul.f32 1e-06, %v743_v10  ;;  %v4048_v57 = vadd.f32 %v806_v58, %v3957_v3  ;;  %v3066_v5 = vpop.eup %3065  ;;  %v1115_v59 = vmul.f32 %v3973_v54, %v1051_v13  ;;  %v2410_v19 = vunpack.c.h.bf16 %v3969_v29 }
 0x16a   :  { %v1348_v36 = vpack.c.bf16 %v1304_v38, %v1303_v8  ;;  %v2406_v21 = vunpack.c.h.bf16 %v4031_v53  ;;  %3077 = vrcp.f32 %v4045_v39  ;;  %v3068_v55 = vpop.eup %3067  ;;  %v1113_v60 = vmul.f32 %v3980_v42, %v1049_v17  ;;  %v4071_v9 = vpop.f32.mrf.mxu0 }
 0x16b   :  { %v1116_v28 = vmul.f32 %v3060_v7, %v1052_v1  ;;  %v991_v37 = vmul.f32 %v3062_v34, %v3944_v18  ;;  %vm683_vm12 = vcmp.ge.f32.partialorder %v3987_v4, 0.0  ;;  %v989_v3 = vmul.f32 %v3064_v26, %v3951_v30 }
 0x16c   :  { %2870 = vmatmul.mubr.msk.bf16.gmra.mxu1 %vm1361_vm0, %v1348_v36  ;;  %v4060_v54 = vadd.f32 %v3940_v20, %v808_v14  ;;  %3079 = vrcp.f32 %v4048_v57  ;;  %vm681_vm13 = vcmp.ge.f32.partialorder %v4006_v0, 0.0  ;;  %v1306_v48 = vmul.f32 %v2390_v56, %v1114_v12 }
 0x16d   :  { %v990_v42 = vmul.f32 %v3066_v5, %v3963_v32  ;;  %v4068_v18 = vadd.f32 %v3902_v44, %v807_v46  ;;  %v745_v7 = vsel %vm681_vm13, 1.0, %v3123_v49  ;;  %v992_v30 = vmul.f32 %v3068_v55, %v3960_v33 }
 0x16e   :  { %v747_v20 = vsel %vm683_vm12, 1.0, %v3123_v49  ;;  %v809_v2 = vmul.f32 1e-06, %v745_v7  ;;  %vm684_vm14 = vcmp.ge.f32.partialorder %v4035_v15, 0.0  ;;  %v1305_v35 = vmul.f32 %v2389_v62, %v1113_v60  ;;  %v610_v62 = vpop.f32.mrf.mxu0 }
 0x16f   :  { %v4214_v56 = vunpack.c.h.bf16 %v3842_v22  ;;  %v1055_v61 = vsub.f32 2.0, %v991_v37  ;;  %v748_v44 = vsel %vm684_vm14, 1.0, %v3123_v49  ;;  %v3070_v38 = vpop.eup %3069  ;;  %v1053_v47 = vsub.f32 2.0, %v989_v3 }
 0x170   :  { %3081 = vrcp.f32 %v4060_v54  ;;  %v4083_v33 = vadd.f32 %v809_v2, %v4006_v0  ;;  %v812_v13 = vmul.f32 1e-06, %v748_v44  ;;  %v1054_v11 = vsub.f32 2.0, %v990_v42 }
 0x171   :  { %v1308_v32 = vmul.f32 %v4214_v56, %v1116_v28  ;;  %3083 = vrcp.f32 %v4068_v18  ;;  %v811_v40 = vmul.f32 1e-06, %v747_v20  ;;  %v1349_v50 = vpack.c.bf16 %v1306_v48, %v1305_v35 }
 0x172   :  { %v3072_v10 = vpop.eup %3071  ;;  %v4215_v52 = vunpack.c.l.bf16 %v3842_v22  ;;  %v1056_v24 = vsub.f32 2.0, %v992_v30  ;;  %3085 = vrcp.f32 %v4083_v33  ;;  %vm682_vm15 = vcmp.ge.f32.partialorder %v597_v63, 0.0 }
 0x173   :  { %v3074_v8 = vpop.eup %3073  ;;  %v993_v17 = vmul.f32 %v3070_v38, %v3996_v51  ;;  %v994_v0 = vmul.f32 %v3072_v10, %v4017_v45  ;;  %v4092_v1 = vadd.f32 %v4035_v15, %v812_v13  ;;  %2873 = vmatprep.mubr.msk.bf16.mxu1 %vm1361_vm0, %v1349_v50  ;;  %v746_v58 = vsel %vm682_vm15, 1.0, %v3123_v49  ;;  %v2816_v51 = vpop.f32.mrf.mxu0 }
 0x174   :  { %v1307_v43 = vmul.f32 %v4215_v52, %v1115_v59  ;;  %v1119_v14 = vmul.f32 %v3062_v34, %v1055_v61  ;;  %v1117_v12 = vmul.f32 %v3064_v26, %v1053_v47  ;;  %v810_v22 = vmul.f32 1e-06, %v746_v58  ;;  %v4096_v36 = vpop.eup %3075 }
 0x175   :  { %v1118_v59 = vmul.f32 %v3066_v5, %v1054_v11  ;;  %v1058_v60 = vsub.f32 2.0, %v994_v0  ;;  %v4099_v28 = vadd.f32 %v3987_v4, %v811_v40  ;;  %vm687_vm1 = vcmp.ge.f32.partialorder %v4071_v9, 0.0  ;;  %v613_v44 = vpop.f32.mrf.mxu0 }
 0x176   :  { %v1350_v46 = vpack.c.bf16 %v1308_v32, %v1307_v43  ;;  %v1120_v45 = vmul.f32 %v3068_v55, %v1056_v24  ;;  %v996_v15 = vmul.f32 %v3074_v8, %v4009_v25  ;;  %v4103_v37 = vadd.f32 %v810_v22, %v597_v63 }
 0x177   :  { %vm685_vm2 = vcmp.ge.f32.partialorder %v610_v62, 0.0  ;;  %v3078_v34 = vpop.eup %3077  ;;  %v1057_v26 = vsub.f32 2.0, %v993_v17  ;;  %3087 = vrcp.f32 %v4092_v1  ;;  %v751_v5 = vsel %vm687_vm1, 1.0, %v3123_v49 }
 0x178   :  { %2874 = vmatmul.mubr.msk.bf16.gmra.mxu1 %vm1361_vm0, %v1350_v46  ;;  %v749_v4 = vsel %vm685_vm2, 1.0, %v3123_v49  ;;  %v995_v3 = vmul.f32 %v4096_v36, %v4023_v41  ;;  %3089 = vrcp.f32 %v4103_v37  ;;  %vm688_vm3 = vcmp.ge.f32.partialorder %v2816_v51, 0.0 }
 0x179   :  { %v813_v55 = vmul.f32 1e-06, %v749_v4  ;;  %v3080_v25 = vpop.eup %3079  ;;  %v1310_v63 = vmul.f32 %v2398_v27, %v1118_v59  ;;  %v1122_v48 = vmul.f32 %v3072_v10, %v1058_v60  ;;  %v997_v42 = vmul.f32 %v3078_v34, %v4045_v39  ;;  %v2622_v4 = vld [vmem:[%s4185_s1 + $0xe0] sm:$0xff]  }
 0x17a   :  { %3091 = vrcp.f32 %v4099_v28  ;;  %v998_v7 = vmul.f32 %v3080_v25, %v4048_v57  ;;  %v815_v30 = vmul.f32 1e-06, %v751_v5  ;;  %v752_v41 = vsel %vm688_vm3, 1.0, %v3123_v49  ;;  %v2621_v5 = vld [vmem:[%s4185_s1 + $0xd8] sm:$0xff]  }
 0x17b   :  { %v4117_v20 = vadd.f32 %v813_v55, %v610_v62  ;;  %v4216_v2 = vunpack.c.l.bf16 %v3878_v16  ;;  %v1121_v56 = vmul.f32 %v3070_v38, %v1057_v26  ;;  %v1060_v32 = vsub.f32 2.0, %v996_v15  ;;  %v2620_v16 = vld [vmem:[%s4185_s1 + $0xd0] sm:$0xff]  }
 0x17c   :  { %v816_v61 = vmul.f32 1e-06, %v752_v41  ;;  %v4217_v27 = vunpack.c.l.bf16 %v3873_v23  ;;  %v4218_v39 = vunpack.c.h.bf16 %v3873_v23  ;;  %v1062_v11 = vsub.f32 2.0, %v998_v7 }
 0x17d   :  { %v1309_v35 = vmul.f32 %v4216_v2, %v1117_v12  ;;  %3093 = vrcp.f32 %v4117_v20  ;;  %v3082_v57 = vpop.eup %3081  ;;  %v1314_v40 = vmul.f32 %v2406_v21, %v1122_v48  ;;  %v1061_v50 = vsub.f32 2.0, %v997_v42 }
 0x17e   :  { %v1311_v47 = vmul.f32 %v4217_v27, %v1119_v14  ;;  %v1312_v13 = vmul.f32 %v4218_v39, %v1120_v45  ;;  %v4132_v38 = vadd.f32 %v2816_v51, %v816_v61  ;;  %v3084_v10 = vpop.eup %3083  ;;  %v1059_v52 = vsub.f32 2.0, %v995_v3 }
 0x17f   :  { %v1351_v62 = vpack.c.bf16 %v1310_v63, %v1309_v35  ;;  %v2414_v43 = vunpack.c.h.bf16 %v2620_v16  ;;  %v4135_v23 = vadd.f32 %v4071_v9, %v815_v30  ;;  %vm686_vm4 = vcmp.ge.f32.partialorder %v613_v44, 0.0  ;;  %v3086_v24 = vpop.eup %3085 }
 0x180   :  { %v1313_v17 = vmul.f32 %v2405_v6, %v1121_v56  ;;  %v1124_v21 = vmul.f32 %v3074_v8, %v1060_v32  ;;  %v1126_v0 = vmul.f32 %v3080_v25, %v1062_v11  ;;  %v750_v58 = vsel %vm686_vm4, 1.0, %v3123_v49 }
 0x181   :  { %2877 = vmatprep.mubr.msk.bf16.mxu1 %vm1361_vm0, %v1351_v62  ;;  %v1000_v14 = vmul.f32 %v3082_v57, %v4060_v54  ;;  %3095 = vrcp.f32 %v4132_v38  ;;  %v814_v12 = vmul.f32 1e-06, %v750_v58  ;;  %v1352_v22 = vpack.c.bf16 %v1312_v13, %v1311_v47  ;;  %v2623_v13 = vld [vmem:[%s4185_s1 + $0xe8] sm:$0xff]  }
 0x182   :  { %v1125_v46 = vmul.f32 %v3078_v34, %v1061_v50  ;;  %v2413_v9 = vunpack.c.l.bf16 %v2620_v16  ;;  %v1001_v59 = vmul.f32 %v3086_v24, %v4083_v33  ;;  %v1353_v60 = vpack.c.bf16 %v1314_v40, %v1313_v17  ;;  %v2624_v16 = vld [vmem:[%s4185_s1 + $0xf0] sm:$0xff]  }
 0x183   :  { %v1123_v53 = vmul.f32 %v4096_v36, %v1059_v52  ;;  %v999_v6 = vmul.f32 %v3084_v10, %v4068_v18  ;;  %3097 = vrcp.f32 %v4135_v23  ;;  %v878_v8 = vadd.f32 %v814_v12, %v613_v44  ;;  %2878 = vmatmul.mubr.msk.bf16.gmra.mxu1 %vm1361_vm0, %v1352_v22 }
 0x184   :  { %v1318_v49 = vmul.f32 %v2414_v43, %v1126_v0  ;;  %2881 = vmatprep.mubr.msk.bf16.mxu1 %vm1361_vm0, %v1353_v60  ;;  %v3088_v54 = vpop.eup %3087  ;;  %v1316_v51 = vmul.f32 %v2410_v19, %v1124_v21  ;;  %v1064_v45 = vsub.f32 2.0, %v1000_v14  ;;  %v1317_v15 = vmul.f32 %v2413_v9, %v1125_v46 }
 0x185   :  { %3099 = vrcp.f32 %v878_v8  ;;  %v3090_v33 = vpop.eup %3089  ;;  %v1065_v34 = vsub.f32 2.0, %v1001_v59  ;;  %v1315_v18 = vmul.f32 %v2409_v31, %v1123_v53  ;;  %v1063_v26 = vsub.f32 2.0, %v999_v6 }
 0x186   :  { %v1002_v19 = vmul.f32 %v3090_v33, %v4103_v37  ;;  %v2418_v3 = vunpack.c.h.bf16 %v2621_v5  ;;  %v2422_v55 = vunpack.c.h.bf16 %v2622_v4  ;;  %v1355_v25 = vpack.c.bf16 %v1318_v49, %v1317_v15 }
 0x187   :  { %v3092_v36 = vpop.eup %3091  ;;  %v1128_v63 = vmul.f32 %v3082_v57, %v1064_v45  ;;  %v1004_v48 = vmul.f32 %v3088_v54, %v4092_v1  ;;  %v1354_v29 = vpack.c.bf16 %v1316_v51, %v1315_v18  ;;  %v1129_v7 = vmul.f32 %v3086_v24, %v1065_v34 }
 0x188   :  { %v1066_v42 = vsub.f32 2.0, %v1002_v19  ;;  %v2421_v30 = vunpack.c.l.bf16 %v2622_v4  ;;  %v1127_v41 = vmul.f32 %v3084_v10, %v1063_v26  ;;  %v2417_v2 = vunpack.c.l.bf16 %v2621_v5 }
 0x189   :  { %v1003_v35 = vmul.f32 %v3092_v36, %v4099_v28  ;;  %v1320_v37 = vmul.f32 %v2418_v3, %v1128_v63  ;;  %v1068_v32 = vsub.f32 2.0, %v1004_v48  ;;  %v2426_v28 = vunpack.c.h.bf16 %v2623_v13 }
 0x18a   :  { %v3094_v31 = vpop.eup %3093  ;;  %v1130_v56 = vmul.f32 %v3090_v33, %v1066_v42  ;;  %v1321_v27 = vmul.f32 %v2421_v30, %v1129_v7  ;;  %v1319_v47 = vmul.f32 %v2417_v2, %v1127_v41  ;;  %v2425_v43 = vunpack.c.l.bf16 %v2623_v13 }
 0x18b   :  { %2882 = vmatmul.mubr.msk.bf16.gmra.mxu1 %vm1361_vm0, %v1354_v29  ;;  %v1005_v44 = vmul.f32 %v3094_v31, %v4117_v20  ;;  %v1067_v39 = vsub.f32 2.0, %v1003_v35  ;;  %v1132_v40 = vmul.f32 %v3088_v54, %v1068_v32  ;;  %v2429_v21 = vunpack.c.l.bf16 %v2624_v16 }
 0x18c   :  { %2885 = vmatprep.mubr.msk.bf16.mxu1 %vm1361_vm0, %v1355_v25  ;;  %v1322_v61 = vmul.f32 %v2422_v55, %v1130_v56  ;;  %v1356_v20 = vpack.c.bf16 %v1320_v37, %v1319_v47  ;;  %v2430_v0 = vunpack.c.h.bf16 %v2624_v16 }
 0x18d   :  { %v1069_v50 = vsub.f32 2.0, %v1005_v44  ;;  %v1131_v52 = vmul.f32 %v3092_v36, %v1067_v39  ;;  %v1324_v58 = vmul.f32 %v2426_v28, %v1132_v40 }
 0x18e   :  { %v3096_v1 = vpop.eup %3095  ;;  %v1357_v57 = vpack.c.bf16 %v1322_v61, %v1321_v27 }
 0x18f   :  { %v1008_v62 = vmul.f32 %v3096_v1, %v4132_v38  ;;  %v1133_v14 = vmul.f32 %v3094_v31, %v1069_v50  ;;  %v1323_v46 = vmul.f32 %v2425_v43, %v1131_v52  ;;  %v2625_v38 = vld [vmem:[%s4185_s1 + $0xf8] sm:$0xff]   ;;  %s3124_s1 = smov [#allocation2]  }
 0x190   :  { %v3098_v11 = vpop.eup %3097  ;;  %v2434_v60 = vunpack.c.h.bf16 %v2625_v38  ;;  %v2433_v54 = vunpack.c.l.bf16 %v2625_v38  ;;  %s2096_s13 = sshll.u32 %s3124_s1, 4  ;;  %s2097_s13 = int_to_ptr.vmem [resolvable:$true] %s2096_s13 }
 0x191   :  { %v1007_v24 = vmul.f32 %v3098_v11, %v4135_v23  ;;  %v1072_v12 = vsub.f32 2.0, %v1008_v62  ;;  %v1325_v23 = vmul.f32 %v2429_v21, %v1133_v14  ;;  %s3101_s14 = scalar_lea.vmem %s2097_s13, 4096  ;;  %p3106_p1 = scmp.lt.s32.totalorder %s2097_s13, %s2097_s13 }
 0x192   :  { %v3100_v10 = vpop.eup %3099  ;;  %p3102_p0 = scmp.ne.s32.totalorder %s2097_s13, %s3101_s14  ;;  %p3107_p2 = scmp.lt.s32.totalorder %s3101_s14, %s3101_s14 }
 0x193   :  { %v1006_v17 = vmul.f32 %v3100_v10, %v878_v8  ;;  %2886 = vmatmul.mubr.msk.bf16.gmra.mxu1 %vm1361_vm0, %v1356_v20  ;;  %v1071_v9 = vsub.f32 2.0, %v1007_v24  ;;  %v1136_v53 = vmul.f32 %v3096_v1, %v1072_v12  ;;  %v1358_v8 = vpack.c.bf16 %v1324_v58, %v1323_v46 }
 0x194   :  { %2889 = vmatprep.mubr.msk.bf16.mxu1 %vm1361_vm0, %v1357_v57  ;;  %p3108_p3 = por %p3107_p2, %p3106_p1 }
 0x195   :  { %v1070_v22 = vsub.f32 2.0, %v1006_v17  ;;  %v1135_v49 = vmul.f32 %v3098_v11, %v1071_v9  ;;  %v1328_v45 = vmul.f32 %v2434_v60, %v1136_v53 }
 0x196   :  { %p3109_p4 = pnand %p3108_p3, %p3102_p0 }
 0x197   :  { %v1134_v59 = vmul.f32 %v3100_v10, %v1070_v22  ;;  %v1327_v33 = vmul.f32 %v2433_v54, %v1135_v49 }
 0x199   :  { %v1326_v6 = vmul.f32 %v2430_v0, %v1134_v59  ;;  %v1360_v15 = vpack.c.bf16 %v1328_v45, %v1327_v33 }
 0x19b   :  { %2890 = vmatmul.mubr.msk.bf16.gmra.mxu1 %vm1361_vm0, %v1358_v8  ;;  %v1359_v51 = vpack.c.bf16 %v1326_v6, %v1325_v23 }
 0x19d   :  { %2893 = vmatprep.mubr.msk.bf16.mxu1 %vm1361_vm0, %v1359_v51 }
 0x1a3   :  { %2894 = vmatmul.mubr.msk.bf16.gmra.mxu1 %vm1361_vm0, %v1360_v15 }
 0x1cd   :  { %v2835_v34 = vpop.f32.mrf.mxu0 }
 0x1cf   :  { %v1516_v36 = vpop.f32.mrf.mxu0 }
 0x1d1   :  { %v2836_v18 = vpop.f32.mrf.mxu0 }
 0x1d2   :  { %v2443_v26 = vpack.c.bf16 %v2836_v18, %v2835_v34 }
 0x1d3   :  { %v1519_v5 = vpop.f32.mrf.mxu0 }
 0x1d4   :  { %2626 = vst [vmem:[#allocation2 + $0x8] sm:$0xff] %v2443_v26   ;;  %v2438_v4 = vpack.c.bf16 %v1519_v5, %v1516_v36 }
 0x1d6   :  { %2439 = vst [vmem:[#allocation2] sm:$0xff] %v2438_v4  }
 0x1d7   :  { %v2839_v19 = vpop.f32.mrf.mxu0 }
 0x1d9   :  { %v1532_v3 = vpop.f32.mrf.mxu0 }
 0x1db   :  { %v2840_v55 = vpop.f32.mrf.mxu0 }
 0x1dc   :  { %v2453_v25 = vpack.c.bf16 %v2840_v55, %v2839_v19 }
 0x1dd   :  { %v1535_v63 = vpop.f32.mrf.mxu0 }
 0x1de   :  { %2628 = vst [vmem:[#allocation2 + $0x18] sm:$0xff] %v2453_v25   ;;  %v2448_v48 = vpack.c.bf16 %v1535_v63, %v1532_v3 }
 0x1e0   :  { %2627 = vst [vmem:[#allocation2 + $0x10] sm:$0xff] %v2448_v48  }
 0x1e4   :  { %v2843_v42 = vpop.f32.mrf.mxu1 }
 0x1e6   :  { %v1548_v29 = vpop.f32.mrf.mxu1 }
 0x1e8   :  { %v2844_v31 = vpop.f32.mrf.mxu1 }
 0x1e9   :  { %v2463_v7 = vpack.c.bf16 %v2844_v31, %v2843_v42 }
 0x1ea   :  { %v1551_v30 = vpop.f32.mrf.mxu1 }
 0x1eb   :  { %2630 = vst [vmem:[#allocation2 + $0x28] sm:$0xff] %v2463_v7   ;;  %v2458_v41 = vpack.c.bf16 %v1551_v30, %v1548_v29 }
 0x1ed   :  { %2629 = vst [vmem:[#allocation2 + $0x20] sm:$0xff] %v2458_v41  }
 0x1f0   :  { %v2847_v2 = vpop.f32.mrf.mxu1 }
 0x1f2   :  { %v1564_v35 = vpop.f32.mrf.mxu1 }
 0x1f4   :  { %v2848_v56 = vpop.f32.mrf.mxu1 }
 0x1f5   :  { %v2473_v37 = vpack.c.bf16 %v2848_v56, %v2847_v2 }
 0x1f6   :  { %v1567_v32 = vpop.f32.mrf.mxu1 }
 0x1f7   :  { %2632 = vst [vmem:[#allocation2 + $0x38] sm:$0xff] %v2473_v37   ;;  %v2468_v61 = vpack.c.bf16 %v1567_v32, %v1564_v35 }
 0x1f9   :  { %v2851_v44 = vpop.f32.mrf.mxu1  ;;  %2631 = vst [vmem:[#allocation2 + $0x30] sm:$0xff] %v2468_v61  }
 0x1fb   :  { %v1580_v1 = vpop.f32.mrf.mxu1 }
 0x1fd   :  { %v2852_v27 = vpop.f32.mrf.mxu1 }
 0x1fe   :  { %v2483_v47 = vpack.c.bf16 %v2852_v27, %v2851_v44 }
 0x1ff   :  { %v1583_v39 = vpop.f32.mrf.mxu1 }
 0x200   :  { %2634 = vst [vmem:[#allocation2 + $0x48] sm:$0xff] %v2483_v47   ;;  %v2478_v13 = vpack.c.bf16 %v1583_v39, %v1580_v1 }
 0x202   :  { %v2855_v11 = vpop.f32.mrf.mxu1  ;;  %2633 = vst [vmem:[#allocation2 + $0x40] sm:$0xff] %v2478_v13  }
 0x204   :  { %v1596_v28 = vpop.f32.mrf.mxu1 }
 0x206   :  { %v2856_v57 = vpop.f32.mrf.mxu1 }
 0x207   :  { %v2493_v40 = vpack.c.bf16 %v2856_v57, %v2855_v11 }
 0x208   :  { %v1599_v50 = vpop.f32.mrf.mxu1 }
 0x209   :  { %2636 = vst [vmem:[#allocation2 + $0x58] sm:$0xff] %v2493_v40   ;;  %v2488_v16 = vpack.c.bf16 %v1599_v50, %v1596_v28 }
 0x20b   :  { %2635 = vst [vmem:[#allocation2 + $0x50] sm:$0xff] %v2488_v16  }
 0x20d   :  { %v2859_v62 = vpop.f32.mrf.mxu1 }
 0x20f   :  { %v1612_v20 = vpop.f32.mrf.mxu1 }
 0x211   :  { %v2860_v10 = vpop.f32.mrf.mxu1 }
 0x212   :  { %v2503_v52 = vpack.c.bf16 %v2860_v10, %v2859_v62 }
 0x213   :  { %v1615_v43 = vpop.f32.mrf.mxu1 }
 0x214   :  { %2638 = vst [vmem:[#allocation2 + $0x68] sm:$0xff] %v2503_v52   ;;  %v2498_v24 = vpack.c.bf16 %v1615_v43, %v1612_v20 }
 0x216   :  { %2637 = vst [vmem:[#allocation2 + $0x60] sm:$0xff] %v2498_v24   ;;  %v2863_v17 = vpop.f32.mrf.mxu1 }
 0x218   :  { %v1628_v21 = vpop.f32.mrf.mxu1 }
 0x21a   :  { %v2864_v0 = vpop.f32.mrf.mxu1 }
 0x21b   :  { %v2513_v58 = vpack.c.bf16 %v2864_v0, %v2863_v17 }
 0x21c   :  { %v1631_v14 = vpop.f32.mrf.mxu1 }
 0x21d   :  { %2640 = vst [vmem:[#allocation2 + $0x78] sm:$0xff] %v2513_v58   ;;  %v2508_v12 = vpack.c.bf16 %v1631_v14, %v1628_v21 }
 0x21f   :  { %2639 = vst [vmem:[#allocation2 + $0x70] sm:$0xff] %v2508_v12  }
 0x222   :  { %v2867_v22 = vpop.f32.mrf.mxu1 }
 0x224   :  { %v1644_v46 = vpop.f32.mrf.mxu1 }
 0x226   :  { %v2868_v9 = vpop.f32.mrf.mxu1 }
 0x227   :  { %v2523_v38 = vpack.c.bf16 %v2868_v9, %v2867_v22 }
 0x228   :  { %v1647_v59 = vpop.f32.mrf.mxu1 }
 0x229   :  { %2642 = vst [vmem:[#allocation2 + $0x88] sm:$0xff] %v2523_v38   ;;  %v2518_v60 = vpack.c.bf16 %v1647_v59, %v1644_v46 }
 0x22b   :  { %2641 = vst [vmem:[#allocation2 + $0x80] sm:$0xff] %v2518_v60  }
 0x22c   :  { %v2871_v23 = vpop.f32.mrf.mxu1 }
 0x22e   :  { %v1660_v53 = vpop.f32.mrf.mxu1 }
 0x230   :  { %v2872_v6 = vpop.f32.mrf.mxu1 }
 0x231   :  { %v2533_v8 = vpack.c.bf16 %v2872_v6, %v2871_v23 }
 0x232   :  { %v1663_v49 = vpop.f32.mrf.mxu1 }
 0x233   :  { %2644 = vst [vmem:[#allocation2 + $0x98] sm:$0xff] %v2533_v8   ;;  %v2528_v54 = vpack.c.bf16 %v1663_v49, %v1660_v53 }
 0x235   :  { %2643 = vst [vmem:[#allocation2 + $0x90] sm:$0xff] %v2528_v54  }
 0x238   :  { %v2875_v51 = vpop.f32.mrf.mxu1 }
 0x23a   :  { %v1676_v45 = vpop.f32.mrf.mxu1 }
 0x23c   :  { %v2876_v33 = vpop.f32.mrf.mxu1 }
 0x23d   :  { %v2543_v15 = vpack.c.bf16 %v2876_v33, %v2875_v51 }
 0x23e   :  { %v1679_v34 = vpop.f32.mrf.mxu1 }
 0x23f   :  { %2646 = vst [vmem:[#allocation2 + $0xa8] sm:$0xff] %v2543_v15   ;;  %v2538_v36 = vpack.c.bf16 %v1679_v34, %v1676_v45 }
 0x241   :  { %2645 = vst [vmem:[#allocation2 + $0xa0] sm:$0xff] %v2538_v36  }
 0x243   :  { %v2879_v18 = vpop.f32.mrf.mxu1 }
 0x245   :  { %v1692_v26 = vpop.f32.mrf.mxu1 }
 0x247   :  { %v2880_v5 = vpop.f32.mrf.mxu1 }
 0x248   :  { %v2553_v4 = vpack.c.bf16 %v2880_v5, %v2879_v18 }
 0x249   :  { %v1695_v19 = vpop.f32.mrf.mxu1 }
 0x24a   :  { %2648 = vst [vmem:[#allocation2 + $0xb8] sm:$0xff] %v2553_v4   ;;  %v2548_v3 = vpack.c.bf16 %v1695_v19, %v1692_v26 }
 0x24b   :  { %v2883_v55 = vpop.f32.mrf.mxu1 }
 0x24c   :  { %2647 = vst [vmem:[#allocation2 + $0xb0] sm:$0xff] %v2548_v3  }
 0x24d   :  { %v1708_v25 = vpop.f32.mrf.mxu1 }
 0x24f   :  { %v2884_v63 = vpop.f32.mrf.mxu1 }
 0x250   :  { %v2563_v48 = vpack.c.bf16 %v2884_v63, %v2883_v55 }
 0x251   :  { %v1711_v42 = vpop.f32.mrf.mxu1 }
 0x252   :  { %2650 = vst [vmem:[#allocation2 + $0xc8] sm:$0xff] %v2563_v48   ;;  %v2558_v29 = vpack.c.bf16 %v1711_v42, %v1708_v25 }
 0x253   :  { %v2887_v31 = vpop.f32.mrf.mxu1 }
 0x254   :  { %2649 = vst [vmem:[#allocation2 + $0xc0] sm:$0xff] %v2558_v29  }
 0x255   :  { %v1724_v7 = vpop.f32.mrf.mxu1 }
 0x257   :  { %v2888_v30 = vpop.f32.mrf.mxu1 }
 0x258   :  { %v2573_v41 = vpack.c.bf16 %v2888_v30, %v2887_v31 }
 0x259   :  { %v1727_v2 = vpop.f32.mrf.mxu1 }
 0x25a   :  { %2652 = vst [vmem:[#allocation2 + $0xd8] sm:$0xff] %v2573_v41   ;;  %v2568_v35 = vpack.c.bf16 %v1727_v2, %v1724_v7 }
 0x25b   :  { %v2891_v56 = vpop.f32.mrf.mxu1 }
 0x25c   :  { %2651 = vst [vmem:[#allocation2 + $0xd0] sm:$0xff] %v2568_v35  }
 0x25d   :  { %v1740_v37 = vpop.f32.mrf.mxu1 }
 0x25f   :  { %v2892_v32 = vpop.f32.mrf.mxu1 }
 0x260   :  { %v2583_v61 = vpack.c.bf16 %v2892_v32, %v2891_v56 }
 0x261   :  { %v1743_v44 = vpop.f32.mrf.mxu1 }
 0x262   :  { %2654 = vst [vmem:[#allocation2 + $0xe8] sm:$0xff] %v2583_v61   ;;  %v2578_v1 = vpack.c.bf16 %v1743_v44, %v1740_v37 }
 0x263   :  { %v2895_v27 = vpop.f32.mrf.mxu1 }
 0x264   :  { %2653 = vst [vmem:[#allocation2 + $0xe0] sm:$0xff] %v2578_v1  }
 0x265   :  { %v1756_v47 = vpop.f32.mrf.mxu1 }
 0x267   :  { %v2896_v39 = vpop.f32.mrf.mxu1 }
 0x268   :  { %v2593_v13 = vpack.c.bf16 %v2896_v39, %v2895_v27 }
 0x269   :  { %v1759_v11 = vpop.f32.mrf.mxu1 }
 0x26a   :  { %2656 = vst [vmem:[#allocation2 + $0xf8] sm:$0xff] %v2593_v13   ;;  %v2588_v28 = vpack.c.bf16 %v1759_v11, %v1756_v47 }
 0x26c   :  { %2655 = vst [vmem:[#allocation2 + $0xf0] sm:$0xff] %v2588_v28  }
 0x26d   :  { %3112 = shalt.err (!%p3109_p4)
}
 0x26e   :  { %s3125_s15 = smov 64   ;;  %s3126_s16 = smov 4  }
 0x26f   :  { %2102 = dma.vmem_to_hbm [thread:$0]  %s2097_s13, 4096, %s4187_s3, [#allocation3], %s3125_s15, %s3125_s15, %s3126_s16  }
 0x270   :  { %3121 = dma.done.wait [#allocation3], 4096  }
 0x271   :  { %3122 = vsyncadd [#allocation3], 4294963200 }
 0x272   :  { %2106 = vsyncpa [#allocation3], 1 }

</bundles_post_ra>
